<compile_context>
chip_gen: v7x
topology: tpu7x:2x2x1
jax: 0.10.0
libtpu: 0.0.40
codegen_flags: <defaults>
</compile_context>

<pallas_src>
import functools

import jax
import jax.numpy as jnp
from jax import lax
from jax.experimental import pallas as pl
from jax.experimental.pallas import tpu as pltpu

_LANE = 128   # lane width (last dim)
_SUB = 8      # sublane width (second-to-last dim)


def _round_up(v, m):
    return (v + m - 1) // m * m


# -----------------------------------------------------------------------------
# Fused kernel: layer-0 GRU + fused layers>=1 GRU + sigmoid(Linear) head.
#
# refs (positional):
#   x_ref                            (T, TB, Dp)    time-major bf16 input tile
#   wih0, whh0                       (Dp,3Hp),(Hp,3Hp)  bf16
#   b0_rzn                           (1, 3Hp) f32   = b_ih0 + [b_hh0_r, b_hh0_z, 0]
#   b0_hn                            (1, Hp)  f32   = b_hh0_n
#   [wf_l, bf_l] * (L-1)             (2Hp,4Hp) bf16, (1,4Hp) f32
#   wfc, bfc                         (Hp, Op) bf16, (1, Op) f32
#   out_ref                          (TB, T, Op) f32   batch-major
#   hT_ref                           (L, TB, Hp) f32
#   gi0_scr                          (T*TB, 3Hp) f32   VMEM scratch
# -----------------------------------------------------------------------------
def _make_timegan_gru_kernel(n_layers, T, TB, Hp):
    n_in = 7 + 2 * (n_layers - 1)

    def kernel(*refs):
        x_ref = refs[0]
        wih0_ref, whh0_ref, b0_rzn_ref, b0_hn_ref = refs[1:5]
        fused_refs = refs[5:5 + 2 * (n_layers - 1)]
        wfc_ref = refs[5 + 2 * (n_layers - 1)]
        bfc_ref = refs[6 + 2 * (n_layers - 1)]
        out_ref = refs[n_in]
        hT_ref = refs[n_in + 1]
        gi0_scr = refs[n_in + 2]

        Dp = x_ref.shape[2]

        # Hoisted layer-0 input projection: one big off-critical-path MXU
        # matmul over all T timesteps, with b_ih0 + b_hh0[r,z] folded in.
        x2d = x_ref[...].reshape(T * TB, Dp)
        gi0_scr[...] = (
            jnp.dot(x2d, wih0_ref[...], preferred_element_type=jnp.float32)
            + b0_rzn_ref[...])

        # Hoist only the small biases; the (big) weight matrices are read from
        # their VMEM refs inside the loop so they are never pinned in vregs.
        b0_hn = b0_hn_ref[...]
        bfc = bfc_ref[...]
        fused_b = [fused_refs[2 * i + 1][...] for i in range(n_layers - 1)]

        def step(t, hs):
            row = t * TB
            if not isinstance(t, int):
                row = pl.multiple_of(row, TB)
            gi0 = gi0_scr[pl.ds(row, TB), :]

            # ---- layer 0: only the hidden matmul sits on the serial path ----
            h0 = hs[0]
            gh0 = jnp.dot(h0.astype(jnp.bfloat16), whh0_ref[...],
                          preferred_element_type=jnp.float32)
            r = jax.nn.sigmoid(gi0[:, 0 * Hp:1 * Hp] + gh0[:, 0 * Hp:1 * Hp])
            z = jax.nn.sigmoid(gi0[:, 1 * Hp:2 * Hp] + gh0[:, 1 * Hp:2 * Hp])
            n = jnp.tanh(gi0[:, 2 * Hp:3 * Hp]
                         + r * (gh0[:, 2 * Hp:3 * Hp] + b0_hn))
            h_new = (1.0 - z) * n + z * h0
            new_hs = [h_new]
            h_in = h_new

            # ---- layers >= 1: input + hidden matmuls fused into a single ----
            # ---- (TB, 2*Hp) @ (2*Hp, 4*Hp) launch (K = 2*Hp = 256)       ----
            for l in range(1, n_layers):
                h_prev = hs[l]
                xin = jnp.concatenate(
                    [h_in.astype(jnp.bfloat16), h_prev.astype(jnp.bfloat16)],
                    axis=1)
                g = (jnp.dot(xin, fused_refs[2 * (l - 1)][...],
                             preferred_element_type=jnp.float32)
                     + fused_b[l - 1])
                r = jax.nn.sigmoid(g[:, 0 * Hp:1 * Hp])
                z = jax.nn.sigmoid(g[:, 1 * Hp:2 * Hp])
                n = jnp.tanh(g[:, 2 * Hp:3 * Hp] + r * g[:, 3 * Hp:4 * Hp])
                h_new = (1.0 - z) * n + z * h_prev
                new_hs.append(h_new)
                h_in = h_new

            # Fused sigmoid(Linear) head (off the recurrence chain); batch-major
            # store, lane-dense (Op is a multiple of 128).
            y = jax.nn.sigmoid(
                jnp.dot(h_in.astype(jnp.bfloat16), wfc_ref[...],
                        preferred_element_type=jnp.float32) + bfc)
            out_ref[:, t, :] = y
            return tuple(new_hs)

        hs = tuple(jnp.zeros((TB, Hp), jnp.float32) for _ in range(n_layers))
        if T <= 32:
            for t in range(T):                  # full static unroll (small T)
                hs = step(t, hs)
        else:
            hs = lax.fori_loop(0, T, step, hs, unroll=8)   # partial unroll
        for l in range(n_layers):
            hT_ref[l] = hs[l]

    return kernel


# -----------------------------------------------------------------------------
# Weight layout helpers (gate-blocked, lane-padded; zero padding is inert —
# padded hidden lanes stay exactly 0 through the recurrence).
# -----------------------------------------------------------------------------
def _pad_gate_mat(w, d_in_p, hp):
    """(d_in, 3H) -> (d_in_p, 3*hp), gate order [r, z, n] preserved."""
    d_in, three_h = w.shape
    h = three_h // 3
    w3 = w.reshape(d_in, 3, h)
    w3 = jnp.pad(w3, ((0, d_in_p - d_in), (0, 0), (0, hp - h)))
    return w3.reshape(d_in_p, 3 * hp)


def _fused_layer_weight(wih_t, whh_t, h, hp):
    """Stack a layer>=1's [wih; whh] into one (2*hp, 4*hp) block weight.

    Column blocks: [r (input+hidden fused), z (fused), n-input, n-hidden]."""
    wih3 = wih_t.reshape(h, 3, h)
    whh3 = whh_t.reshape(h, 3, h)
    wf = jnp.zeros((2 * hp, 4 * hp), jnp.float32)
    wf = wf.at[0:h, 0:h].set(wih3[:, 0, :])                      # r, input
    wf = wf.at[hp:hp + h, 0:h].set(whh3[:, 0, :])                # r, hidden
    wf = wf.at[0:h, hp:hp + h].set(wih3[:, 1, :])                # z, input
    wf = wf.at[hp:hp + h, hp:hp + h].set(whh3[:, 1, :])          # z, hidden
    wf = wf.at[0:h, 2 * hp:2 * hp + h].set(wih3[:, 2, :])        # n, input
    wf = wf.at[hp:hp + h, 3 * hp:3 * hp + h].set(whh3[:, 2, :])  # n, hidden
    return wf


def _fused_layer_bias(bih, bhh, h, hp):
    bf = jnp.zeros((1, 4 * hp), jnp.float32)
    bf = bf.at[:, 0:h].set(bih[:, 0:h] + bhh[:, 0:h])
    bf = bf.at[:, hp:hp + h].set(bih[:, h:2 * h] + bhh[:, h:2 * h])
    bf = bf.at[:, 2 * hp:2 * hp + h].set(bih[:, 2 * h:3 * h])
    bf = bf.at[:, 3 * hp:3 * hp + h].set(bhh[:, 2 * h:3 * h])
    return bf


# -----------------------------------------------------------------------------
# Parameter init (PyTorch-style uniform(-1/sqrt(H), 1/sqrt(H)), transposed).
# -----------------------------------------------------------------------------
def init_params(key, input_size, output_size, hidden_dim, n_layers):
    scale = 1.0 / jnp.sqrt(jnp.float32(hidden_dim))
    u = functools.partial(jax.random.uniform, minval=-scale, maxval=scale,
                          dtype=jnp.float32)
    params = {"layers": []}
    for l in range(n_layers):
        d_in = input_size if l == 0 else hidden_dim
        key, k1, k2, k3, k4 = jax.random.split(key, 5)
        params["layers"].append({
            "wih_t": u(k1, (d_in, 3 * hidden_dim)),
            "whh_t": u(k2, (hidden_dim, 3 * hidden_dim)),
            "bih": u(k3, (1, 3 * hidden_dim)),
            "bhh": u(k4, (1, 3 * hidden_dim)),
        })
    key, k1, k2 = jax.random.split(key, 3)
    params["fc_w_t"] = u(k1, (hidden_dim, output_size))
    params["fc_b"] = u(k2, (1, output_size))
    return params


# -----------------------------------------------------------------------------
# Full forward (= TimeGANModule.forward with rnn_type='gru', act=sigmoid)
# -----------------------------------------------------------------------------
@jax.jit
def timegan_forward(x, params):
    """x: (B, T, input_size) -> (out (B, T, output_size), hidden (L, B, H))."""
    B, T, d_in = x.shape
    layers = params["layers"]
    n_layers = len(layers)
    H = layers[0]["whh_t"].shape[0]
    O = params["fc_w_t"].shape[1]

    Hp = _round_up(H, _LANE)
    Op = _round_up(O, _LANE)
    Dp = _round_up(d_in, _SUB)    # feature dim: sublane-aligned only (no 128-pad)

    # Batch tiling: sublane aligned; split into >=2 tiles when B is big enough
    # so the ("parallel",) grid axis can be sharded across v7x's two TCs.
    TB = min(_round_up(B, _SUB), 128)
    if B >= 2 * _SUB and _round_up(B, TB) // TB < 2:
        TB = _round_up((B + 1) // 2, _SUB)

    def est_vmem(tb):
        x_blk = T * tb * Dp * 2                                  # bf16
        out_blk = tb * T * Op * 4 + n_layers * tb * Hp * 4       # f32
        scratch = T * tb * 3 * Hp * 4
        w_bytes = ((Dp + Hp) * 3 * Hp * 2 + (3 * Hp + Hp) * 4
                   + (n_layers - 1) * (2 * Hp * 4 * Hp * 2 + 4 * Hp * 4)
                   + Hp * Op * 2 + Op * 4)
        return 2 * (x_blk + out_blk + w_bytes) + scratch         # dbl-buffered

    VMEM_BUDGET = 40 << 20        # conservative: fits v7x's 64 MiB / TC
    while TB > _SUB and est_vmem(TB) > VMEM_BUDGET:
        TB -= _SUB
    # TODO(synk): for very long T (where even TB=8 exceeds the budget) add a
    # time-chunked inner pipeline instead of whole-T blocks.

    Bp = _round_up(B, TB)
    n_bt = Bp // TB

    f32, bf16 = jnp.float32, jnp.bfloat16

    # Time-major, batch/feature zero-padded input (pads are inert), bf16.
    x_tm = jnp.transpose(x, (1, 0, 2)).astype(f32)
    x_p = jnp.pad(x_tm, ((0, 0), (0, Bp - B), (0, Dp - d_in))).astype(bf16)

    l0 = layers[0]
    bih0 = l0["bih"].astype(f32)
    bhh0 = l0["bhh"].astype(f32)
    b0_comb = bih0 + jnp.concatenate(
        [bhh0[:, :H], bhh0[:, H:2 * H], jnp.zeros((1, H), f32)], axis=1)
    w_arrays = [
        _pad_gate_mat(l0["wih_t"].astype(f32), Dp, Hp).astype(bf16),
        _pad_gate_mat(l0["whh_t"].astype(f32), Hp, Hp).astype(bf16),
        _pad_gate_mat(b0_comb, 1, Hp),                         # (1, 3Hp) f32
        jnp.pad(bhh0[:, 2 * H:], ((0, 0), (0, Hp - H))),       # (1, Hp)  f32
    ]
    for l in range(1, n_layers):
        lp = layers[l]
        w_arrays.append(_fused_layer_weight(
            lp["wih_t"].astype(f32), lp["whh_t"].astype(f32), H, Hp).astype(bf16))
        w_arrays.append(_fused_layer_bias(
            lp["bih"].astype(f32), lp["bhh"].astype(f32), H, Hp))
    w_arrays.append(jnp.pad(params["fc_w_t"].astype(f32),
                            ((0, Hp - H), (0, Op - O))).astype(bf16))
    w_arrays.append(jnp.pad(params["fc_b"].astype(f32), ((0, 0), (0, Op - O))))

    in_specs = [pl.BlockSpec((T, TB, Dp), lambda b: (0, b, 0))]
    in_specs += [pl.BlockSpec(w.shape, lambda b: (0, 0)) for w in w_arrays]
    out_specs = (pl.BlockSpec((TB, T, Op), lambda b: (b, 0, 0)),
                 pl.BlockSpec((n_layers, TB, Hp), lambda b: (0, b, 0)))

    grid_spec = pltpu.PrefetchScalarGridSpec(
        num_scalar_prefetch=0,
        grid=(n_bt,),
        in_specs=in_specs,
        out_specs=out_specs,
        scratch_shapes=[pltpu.VMEM((T * TB, 3 * Hp), jnp.float32)],
    )

    vmem_limit = int(min(max(est_vmem(TB) + (8 << 20), 16 << 20), 48 << 20))

    out_p, hT_p = pl.pallas_call(
        _make_timegan_gru_kernel(n_layers, T, TB, Hp),
        grid_spec=grid_spec,
        out_shape=(jax.ShapeDtypeStruct((Bp, T, Op), jnp.float32),
                   jax.ShapeDtypeStruct((n_layers, Bp, Hp), jnp.float32)),
        compiler_params=pltpu.CompilerParams(
            dimension_semantics=("parallel",),   # batch tiles independent
            vmem_limit_bytes=vmem_limit,
        ),
    )(x_p, *w_arrays)

    out = out_p[:B, :, :O]          # already batch-first; just slice padding
    hidden = hT_p[:, :B, :H]
    return out, hidden


# -----------------------------------------------------------------------------
# Pure-JAX reference (unpadded, per-step). `matmul_dtype=bf16` mirrors the
# kernel's MXU operand precision (f32 accumulation) for a tight comparison.
# -----------------------------------------------------------------------------
def reference_forward(x, params, matmul_dtype=jnp.float32):
    B, T, _ = x.shape
    c = lambda a: a.astype(matmul_dtype)
    h_seq = jnp.transpose(x, (1, 0, 2)).astype(jnp.float32)
    finals = []
    for lp in params["layers"]:
        H = lp["whh_t"].shape[0]
        h = jnp.zeros((B, H), jnp.float32)
        outs = []
        for t in range(T):
            gi = jnp.dot(c(h_seq[t]), c(lp["wih_t"]),
                         preferred_element_type=jnp.float32) + lp["bih"]
            gh = jnp.dot(c(h), c(lp["whh_t"]),
                         preferred_element_type=jnp.float32) + lp["bhh"]
            r = jax.nn.sigmoid(gi[:, :H] + gh[:, :H])
            z = jax.nn.sigmoid(gi[:, H:2 * H] + gh[:, H:2 * H])
            n = jnp.tanh(gi[:, 2 * H:] + r * gh[:, 2 * H:])
            h = (1.0 - z) * n + z * h
            outs.append(h)
        h_seq = jnp.stack(outs, 0)
        finals.append(h)
    hidden = jnp.stack(finals, 0)
    y = jax.nn.sigmoid(jnp.dot(c(h_seq), c(params["fc_w_t"]),
                               preferred_element_type=jnp.float32)
                       + params["fc_b"])
    return jnp.transpose(y, (1, 0, 2)), hidden


if __name__ == "__main__":
    B, T = 2, 8
    INPUT_SIZE, OUTPUT_SIZE, HIDDEN_DIM, N_LAYERS = 4, 4, 32, 2

    key = jax.random.PRNGKey(0)
    key, kx, kp = jax.random.split(key, 3)
    x = jax.random.normal(kx, (B, T, INPUT_SIZE), dtype=jnp.float32)
    params = init_params(kp, INPUT_SIZE, OUTPUT_SIZE, HIDDEN_DIM, N_LAYERS)

    out, hidden = timegan_forward(x, params)
    out, hidden = jax.block_until_ready((out, hidden))

    assert out.shape == (B, T, OUTPUT_SIZE)
    assert hidden.shape == (N_LAYERS, B, HIDDEN_DIM)

    # Tight check vs a reference using the same bf16 MXU operand precision.
    ref_out, ref_hid = reference_forward(x, params, matmul_dtype=jnp.bfloat16)
    assert jnp.allclose(out, ref_out, atol=2e-3, rtol=2e-3)
    assert jnp.allclose(hidden, ref_hid, atol=2e-3, rtol=2e-3)

    # Looser sanity check vs the full-f32 reference.
    ref_out32, ref_hid32 = reference_forward(x, params)
    assert jnp.allclose(out, ref_out32, atol=3e-2, rtol=3e-2)
    assert jnp.allclose(hidden, ref_hid32, atol=3e-2, rtol=3e-2)

    print("KERNEL_OK")
</pallas_src>

<mosaic_0001>
module attributes {stable_mosaic.version = 11 : i64} {
  func.func @kernel(%arg0: i32, %arg1: memref<8x8x8xbf16, #tpu.memory_space<vmem>>, %arg2: memref<8x384xbf16, #tpu.memory_space<vmem>>, %arg3: memref<128x384xbf16, #tpu.memory_space<vmem>>, %arg4: memref<1x384xf32, #tpu.memory_space<vmem>>, %arg5: memref<1x128xf32, #tpu.memory_space<vmem>>, %arg6: memref<256x512xbf16, #tpu.memory_space<vmem>>, %arg7: memref<1x512xf32, #tpu.memory_space<vmem>>, %arg8: memref<128x128xbf16, #tpu.memory_space<vmem>>, %arg9: memref<1x128xf32, #tpu.memory_space<vmem>>, %arg10: memref<8x8x128xf32, #tpu.memory_space<vmem>>, %arg11: memref<2x8x128xf32, #tpu.memory_space<vmem>>, %arg12: memref<64x384xf32, #tpu.memory_space<vmem>>) attributes {dimension_semantics = [#tpu.dimension_semantics<parallel>], iteration_bounds = array<i64: 1>, scalar_prefetch = 0 : i64, scratch_operands = 1 : i64, tpu.core_type = #tpu.core_type<tc>, window_params = [{transform_indices = @transform_0, window_bounds = array<i64: 8, 8, 8>}, {pipeline_mode = #tpu.pipeline_mode<synchronous>, transform_indices = @transform_1, window_bounds = array<i64: 8, 384>}, {pipeline_mode = #tpu.pipeline_mode<synchronous>, transform_indices = @transform_2, window_bounds = array<i64: 128, 384>}, {pipeline_mode = #tpu.pipeline_mode<synchronous>, transform_indices = @transform_3, window_bounds = array<i64: 1, 384>}, {pipeline_mode = #tpu.pipeline_mode<synchronous>, transform_indices = @transform_4, window_bounds = array<i64: 1, 128>}, {pipeline_mode = #tpu.pipeline_mode<synchronous>, transform_indices = @transform_5, window_bounds = array<i64: 256, 512>}, {pipeline_mode = #tpu.pipeline_mode<synchronous>, transform_indices = @transform_6, window_bounds = array<i64: 1, 512>}, {pipeline_mode = #tpu.pipeline_mode<synchronous>, transform_indices = @transform_7, window_bounds = array<i64: 128, 128>}, {pipeline_mode = #tpu.pipeline_mode<synchronous>, transform_indices = @transform_8, window_bounds = array<i64: 1, 128>}, {transform_indices = @transform_9, window_bounds = array<i64: 8, 8, 128>}, {transform_indices = @transform_10, window_bounds = array<i64: 2, 8, 128>}]} {
    %c0 = arith.constant 0 : index
    %c0_0 = arith.constant 0 : index
    %c0_1 = arith.constant 0 : index
    %0 = vector.load %arg1[%c0, %c0_0, %c0_1] : memref<8x8x8xbf16, #tpu.memory_space<vmem>>, vector<8x8x8xbf16>
    %1 = vector.shape_cast %0 : vector<8x8x8xbf16> to vector<64x8xbf16>
    %c0_2 = arith.constant 0 : index
    %c0_3 = arith.constant 0 : index
    %2 = vector.load %arg2[%c0_2, %c0_3] : memref<8x384xbf16, #tpu.memory_space<vmem>>, vector<8x384xbf16>
    %cst = arith.constant dense<0.000000e+00> : vector<64x384xf32>
    %3 = tpu.matmul %1, %2, %cst {dimension_numbers = #tpu.dot_dimension_numbers<[1], [0], [0], [1], [0, 0, 1, 1], [], []>} : vector<64x8xbf16>, vector<8x384xbf16>, vector<64x384xf32> -> vector<64x384xf32>
    %c0_4 = arith.constant 0 : index
    %c0_5 = arith.constant 0 : index
    %4 = vector.load %arg4[%c0_4, %c0_5] : memref<1x384xf32, #tpu.memory_space<vmem>>, vector<1x384xf32>
    %5 = vector.broadcast %4 : vector<1x384xf32> to vector<64x384xf32>
    %6 = arith.addf %3, %5 : vector<64x384xf32>
    %c0_6 = arith.constant 0 : index
    %c0_7 = arith.constant 0 : index
    %7 = vector.load %arg12[%c0_6, %c0_7] : memref<64x384xf32, #tpu.memory_space<vmem>>, vector<64x384xf32>
    tpu.vector_store %arg12[%c0_6, %c0_7], %6 {strides = array<i32>} : memref<64x384xf32, #tpu.memory_space<vmem>>, vector<64x384xf32>,
    %c0_8 = arith.constant 0 : index
    %c0_9 = arith.constant 0 : index
    %8 = vector.load %arg5[%c0_8, %c0_9] : memref<1x128xf32, #tpu.memory_space<vmem>>, vector<1x128xf32>
    %c0_10 = arith.constant 0 : index
    %c0_11 = arith.constant 0 : index
    %9 = vector.load %arg9[%c0_10, %c0_11] : memref<1x128xf32, #tpu.memory_space<vmem>>, vector<1x128xf32>
    %c0_12 = arith.constant 0 : index
    %c0_13 = arith.constant 0 : index
    %10 = vector.load %arg7[%c0_12, %c0_13] : memref<1x512xf32, #tpu.memory_space<vmem>>, vector<1x512xf32>
    %cst_14 = arith.constant 0.000000e+00 : f32
    %11 = vector.broadcast %cst_14 : f32 to vector<8x128xf32>
    %cst_15 = arith.constant 0.000000e+00 : f32
    %12 = vector.broadcast %cst_15 : f32 to vector<8x128xf32>
    %c0_16 = arith.constant 0 : index
    %c0_17 = arith.constant 0 : index
    %13 = vector.load %arg12[%c0_16, %c0_17] : memref<64x384xf32, #tpu.memory_space<vmem>>, vector<8x384xf32>
    %14 = arith.truncf %11 : vector<8x128xf32> to vector<8x128xbf16>
    %c0_18 = arith.constant 0 : index
    %c0_19 = arith.constant 0 : index
    %15 = vector.load %arg3[%c0_18, %c0_19] : memref<128x384xbf16, #tpu.memory_space<vmem>>, vector<128x384xbf16>
    %cst_20 = arith.constant dense<0.000000e+00> : vector<8x384xf32>
    %16 = tpu.matmul %14, %15, %cst_20 {dimension_numbers = #tpu.dot_dimension_numbers<[1], [0], [0], [1], [0, 0, 1, 1], [], []>} : vector<8x128xbf16>, vector<128x384xbf16>, vector<8x384xf32> -> vector<8x384xf32>
    %17 = vector.extract_strided_slice %13 {offsets = [0, 0], sizes = [8, 128], strides = [1, 1]} : vector<8x384xf32> to vector<8x128xf32>
    %18 = vector.extract_strided_slice %16 {offsets = [0, 0], sizes = [8, 128], strides = [1, 1]} : vector<8x384xf32> to vector<8x128xf32>
    %19 = arith.addf %17, %18 : vector<8x128xf32>
    %20 = arith.negf %19 : vector<8x128xf32>
    %21 = math.exp %20 : vector<8x128xf32>
    %cst_21 = arith.constant 1.000000e+00 : f32
    %22 = vector.broadcast %cst_21 : f32 to vector<8x128xf32>
    %23 = arith.addf %22, %21 : vector<8x128xf32>
    %24 = arith.divf %22, %23 : vector<8x128xf32>
    %25 = vector.extract_strided_slice %13 {offsets = [0, 128], sizes = [8, 128], strides = [1, 1]} : vector<8x384xf32> to vector<8x128xf32>
    %26 = vector.extract_strided_slice %16 {offsets = [0, 128], sizes = [8, 128], strides = [1, 1]} : vector<8x384xf32> to vector<8x128xf32>
    %27 = arith.addf %25, %26 : vector<8x128xf32>
    %28 = arith.negf %27 : vector<8x128xf32>
    %29 = math.exp %28 : vector<8x128xf32>
    %cst_22 = arith.constant 1.000000e+00 : f32
    %30 = vector.broadcast %cst_22 : f32 to vector<8x128xf32>
    %31 = arith.addf %30, %29 : vector<8x128xf32>
    %32 = arith.divf %30, %31 : vector<8x128xf32>
    %33 = vector.extract_strided_slice %13 {offsets = [0, 256], sizes = [8, 128], strides = [1, 1]} : vector<8x384xf32> to vector<8x128xf32>
    %34 = vector.extract_strided_slice %16 {offsets = [0, 256], sizes = [8, 128], strides = [1, 1]} : vector<8x384xf32> to vector<8x128xf32>
    %35 = vector.broadcast %8 : vector<1x128xf32> to vector<8x128xf32>
    %36 = arith.addf %34, %35 : vector<8x128xf32>
    %37 = arith.mulf %24, %36 : vector<8x128xf32>
    %38 = arith.addf %33, %37 : vector<8x128xf32>
    %39 = math.tanh %38 : vector<8x128xf32>
    %cst_23 = arith.constant 1.000000e+00 : f32
    %40 = vector.broadcast %cst_23 : f32 to vector<8x128xf32>
    %41 = arith.subf %40, %32 : vector<8x128xf32>
    %42 = arith.mulf %41, %39 : vector<8x128xf32>
    %43 = arith.mulf %32, %11 : vector<8x128xf32>
    %44 = arith.addf %42, %43 : vector<8x128xf32>
    %45 = arith.truncf %44 : vector<8x128xf32> to vector<8x128xbf16>
    %46 = arith.truncf %12 : vector<8x128xf32> to vector<8x128xbf16>
    %47 = tpu.concatenate %45, %46 in 1 : vector<8x128xbf16>, vector<8x128xbf16> -> vector<8x256xbf16>
    %c0_24 = arith.constant 0 : index
    %c0_25 = arith.constant 0 : index
    %48 = vector.load %arg6[%c0_24, %c0_25] : memref<256x512xbf16, #tpu.memory_space<vmem>>, vector<256x512xbf16>
    %cst_26 = arith.constant dense<0.000000e+00> : vector<8x512xf32>
    %49 = tpu.matmul %47, %48, %cst_26 {dimension_numbers = #tpu.dot_dimension_numbers<[1], [0], [0], [1], [0, 0, 1, 1], [], []>} : vector<8x256xbf16>, vector<256x512xbf16>, vector<8x512xf32> -> vector<8x512xf32>
    %50 = vector.broadcast %10 : vector<1x512xf32> to vector<8x512xf32>
    %51 = arith.addf %49, %50 : vector<8x512xf32>
    %52 = vector.extract_strided_slice %51 {offsets = [0, 0], sizes = [8, 128], strides = [1, 1]} : vector<8x512xf32> to vector<8x128xf32>
    %53 = arith.negf %52 : vector<8x128xf32>
    %54 = math.exp %53 : vector<8x128xf32>
    %cst_27 = arith.constant 1.000000e+00 : f32
    %55 = vector.broadcast %cst_27 : f32 to vector<8x128xf32>
    %56 = arith.addf %55, %54 : vector<8x128xf32>
    %57 = arith.divf %55, %56 : vector<8x128xf32>
    %58 = vector.extract_strided_slice %51 {offsets = [0, 128], sizes = [8, 128], strides = [1, 1]} : vector<8x512xf32> to vector<8x128xf32>
    %59 = arith.negf %58 : vector<8x128xf32>
    %60 = math.exp %59 : vector<8x128xf32>
    %cst_28 = arith.constant 1.000000e+00 : f32
    %61 = vector.broadcast %cst_28 : f32 to vector<8x128xf32>
    %62 = arith.addf %61, %60 : vector<8x128xf32>
    %63 = arith.divf %61, %62 : vector<8x128xf32>
    %64 = vector.extract_strided_slice %51 {offsets = [0, 256], sizes = [8, 128], strides = [1, 1]} : vector<8x512xf32> to vector<8x128xf32>
    %65 = vector.extract_strided_slice %51 {offsets = [0, 384], sizes = [8, 128], strides = [1, 1]} : vector<8x512xf32> to vector<8x128xf32>
    %66 = arith.mulf %57, %65 : vector<8x128xf32>
    %67 = arith.addf %64, %66 : vector<8x128xf32>
    %68 = math.tanh %67 : vector<8x128xf32>
    %cst_29 = arith.constant 1.000000e+00 : f32
    %69 = vector.broadcast %cst_29 : f32 to vector<8x128xf32>
    %70 = arith.subf %69, %63 : vector<8x128xf32>
    %71 = arith.mulf %70, %68 : vector<8x128xf32>
    %72 = arith.mulf %63, %12 : vector<8x128xf32>
    %73 = arith.addf %71, %72 : vector<8x128xf32>
    %74 = arith.truncf %73 : vector<8x128xf32> to vector<8x128xbf16>
    %c0_30 = arith.constant 0 : index
    %c0_31 = arith.constant 0 : index
    %75 = vector.load %arg8[%c0_30, %c0_31] : memref<128x128xbf16, #tpu.memory_space<vmem>>, vector<128x128xbf16>
    %cst_32 = arith.constant dense<0.000000e+00> : vector<8x128xf32>
    %76 = tpu.matmul %74, %75, %cst_32 {dimension_numbers = #tpu.dot_dimension_numbers<[1], [0], [0], [1], [0, 0, 1, 1], [], []>} : vector<8x128xbf16>, vector<128x128xbf16>, vector<8x128xf32> -> vector<8x128xf32>
    %77 = vector.broadcast %9 : vector<1x128xf32> to vector<8x128xf32>
    %78 = arith.addf %76, %77 : vector<8x128xf32>
    %79 = arith.negf %78 : vector<8x128xf32>
    %80 = math.exp %79 : vector<8x128xf32>
    %cst_33 = arith.constant 1.000000e+00 : f32
    %81 = vector.broadcast %cst_33 : f32 to vector<8x128xf32>
    %82 = arith.addf %81, %80 : vector<8x128xf32>
    %83 = arith.divf %81, %82 : vector<8x128xf32>
    %c0_34 = arith.constant 0 : index
    %c0_35 = arith.constant 0 : index
    %c0_36 = arith.constant 0 : index
    %84 = vector.load %arg10[%c0_34, %c0_35, %c0_36] : memref<8x8x128xf32, #tpu.memory_space<vmem>>, vector<8x1x128xf32>
    %85 = vector.shape_cast %84 : vector<8x1x128xf32> to vector<8x128xf32>
    %86 = vector.shape_cast %83 : vector<8x128xf32> to vector<8x1x128xf32>
    tpu.vector_store %arg10[%c0_34, %c0_35, %c0_36], %86 {strides = array<i32>} : memref<8x8x128xf32, #tpu.memory_space<vmem>>, vector<8x1x128xf32>,
    %c8 = arith.constant 8 : index
    %c0_37 = arith.constant 0 : index
    %87 = vector.load %arg12[%c8, %c0_37] : memref<64x384xf32, #tpu.memory_space<vmem>>, vector<8x384xf32>
    %88 = arith.truncf %44 : vector<8x128xf32> to vector<8x128xbf16>
    %c0_38 = arith.constant 0 : index
    %c0_39 = arith.constant 0 : index
    %89 = vector.load %arg3[%c0_38, %c0_39] : memref<128x384xbf16, #tpu.memory_space<vmem>>, vector<128x384xbf16>
    %cst_40 = arith.constant dense<0.000000e+00> : vector<8x384xf32>
    %90 = tpu.matmul %88, %89, %cst_40 {dimension_numbers = #tpu.dot_dimension_numbers<[1], [0], [0], [1], [0, 0, 1, 1], [], []>} : vector<8x128xbf16>, vector<128x384xbf16>, vector<8x384xf32> -> vector<8x384xf32>
    %91 = vector.extract_strided_slice %87 {offsets = [0, 0], sizes = [8, 128], strides = [1, 1]} : vector<8x384xf32> to vector<8x128xf32>
    %92 = vector.extract_strided_slice %90 {offsets = [0, 0], sizes = [8, 128], strides = [1, 1]} : vector<8x384xf32> to vector<8x128xf32>
    %93 = arith.addf %91, %92 : vector<8x128xf32>
    %94 = arith.negf %93 : vector<8x128xf32>
    %95 = math.exp %94 : vector<8x128xf32>
    %cst_41 = arith.constant 1.000000e+00 : f32
    %96 = vector.broadcast %cst_41 : f32 to vector<8x128xf32>
    %97 = arith.addf %96, %95 : vector<8x128xf32>
    %98 = arith.divf %96, %97 : vector<8x128xf32>
    %99 = vector.extract_strided_slice %87 {offsets = [0, 128], sizes = [8, 128], strides = [1, 1]} : vector<8x384xf32> to vector<8x128xf32>
    %100 = vector.extract_strided_slice %90 {offsets = [0, 128], sizes = [8, 128], strides = [1, 1]} : vector<8x384xf32> to vector<8x128xf32>
    %101 = arith.addf %99, %100 : vector<8x128xf32>
    %102 = arith.negf %101 : vector<8x128xf32>
    %103 = math.exp %102 : vector<8x128xf32>
    %cst_42 = arith.constant 1.000000e+00 : f32
    %104 = vector.broadcast %cst_42 : f32 to vector<8x128xf32>
    %105 = arith.addf %104, %103 : vector<8x128xf32>
    %106 = arith.divf %104, %105 : vector<8x128xf32>
    %107 = vector.extract_strided_slice %87 {offsets = [0, 256], sizes = [8, 128], strides = [1, 1]} : vector<8x384xf32> to vector<8x128xf32>
    %108 = vector.extract_strided_slice %90 {offsets = [0, 256], sizes = [8, 128], strides = [1, 1]} : vector<8x384xf32> to vector<8x128xf32>
    %109 = vector.broadcast %8 : vector<1x128xf32> to vector<8x128xf32>
    %110 = arith.addf %108, %109 : vector<8x128xf32>
    %111 = arith.mulf %98, %110 : vector<8x128xf32>
    %112 = arith.addf %107, %111 : vector<8x128xf32>
    %113 = math.tanh %112 : vector<8x128xf32>
    %cst_43 = arith.constant 1.000000e+00 : f32
    %114 = vector.broadcast %cst_43 : f32 to vector<8x128xf32>
    %115 = arith.subf %114, %106 : vector<8x128xf32>
    %116 = arith.mulf %115, %113 : vector<8x128xf32>
    %117 = arith.mulf %106, %44 : vector<8x128xf32>
    %118 = arith.addf %116, %117 : vector<8x128xf32>
    %119 = arith.truncf %118 : vector<8x128xf32> to vector<8x128xbf16>
    %120 = arith.truncf %73 : vector<8x128xf32> to vector<8x128xbf16>
    %121 = tpu.concatenate %119, %120 in 1 : vector<8x128xbf16>, vector<8x128xbf16> -> vector<8x256xbf16>
    %c0_44 = arith.constant 0 : index
    %c0_45 = arith.constant 0 : index
    %122 = vector.load %arg6[%c0_44, %c0_45] : memref<256x512xbf16, #tpu.memory_space<vmem>>, vector<256x512xbf16>
    %cst_46 = arith.constant dense<0.000000e+00> : vector<8x512xf32>
    %123 = tpu.matmul %121, %122, %cst_46 {dimension_numbers = #tpu.dot_dimension_numbers<[1], [0], [0], [1], [0, 0, 1, 1], [], []>} : vector<8x256xbf16>, vector<256x512xbf16>, vector<8x512xf32> -> vector<8x512xf32>
    %124 = vector.broadcast %10 : vector<1x512xf32> to vector<8x512xf32>
    %125 = arith.addf %123, %124 : vector<8x512xf32>
    %126 = vector.extract_strided_slice %125 {offsets = [0, 0], sizes = [8, 128], strides = [1, 1]} : vector<8x512xf32> to vector<8x128xf32>
    %127 = arith.negf %126 : vector<8x128xf32>
    %128 = math.exp %127 : vector<8x128xf32>
    %cst_47 = arith.constant 1.000000e+00 : f32
    %129 = vector.broadcast %cst_47 : f32 to vector<8x128xf32>
    %130 = arith.addf %129, %128 : vector<8x128xf32>
    %131 = arith.divf %129, %130 : vector<8x128xf32>
    %132 = vector.extract_strided_slice %125 {offsets = [0, 128], sizes = [8, 128], strides = [1, 1]} : vector<8x512xf32> to vector<8x128xf32>
    %133 = arith.negf %132 : vector<8x128xf32>
    %134 = math.exp %133 : vector<8x128xf32>
    %cst_48 = arith.constant 1.000000e+00 : f32
    %135 = vector.broadcast %cst_48 : f32 to vector<8x128xf32>
    %136 = arith.addf %135, %134 : vector<8x128xf32>
    %137 = arith.divf %135, %136 : vector<8x128xf32>
    %138 = vector.extract_strided_slice %125 {offsets = [0, 256], sizes = [8, 128], strides = [1, 1]} : vector<8x512xf32> to vector<8x128xf32>
    %139 = vector.extract_strided_slice %125 {offsets = [0, 384], sizes = [8, 128], strides = [1, 1]} : vector<8x512xf32> to vector<8x128xf32>
    %140 = arith.mulf %131, %139 : vector<8x128xf32>
    %141 = arith.addf %138, %140 : vector<8x128xf32>
    %142 = math.tanh %141 : vector<8x128xf32>
    %cst_49 = arith.constant 1.000000e+00 : f32
    %143 = vector.broadcast %cst_49 : f32 to vector<8x128xf32>
    %144 = arith.subf %143, %137 : vector<8x128xf32>
    %145 = arith.mulf %144, %142 : vector<8x128xf32>
    %146 = arith.mulf %137, %73 : vector<8x128xf32>
    %147 = arith.addf %145, %146 : vector<8x128xf32>
    %148 = arith.truncf %147 : vector<8x128xf32> to vector<8x128xbf16>
    %c0_50 = arith.constant 0 : index
    %c0_51 = arith.constant 0 : index
    %149 = vector.load %arg8[%c0_50, %c0_51] : memref<128x128xbf16, #tpu.memory_space<vmem>>, vector<128x128xbf16>
    %cst_52 = arith.constant dense<0.000000e+00> : vector<8x128xf32>
    %150 = tpu.matmul %148, %149, %cst_52 {dimension_numbers = #tpu.dot_dimension_numbers<[1], [0], [0], [1], [0, 0, 1, 1], [], []>} : vector<8x128xbf16>, vector<128x128xbf16>, vector<8x128xf32> -> vector<8x128xf32>
    %151 = vector.broadcast %9 : vector<1x128xf32> to vector<8x128xf32>
    %152 = arith.addf %150, %151 : vector<8x128xf32>
    %153 = arith.negf %152 : vector<8x128xf32>
    %154 = math.exp %153 : vector<8x128xf32>
    %cst_53 = arith.constant 1.000000e+00 : f32
    %155 = vector.broadcast %cst_53 : f32 to vector<8x128xf32>
    %156 = arith.addf %155, %154 : vector<8x128xf32>
    %157 = arith.divf %155, %156 : vector<8x128xf32>
    %c0_54 = arith.constant 0 : index
    %c1 = arith.constant 1 : index
    %c0_55 = arith.constant 0 : index
    %158 = vector.load %arg10[%c0_54, %c1, %c0_55] : memref<8x8x128xf32, #tpu.memory_space<vmem>>, vector<8x1x128xf32>
    %159 = vector.shape_cast %158 : vector<8x1x128xf32> to vector<8x128xf32>
    %160 = vector.shape_cast %157 : vector<8x128xf32> to vector<8x1x128xf32>
    tpu.vector_store %arg10[%c0_54, %c1, %c0_55], %160 {strides = array<i32>} : memref<8x8x128xf32, #tpu.memory_space<vmem>>, vector<8x1x128xf32>,
    %c16 = arith.constant 16 : index
    %c0_56 = arith.constant 0 : index
    %161 = vector.load %arg12[%c16, %c0_56] : memref<64x384xf32, #tpu.memory_space<vmem>>, vector<8x384xf32>
    %162 = arith.truncf %118 : vector<8x128xf32> to vector<8x128xbf16>
    %c0_57 = arith.constant 0 : index
    %c0_58 = arith.constant 0 : index
    %163 = vector.load %arg3[%c0_57, %c0_58] : memref<128x384xbf16, #tpu.memory_space<vmem>>, vector<128x384xbf16>
    %cst_59 = arith.constant dense<0.000000e+00> : vector<8x384xf32>
    %164 = tpu.matmul %162, %163, %cst_59 {dimension_numbers = #tpu.dot_dimension_numbers<[1], [0], [0], [1], [0, 0, 1, 1], [], []>} : vector<8x128xbf16>, vector<128x384xbf16>, vector<8x384xf32> -> vector<8x384xf32>
    %165 = vector.extract_strided_slice %161 {offsets = [0, 0], sizes = [8, 128], strides = [1, 1]} : vector<8x384xf32> to vector<8x128xf32>
    %166 = vector.extract_strided_slice %164 {offsets = [0, 0], sizes = [8, 128], strides = [1, 1]} : vector<8x384xf32> to vector<8x128xf32>
    %167 = arith.addf %165, %166 : vector<8x128xf32>
    %168 = arith.negf %167 : vector<8x128xf32>
    %169 = math.exp %168 : vector<8x128xf32>
    %cst_60 = arith.constant 1.000000e+00 : f32
    %170 = vector.broadcast %cst_60 : f32 to vector<8x128xf32>
    %171 = arith.addf %170, %169 : vector<8x128xf32>
    %172 = arith.divf %170, %171 : vector<8x128xf32>
    %173 = vector.extract_strided_slice %161 {offsets = [0, 128], sizes = [8, 128], strides = [1, 1]} : vector<8x384xf32> to vector<8x128xf32>
    %174 = vector.extract_strided_slice %164 {offsets = [0, 128], sizes = [8, 128], strides = [1, 1]} : vector<8x384xf32> to vector<8x128xf32>
    %175 = arith.addf %173, %174 : vector<8x128xf32>
    %176 = arith.negf %175 : vector<8x128xf32>
    %177 = math.exp %176 : vector<8x128xf32>
    %cst_61 = arith.constant 1.000000e+00 : f32
    %178 = vector.broadcast %cst_61 : f32 to vector<8x128xf32>
    %179 = arith.addf %178, %177 : vector<8x128xf32>
    %180 = arith.divf %178, %179 : vector<8x128xf32>
    %181 = vector.extract_strided_slice %161 {offsets = [0, 256], sizes = [8, 128], strides = [1, 1]} : vector<8x384xf32> to vector<8x128xf32>
    %182 = vector.extract_strided_slice %164 {offsets = [0, 256], sizes = [8, 128], strides = [1, 1]} : vector<8x384xf32> to vector<8x128xf32>
    %183 = vector.broadcast %8 : vector<1x128xf32> to vector<8x128xf32>
    %184 = arith.addf %182, %183 : vector<8x128xf32>
    %185 = arith.mulf %172, %184 : vector<8x128xf32>
    %186 = arith.addf %181, %185 : vector<8x128xf32>
    %187 = math.tanh %186 : vector<8x128xf32>
    %cst_62 = arith.constant 1.000000e+00 : f32
    %188 = vector.broadcast %cst_62 : f32 to vector<8x128xf32>
    %189 = arith.subf %188, %180 : vector<8x128xf32>
    %190 = arith.mulf %189, %187 : vector<8x128xf32>
    %191 = arith.mulf %180, %118 : vector<8x128xf32>
    %192 = arith.addf %190, %191 : vector<8x128xf32>
    %193 = arith.truncf %192 : vector<8x128xf32> to vector<8x128xbf16>
    %194 = arith.truncf %147 : vector<8x128xf32> to vector<8x128xbf16>
    %195 = tpu.concatenate %193, %194 in 1 : vector<8x128xbf16>, vector<8x128xbf16> -> vector<8x256xbf16>
    %c0_63 = arith.constant 0 : index
    %c0_64 = arith.constant 0 : index
    %196 = vector.load %arg6[%c0_63, %c0_64] : memref<256x512xbf16, #tpu.memory_space<vmem>>, vector<256x512xbf16>
    %cst_65 = arith.constant dense<0.000000e+00> : vector<8x512xf32>
    %197 = tpu.matmul %195, %196, %cst_65 {dimension_numbers = #tpu.dot_dimension_numbers<[1], [0], [0], [1], [0, 0, 1, 1], [], []>} : vector<8x256xbf16>, vector<256x512xbf16>, vector<8x512xf32> -> vector<8x512xf32>
    %198 = vector.broadcast %10 : vector<1x512xf32> to vector<8x512xf32>
    %199 = arith.addf %197, %198 : vector<8x512xf32>
    %200 = vector.extract_strided_slice %199 {offsets = [0, 0], sizes = [8, 128], strides = [1, 1]} : vector<8x512xf32> to vector<8x128xf32>
    %201 = arith.negf %200 : vector<8x128xf32>
    %202 = math.exp %201 : vector<8x128xf32>
    %cst_66 = arith.constant 1.000000e+00 : f32
    %203 = vector.broadcast %cst_66 : f32 to vector<8x128xf32>
    %204 = arith.addf %203, %202 : vector<8x128xf32>
    %205 = arith.divf %203, %204 : vector<8x128xf32>
    %206 = vector.extract_strided_slice %199 {offsets = [0, 128], sizes = [8, 128], strides = [1, 1]} : vector<8x512xf32> to vector<8x128xf32>
    %207 = arith.negf %206 : vector<8x128xf32>
    %208 = math.exp %207 : vector<8x128xf32>
    %cst_67 = arith.constant 1.000000e+00 : f32
    %209 = vector.broadcast %cst_67 : f32 to vector<8x128xf32>
    %210 = arith.addf %209, %208 : vector<8x128xf32>
    %211 = arith.divf %209, %210 : vector<8x128xf32>
    %212 = vector.extract_strided_slice %199 {offsets = [0, 256], sizes = [8, 128], strides = [1, 1]} : vector<8x512xf32> to vector<8x128xf32>
    %213 = vector.extract_strided_slice %199 {offsets = [0, 384], sizes = [8, 128], strides = [1, 1]} : vector<8x512xf32> to vector<8x128xf32>
    %214 = arith.mulf %205, %213 : vector<8x128xf32>
    %215 = arith.addf %212, %214 : vector<8x128xf32>
    %216 = math.tanh %215 : vector<8x128xf32>
    %cst_68 = arith.constant 1.000000e+00 : f32
    %217 = vector.broadcast %cst_68 : f32 to vector<8x128xf32>
    %218 = arith.subf %217, %211 : vector<8x128xf32>
    %219 = arith.mulf %218, %216 : vector<8x128xf32>
    %220 = arith.mulf %211, %147 : vector<8x128xf32>
    %221 = arith.addf %219, %220 : vector<8x128xf32>
    %222 = arith.truncf %221 : vector<8x128xf32> to vector<8x128xbf16>
    %c0_69 = arith.constant 0 : index
    %c0_70 = arith.constant 0 : index
    %223 = vector.load %arg8[%c0_69, %c0_70] : memref<128x128xbf16, #tpu.memory_space<vmem>>, vector<128x128xbf16>
    %cst_71 = arith.constant dense<0.000000e+00> : vector<8x128xf32>
    %224 = tpu.matmul %222, %223, %cst_71 {dimension_numbers = #tpu.dot_dimension_numbers<[1], [0], [0], [1], [0, 0, 1, 1], [], []>} : vector<8x128xbf16>, vector<128x128xbf16>, vector<8x128xf32> -> vector<8x128xf32>
    %225 = vector.broadcast %9 : vector<1x128xf32> to vector<8x128xf32>
    %226 = arith.addf %224, %225 : vector<8x128xf32>
    %227 = arith.negf %226 : vector<8x128xf32>
    %228 = math.exp %227 : vector<8x128xf32>
    %cst_72 = arith.constant 1.000000e+00 : f32
    %229 = vector.broadcast %cst_72 : f32 to vector<8x128xf32>
    %230 = arith.addf %229, %228 : vector<8x128xf32>
    %231 = arith.divf %229, %230 : vector<8x128xf32>
    %c0_73 = arith.constant 0 : index
    %c2 = arith.constant 2 : index
    %c0_74 = arith.constant 0 : index
    %232 = vector.load %arg10[%c0_73, %c2, %c0_74] : memref<8x8x128xf32, #tpu.memory_space<vmem>>, vector<8x1x128xf32>
    %233 = vector.shape_cast %232 : vector<8x1x128xf32> to vector<8x128xf32>
    %234 = vector.shape_cast %231 : vector<8x128xf32> to vector<8x1x128xf32>
    tpu.vector_store %arg10[%c0_73, %c2, %c0_74], %234 {strides = array<i32>} : memref<8x8x128xf32, #tpu.memory_space<vmem>>, vector<8x1x128xf32>,
    %c24 = arith.constant 24 : index
    %c0_75 = arith.constant 0 : index
    %235 = vector.load %arg12[%c24, %c0_75] : memref<64x384xf32, #tpu.memory_space<vmem>>, vector<8x384xf32>
    %236 = arith.truncf %192 : vector<8x128xf32> to vector<8x128xbf16>
    %c0_76 = arith.constant 0 : index
    %c0_77 = arith.constant 0 : index
    %237 = vector.load %arg3[%c0_76, %c0_77] : memref<128x384xbf16, #tpu.memory_space<vmem>>, vector<128x384xbf16>
    %cst_78 = arith.constant dense<0.000000e+00> : vector<8x384xf32>
    %238 = tpu.matmul %236, %237, %cst_78 {dimension_numbers = #tpu.dot_dimension_numbers<[1], [0], [0], [1], [0, 0, 1, 1], [], []>} : vector<8x128xbf16>, vector<128x384xbf16>, vector<8x384xf32> -> vector<8x384xf32>
    %239 = vector.extract_strided_slice %235 {offsets = [0, 0], sizes = [8, 128], strides = [1, 1]} : vector<8x384xf32> to vector<8x128xf32>
    %240 = vector.extract_strided_slice %238 {offsets = [0, 0], sizes = [8, 128], strides = [1, 1]} : vector<8x384xf32> to vector<8x128xf32>
    %241 = arith.addf %239, %240 : vector<8x128xf32>
    %242 = arith.negf %241 : vector<8x128xf32>
    %243 = math.exp %242 : vector<8x128xf32>
    %cst_79 = arith.constant 1.000000e+00 : f32
    %244 = vector.broadcast %cst_79 : f32 to vector<8x128xf32>
    %245 = arith.addf %244, %243 : vector<8x128xf32>
    %246 = arith.divf %244, %245 : vector<8x128xf32>
    %247 = vector.extract_strided_slice %235 {offsets = [0, 128], sizes = [8, 128], strides = [1, 1]} : vector<8x384xf32> to vector<8x128xf32>
    %248 = vector.extract_strided_slice %238 {offsets = [0, 128], sizes = [8, 128], strides = [1, 1]} : vector<8x384xf32> to vector<8x128xf32>
    %249 = arith.addf %247, %248 : vector<8x128xf32>
    %250 = arith.negf %249 : vector<8x128xf32>
    %251 = math.exp %250 : vector<8x128xf32>
    %cst_80 = arith.constant 1.000000e+00 : f32
    %252 = vector.broadcast %cst_80 : f32 to vector<8x128xf32>
    %253 = arith.addf %252, %251 : vector<8x128xf32>
    %254 = arith.divf %252, %253 : vector<8x128xf32>
    %255 = vector.extract_strided_slice %235 {offsets = [0, 256], sizes = [8, 128], strides = [1, 1]} : vector<8x384xf32> to vector<8x128xf32>
    %256 = vector.extract_strided_slice %238 {offsets = [0, 256], sizes = [8, 128], strides = [1, 1]} : vector<8x384xf32> to vector<8x128xf32>
    %257 = vector.broadcast %8 : vector<1x128xf32> to vector<8x128xf32>
    %258 = arith.addf %256, %257 : vector<8x128xf32>
    %259 = arith.mulf %246, %258 : vector<8x128xf32>
    %260 = arith.addf %255, %259 : vector<8x128xf32>
    %261 = math.tanh %260 : vector<8x128xf32>
    %cst_81 = arith.constant 1.000000e+00 : f32
    %262 = vector.broadcast %cst_81 : f32 to vector<8x128xf32>
    %263 = arith.subf %262, %254 : vector<8x128xf32>
    %264 = arith.mulf %263, %261 : vector<8x128xf32>
    %265 = arith.mulf %254, %192 : vector<8x128xf32>
    %266 = arith.addf %264, %265 : vector<8x128xf32>
    %267 = arith.truncf %266 : vector<8x128xf32> to vector<8x128xbf16>
    %268 = arith.truncf %221 : vector<8x128xf32> to vector<8x128xbf16>
    %269 = tpu.concatenate %267, %268 in 1 : vector<8x128xbf16>, vector<8x128xbf16> -> vector<8x256xbf16>
    %c0_82 = arith.constant 0 : index
    %c0_83 = arith.constant 0 : index
    %270 = vector.load %arg6[%c0_82, %c0_83] : memref<256x512xbf16, #tpu.memory_space<vmem>>, vector<256x512xbf16>
    %cst_84 = arith.constant dense<0.000000e+00> : vector<8x512xf32>
    %271 = tpu.matmul %269, %270, %cst_84 {dimension_numbers = #tpu.dot_dimension_numbers<[1], [0], [0], [1], [0, 0, 1, 1], [], []>} : vector<8x256xbf16>, vector<256x512xbf16>, vector<8x512xf32> -> vector<8x512xf32>
    %272 = vector.broadcast %10 : vector<1x512xf32> to vector<8x512xf32>
    %273 = arith.addf %271, %272 : vector<8x512xf32>
    %274 = vector.extract_strided_slice %273 {offsets = [0, 0], sizes = [8, 128], strides = [1, 1]} : vector<8x512xf32> to vector<8x128xf32>
    %275 = arith.negf %274 : vector<8x128xf32>
    %276 = math.exp %275 : vector<8x128xf32>
    %cst_85 = arith.constant 1.000000e+00 : f32
    %277 = vector.broadcast %cst_85 : f32 to vector<8x128xf32>
    %278 = arith.addf %277, %276 : vector<8x128xf32>
    %279 = arith.divf %277, %278 : vector<8x128xf32>
    %280 = vector.extract_strided_slice %273 {offsets = [0, 128], sizes = [8, 128], strides = [1, 1]} : vector<8x512xf32> to vector<8x128xf32>
    %281 = arith.negf %280 : vector<8x128xf32>
    %282 = math.exp %281 : vector<8x128xf32>
    %cst_86 = arith.constant 1.000000e+00 : f32
    %283 = vector.broadcast %cst_86 : f32 to vector<8x128xf32>
    %284 = arith.addf %283, %282 : vector<8x128xf32>
    %285 = arith.divf %283, %284 : vector<8x128xf32>
    %286 = vector.extract_strided_slice %273 {offsets = [0, 256], sizes = [8, 128], strides = [1, 1]} : vector<8x512xf32> to vector<8x128xf32>
    %287 = vector.extract_strided_slice %273 {offsets = [0, 384], sizes = [8, 128], strides = [1, 1]} : vector<8x512xf32> to vector<8x128xf32>
    %288 = arith.mulf %279, %287 : vector<8x128xf32>
    %289 = arith.addf %286, %288 : vector<8x128xf32>
    %290 = math.tanh %289 : vector<8x128xf32>
    %cst_87 = arith.constant 1.000000e+00 : f32
    %291 = vector.broadcast %cst_87 : f32 to vector<8x128xf32>
    %292 = arith.subf %291, %285 : vector<8x128xf32>
    %293 = arith.mulf %292, %290 : vector<8x128xf32>
    %294 = arith.mulf %285, %221 : vector<8x128xf32>
    %295 = arith.addf %293, %294 : vector<8x128xf32>
    %296 = arith.truncf %295 : vector<8x128xf32> to vector<8x128xbf16>
    %c0_88 = arith.constant 0 : index
    %c0_89 = arith.constant 0 : index
    %297 = vector.load %arg8[%c0_88, %c0_89] : memref<128x128xbf16, #tpu.memory_space<vmem>>, vector<128x128xbf16>
    %cst_90 = arith.constant dense<0.000000e+00> : vector<8x128xf32>
    %298 = tpu.matmul %296, %297, %cst_90 {dimension_numbers = #tpu.dot_dimension_numbers<[1], [0], [0], [1], [0, 0, 1, 1], [], []>} : vector<8x128xbf16>, vector<128x128xbf16>, vector<8x128xf32> -> vector<8x128xf32>
    %299 = vector.broadcast %9 : vector<1x128xf32> to vector<8x128xf32>
    %300 = arith.addf %298, %299 : vector<8x128xf32>
    %301 = arith.negf %300 : vector<8x128xf32>
    %302 = math.exp %301 : vector<8x128xf32>
    %cst_91 = arith.constant 1.000000e+00 : f32
    %303 = vector.broadcast %cst_91 : f32 to vector<8x128xf32>
    %304 = arith.addf %303, %302 : vector<8x128xf32>
    %305 = arith.divf %303, %304 : vector<8x128xf32>
    %c0_92 = arith.constant 0 : index
    %c3 = arith.constant 3 : index
    %c0_93 = arith.constant 0 : index
    %306 = vector.load %arg10[%c0_92, %c3, %c0_93] : memref<8x8x128xf32, #tpu.memory_space<vmem>>, vector<8x1x128xf32>
    %307 = vector.shape_cast %306 : vector<8x1x128xf32> to vector<8x128xf32>
    %308 = vector.shape_cast %305 : vector<8x128xf32> to vector<8x1x128xf32>
    tpu.vector_store %arg10[%c0_92, %c3, %c0_93], %308 {strides = array<i32>} : memref<8x8x128xf32, #tpu.memory_space<vmem>>, vector<8x1x128xf32>,
    %c32 = arith.constant 32 : index
    %c0_94 = arith.constant 0 : index
    %309 = vector.load %arg12[%c32, %c0_94] : memref<64x384xf32, #tpu.memory_space<vmem>>, vector<8x384xf32>
    %310 = arith.truncf %266 : vector<8x128xf32> to vector<8x128xbf16>
    %c0_95 = arith.constant 0 : index
    %c0_96 = arith.constant 0 : index
    %311 = vector.load %arg3[%c0_95, %c0_96] : memref<128x384xbf16, #tpu.memory_space<vmem>>, vector<128x384xbf16>
    %cst_97 = arith.constant dense<0.000000e+00> : vector<8x384xf32>
    %312 = tpu.matmul %310, %311, %cst_97 {dimension_numbers = #tpu.dot_dimension_numbers<[1], [0], [0], [1], [0, 0, 1, 1], [], []>} : vector<8x128xbf16>, vector<128x384xbf16>, vector<8x384xf32> -> vector<8x384xf32>
    %313 = vector.extract_strided_slice %309 {offsets = [0, 0], sizes = [8, 128], strides = [1, 1]} : vector<8x384xf32> to vector<8x128xf32>
    %314 = vector.extract_strided_slice %312 {offsets = [0, 0], sizes = [8, 128], strides = [1, 1]} : vector<8x384xf32> to vector<8x128xf32>
    %315 = arith.addf %313, %314 : vector<8x128xf32>
    %316 = arith.negf %315 : vector<8x128xf32>
    %317 = math.exp %316 : vector<8x128xf32>
    %cst_98 = arith.constant 1.000000e+00 : f32
    %318 = vector.broadcast %cst_98 : f32 to vector<8x128xf32>
    %319 = arith.addf %318, %317 : vector<8x128xf32>
    %320 = arith.divf %318, %319 : vector<8x128xf32>
    %321 = vector.extract_strided_slice %309 {offsets = [0, 128], sizes = [8, 128], strides = [1, 1]} : vector<8x384xf32> to vector<8x128xf32>
    %322 = vector.extract_strided_slice %312 {offsets = [0, 128], sizes = [8, 128], strides = [1, 1]} : vector<8x384xf32> to vector<8x128xf32>
    %323 = arith.addf %321, %322 : vector<8x128xf32>
    %324 = arith.negf %323 : vector<8x128xf32>
    %325 = math.exp %324 : vector<8x128xf32>
    %cst_99 = arith.constant 1.000000e+00 : f32
    %326 = vector.broadcast %cst_99 : f32 to vector<8x128xf32>
    %327 = arith.addf %326, %325 : vector<8x128xf32>
    %328 = arith.divf %326, %327 : vector<8x128xf32>
    %329 = vector.extract_strided_slice %309 {offsets = [0, 256], sizes = [8, 128], strides = [1, 1]} : vector<8x384xf32> to vector<8x128xf32>
    %330 = vector.extract_strided_slice %312 {offsets = [0, 256], sizes = [8, 128], strides = [1, 1]} : vector<8x384xf32> to vector<8x128xf32>
    %331 = vector.broadcast %8 : vector<1x128xf32> to vector<8x128xf32>
    %332 = arith.addf %330, %331 : vector<8x128xf32>
    %333 = arith.mulf %320, %332 : vector<8x128xf32>
    %334 = arith.addf %329, %333 : vector<8x128xf32>
    %335 = math.tanh %334 : vector<8x128xf32>
    %cst_100 = arith.constant 1.000000e+00 : f32
    %336 = vector.broadcast %cst_100 : f32 to vector<8x128xf32>
    %337 = arith.subf %336, %328 : vector<8x128xf32>
    %338 = arith.mulf %337, %335 : vector<8x128xf32>
    %339 = arith.mulf %328, %266 : vector<8x128xf32>
    %340 = arith.addf %338, %339 : vector<8x128xf32>
    %341 = arith.truncf %340 : vector<8x128xf32> to vector<8x128xbf16>
    %342 = arith.truncf %295 : vector<8x128xf32> to vector<8x128xbf16>
    %343 = tpu.concatenate %341, %342 in 1 : vector<8x128xbf16>, vector<8x128xbf16> -> vector<8x256xbf16>
    %c0_101 = arith.constant 0 : index
    %c0_102 = arith.constant 0 : index
    %344 = vector.load %arg6[%c0_101, %c0_102] : memref<256x512xbf16, #tpu.memory_space<vmem>>, vector<256x512xbf16>
    %cst_103 = arith.constant dense<0.000000e+00> : vector<8x512xf32>
    %345 = tpu.matmul %343, %344, %cst_103 {dimension_numbers = #tpu.dot_dimension_numbers<[1], [0], [0], [1], [0, 0, 1, 1], [], []>} : vector<8x256xbf16>, vector<256x512xbf16>, vector<8x512xf32> -> vector<8x512xf32>
    %346 = vector.broadcast %10 : vector<1x512xf32> to vector<8x512xf32>
    %347 = arith.addf %345, %346 : vector<8x512xf32>
    %348 = vector.extract_strided_slice %347 {offsets = [0, 0], sizes = [8, 128], strides = [1, 1]} : vector<8x512xf32> to vector<8x128xf32>
    %349 = arith.negf %348 : vector<8x128xf32>
    %350 = math.exp %349 : vector<8x128xf32>
    %cst_104 = arith.constant 1.000000e+00 : f32
    %351 = vector.broadcast %cst_104 : f32 to vector<8x128xf32>
    %352 = arith.addf %351, %350 : vector<8x128xf32>
    %353 = arith.divf %351, %352 : vector<8x128xf32>
    %354 = vector.extract_strided_slice %347 {offsets = [0, 128], sizes = [8, 128], strides = [1, 1]} : vector<8x512xf32> to vector<8x128xf32>
    %355 = arith.negf %354 : vector<8x128xf32>
    %356 = math.exp %355 : vector<8x128xf32>
    %cst_105 = arith.constant 1.000000e+00 : f32
    %357 = vector.broadcast %cst_105 : f32 to vector<8x128xf32>
    %358 = arith.addf %357, %356 : vector<8x128xf32>
    %359 = arith.divf %357, %358 : vector<8x128xf32>
    %360 = vector.extract_strided_slice %347 {offsets = [0, 256], sizes = [8, 128], strides = [1, 1]} : vector<8x512xf32> to vector<8x128xf32>
    %361 = vector.extract_strided_slice %347 {offsets = [0, 384], sizes = [8, 128], strides = [1, 1]} : vector<8x512xf32> to vector<8x128xf32>
    %362 = arith.mulf %353, %361 : vector<8x128xf32>
    %363 = arith.addf %360, %362 : vector<8x128xf32>
    %364 = math.tanh %363 : vector<8x128xf32>
    %cst_106 = arith.constant 1.000000e+00 : f32
    %365 = vector.broadcast %cst_106 : f32 to vector<8x128xf32>
    %366 = arith.subf %365, %359 : vector<8x128xf32>
    %367 = arith.mulf %366, %364 : vector<8x128xf32>
    %368 = arith.mulf %359, %295 : vector<8x128xf32>
    %369 = arith.addf %367, %368 : vector<8x128xf32>
    %370 = arith.truncf %369 : vector<8x128xf32> to vector<8x128xbf16>
    %c0_107 = arith.constant 0 : index
    %c0_108 = arith.constant 0 : index
    %371 = vector.load %arg8[%c0_107, %c0_108] : memref<128x128xbf16, #tpu.memory_space<vmem>>, vector<128x128xbf16>
    %cst_109 = arith.constant dense<0.000000e+00> : vector<8x128xf32>
    %372 = tpu.matmul %370, %371, %cst_109 {dimension_numbers = #tpu.dot_dimension_numbers<[1], [0], [0], [1], [0, 0, 1, 1], [], []>} : vector<8x128xbf16>, vector<128x128xbf16>, vector<8x128xf32> -> vector<8x128xf32>
    %373 = vector.broadcast %9 : vector<1x128xf32> to vector<8x128xf32>
    %374 = arith.addf %372, %373 : vector<8x128xf32>
    %375 = arith.negf %374 : vector<8x128xf32>
    %376 = math.exp %375 : vector<8x128xf32>
    %cst_110 = arith.constant 1.000000e+00 : f32
    %377 = vector.broadcast %cst_110 : f32 to vector<8x128xf32>
    %378 = arith.addf %377, %376 : vector<8x128xf32>
    %379 = arith.divf %377, %378 : vector<8x128xf32>
    %c0_111 = arith.constant 0 : index
    %c4 = arith.constant 4 : index
    %c0_112 = arith.constant 0 : index
    %380 = vector.load %arg10[%c0_111, %c4, %c0_112] : memref<8x8x128xf32, #tpu.memory_space<vmem>>, vector<8x1x128xf32>
    %381 = vector.shape_cast %380 : vector<8x1x128xf32> to vector<8x128xf32>
    %382 = vector.shape_cast %379 : vector<8x128xf32> to vector<8x1x128xf32>
    tpu.vector_store %arg10[%c0_111, %c4, %c0_112], %382 {strides = array<i32>} : memref<8x8x128xf32, #tpu.memory_space<vmem>>, vector<8x1x128xf32>,
    %c40 = arith.constant 40 : index
    %c0_113 = arith.constant 0 : index
    %383 = vector.load %arg12[%c40, %c0_113] : memref<64x384xf32, #tpu.memory_space<vmem>>, vector<8x384xf32>
    %384 = arith.truncf %340 : vector<8x128xf32> to vector<8x128xbf16>
    %c0_114 = arith.constant 0 : index
    %c0_115 = arith.constant 0 : index
    %385 = vector.load %arg3[%c0_114, %c0_115] : memref<128x384xbf16, #tpu.memory_space<vmem>>, vector<128x384xbf16>
    %cst_116 = arith.constant dense<0.000000e+00> : vector<8x384xf32>
    %386 = tpu.matmul %384, %385, %cst_116 {dimension_numbers = #tpu.dot_dimension_numbers<[1], [0], [0], [1], [0, 0, 1, 1], [], []>} : vector<8x128xbf16>, vector<128x384xbf16>, vector<8x384xf32> -> vector<8x384xf32>
    %387 = vector.extract_strided_slice %383 {offsets = [0, 0], sizes = [8, 128], strides = [1, 1]} : vector<8x384xf32> to vector<8x128xf32>
    %388 = vector.extract_strided_slice %386 {offsets = [0, 0], sizes = [8, 128], strides = [1, 1]} : vector<8x384xf32> to vector<8x128xf32>
    %389 = arith.addf %387, %388 : vector<8x128xf32>
    %390 = arith.negf %389 : vector<8x128xf32>
    %391 = math.exp %390 : vector<8x128xf32>
    %cst_117 = arith.constant 1.000000e+00 : f32
    %392 = vector.broadcast %cst_117 : f32 to vector<8x128xf32>
    %393 = arith.addf %392, %391 : vector<8x128xf32>
    %394 = arith.divf %392, %393 : vector<8x128xf32>
    %395 = vector.extract_strided_slice %383 {offsets = [0, 128], sizes = [8, 128], strides = [1, 1]} : vector<8x384xf32> to vector<8x128xf32>
    %396 = vector.extract_strided_slice %386 {offsets = [0, 128], sizes = [8, 128], strides = [1, 1]} : vector<8x384xf32> to vector<8x128xf32>
    %397 = arith.addf %395, %396 : vector<8x128xf32>
    %398 = arith.negf %397 : vector<8x128xf32>
    %399 = math.exp %398 : vector<8x128xf32>
    %cst_118 = arith.constant 1.000000e+00 : f32
    %400 = vector.broadcast %cst_118 : f32 to vector<8x128xf32>
    %401 = arith.addf %400, %399 : vector<8x128xf32>
    %402 = arith.divf %400, %401 : vector<8x128xf32>
    %403 = vector.extract_strided_slice %383 {offsets = [0, 256], sizes = [8, 128], strides = [1, 1]} : vector<8x384xf32> to vector<8x128xf32>
    %404 = vector.extract_strided_slice %386 {offsets = [0, 256], sizes = [8, 128], strides = [1, 1]} : vector<8x384xf32> to vector<8x128xf32>
    %405 = vector.broadcast %8 : vector<1x128xf32> to vector<8x128xf32>
    %406 = arith.addf %404, %405 : vector<8x128xf32>
    %407 = arith.mulf %394, %406 : vector<8x128xf32>
    %408 = arith.addf %403, %407 : vector<8x128xf32>
    %409 = math.tanh %408 : vector<8x128xf32>
    %cst_119 = arith.constant 1.000000e+00 : f32
    %410 = vector.broadcast %cst_119 : f32 to vector<8x128xf32>
    %411 = arith.subf %410, %402 : vector<8x128xf32>
    %412 = arith.mulf %411, %409 : vector<8x128xf32>
    %413 = arith.mulf %402, %340 : vector<8x128xf32>
    %414 = arith.addf %412, %413 : vector<8x128xf32>
    %415 = arith.truncf %414 : vector<8x128xf32> to vector<8x128xbf16>
    %416 = arith.truncf %369 : vector<8x128xf32> to vector<8x128xbf16>
    %417 = tpu.concatenate %415, %416 in 1 : vector<8x128xbf16>, vector<8x128xbf16> -> vector<8x256xbf16>
    %c0_120 = arith.constant 0 : index
    %c0_121 = arith.constant 0 : index
    %418 = vector.load %arg6[%c0_120, %c0_121] : memref<256x512xbf16, #tpu.memory_space<vmem>>, vector<256x512xbf16>
    %cst_122 = arith.constant dense<0.000000e+00> : vector<8x512xf32>
    %419 = tpu.matmul %417, %418, %cst_122 {dimension_numbers = #tpu.dot_dimension_numbers<[1], [0], [0], [1], [0, 0, 1, 1], [], []>} : vector<8x256xbf16>, vector<256x512xbf16>, vector<8x512xf32> -> vector<8x512xf32>
    %420 = vector.broadcast %10 : vector<1x512xf32> to vector<8x512xf32>
    %421 = arith.addf %419, %420 : vector<8x512xf32>
    %422 = vector.extract_strided_slice %421 {offsets = [0, 0], sizes = [8, 128], strides = [1, 1]} : vector<8x512xf32> to vector<8x128xf32>
    %423 = arith.negf %422 : vector<8x128xf32>
    %424 = math.exp %423 : vector<8x128xf32>
    %cst_123 = arith.constant 1.000000e+00 : f32
    %425 = vector.broadcast %cst_123 : f32 to vector<8x128xf32>
    %426 = arith.addf %425, %424 : vector<8x128xf32>
    %427 = arith.divf %425, %426 : vector<8x128xf32>
    %428 = vector.extract_strided_slice %421 {offsets = [0, 128], sizes = [8, 128], strides = [1, 1]} : vector<8x512xf32> to vector<8x128xf32>
    %429 = arith.negf %428 : vector<8x128xf32>
    %430 = math.exp %429 : vector<8x128xf32>
    %cst_124 = arith.constant 1.000000e+00 : f32
    %431 = vector.broadcast %cst_124 : f32 to vector<8x128xf32>
    %432 = arith.addf %431, %430 : vector<8x128xf32>
    %433 = arith.divf %431, %432 : vector<8x128xf32>
    %434 = vector.extract_strided_slice %421 {offsets = [0, 256], sizes = [8, 128], strides = [1, 1]} : vector<8x512xf32> to vector<8x128xf32>
    %435 = vector.extract_strided_slice %421 {offsets = [0, 384], sizes = [8, 128], strides = [1, 1]} : vector<8x512xf32> to vector<8x128xf32>
    %436 = arith.mulf %427, %435 : vector<8x128xf32>
    %437 = arith.addf %434, %436 : vector<8x128xf32>
    %438 = math.tanh %437 : vector<8x128xf32>
    %cst_125 = arith.constant 1.000000e+00 : f32
    %439 = vector.broadcast %cst_125 : f32 to vector<8x128xf32>
    %440 = arith.subf %439, %433 : vector<8x128xf32>
    %441 = arith.mulf %440, %438 : vector<8x128xf32>
    %442 = arith.mulf %433, %369 : vector<8x128xf32>
    %443 = arith.addf %441, %442 : vector<8x128xf32>
    %444 = arith.truncf %443 : vector<8x128xf32> to vector<8x128xbf16>
    %c0_126 = arith.constant 0 : index
    %c0_127 = arith.constant 0 : index
    %445 = vector.load %arg8[%c0_126, %c0_127] : memref<128x128xbf16, #tpu.memory_space<vmem>>, vector<128x128xbf16>
    %cst_128 = arith.constant dense<0.000000e+00> : vector<8x128xf32>
    %446 = tpu.matmul %444, %445, %cst_128 {dimension_numbers = #tpu.dot_dimension_numbers<[1], [0], [0], [1], [0, 0, 1, 1], [], []>} : vector<8x128xbf16>, vector<128x128xbf16>, vector<8x128xf32> -> vector<8x128xf32>
    %447 = vector.broadcast %9 : vector<1x128xf32> to vector<8x128xf32>
    %448 = arith.addf %446, %447 : vector<8x128xf32>
    %449 = arith.negf %448 : vector<8x128xf32>
    %450 = math.exp %449 : vector<8x128xf32>
    %cst_129 = arith.constant 1.000000e+00 : f32
    %451 = vector.broadcast %cst_129 : f32 to vector<8x128xf32>
    %452 = arith.addf %451, %450 : vector<8x128xf32>
    %453 = arith.divf %451, %452 : vector<8x128xf32>
    %c0_130 = arith.constant 0 : index
    %c5 = arith.constant 5 : index
    %c0_131 = arith.constant 0 : index
    %454 = vector.load %arg10[%c0_130, %c5, %c0_131] : memref<8x8x128xf32, #tpu.memory_space<vmem>>, vector<8x1x128xf32>
    %455 = vector.shape_cast %454 : vector<8x1x128xf32> to vector<8x128xf32>
    %456 = vector.shape_cast %453 : vector<8x128xf32> to vector<8x1x128xf32>
    tpu.vector_store %arg10[%c0_130, %c5, %c0_131], %456 {strides = array<i32>} : memref<8x8x128xf32, #tpu.memory_space<vmem>>, vector<8x1x128xf32>,
    %c48 = arith.constant 48 : index
    %c0_132 = arith.constant 0 : index
    %457 = vector.load %arg12[%c48, %c0_132] : memref<64x384xf32, #tpu.memory_space<vmem>>, vector<8x384xf32>
    %458 = arith.truncf %414 : vector<8x128xf32> to vector<8x128xbf16>
    %c0_133 = arith.constant 0 : index
    %c0_134 = arith.constant 0 : index
    %459 = vector.load %arg3[%c0_133, %c0_134] : memref<128x384xbf16, #tpu.memory_space<vmem>>, vector<128x384xbf16>
    %cst_135 = arith.constant dense<0.000000e+00> : vector<8x384xf32>
    %460 = tpu.matmul %458, %459, %cst_135 {dimension_numbers = #tpu.dot_dimension_numbers<[1], [0], [0], [1], [0, 0, 1, 1], [], []>} : vector<8x128xbf16>, vector<128x384xbf16>, vector<8x384xf32> -> vector<8x384xf32>
    %461 = vector.extract_strided_slice %457 {offsets = [0, 0], sizes = [8, 128], strides = [1, 1]} : vector<8x384xf32> to vector<8x128xf32>
    %462 = vector.extract_strided_slice %460 {offsets = [0, 0], sizes = [8, 128], strides = [1, 1]} : vector<8x384xf32> to vector<8x128xf32>
    %463 = arith.addf %461, %462 : vector<8x128xf32>
    %464 = arith.negf %463 : vector<8x128xf32>
    %465 = math.exp %464 : vector<8x128xf32>
    %cst_136 = arith.constant 1.000000e+00 : f32
    %466 = vector.broadcast %cst_136 : f32 to vector<8x128xf32>
    %467 = arith.addf %466, %465 : vector<8x128xf32>
    %468 = arith.divf %466, %467 : vector<8x128xf32>
    %469 = vector.extract_strided_slice %457 {offsets = [0, 128], sizes = [8, 128], strides = [1, 1]} : vector<8x384xf32> to vector<8x128xf32>
    %470 = vector.extract_strided_slice %460 {offsets = [0, 128], sizes = [8, 128], strides = [1, 1]} : vector<8x384xf32> to vector<8x128xf32>
    %471 = arith.addf %469, %470 : vector<8x128xf32>
    %472 = arith.negf %471 : vector<8x128xf32>
    %473 = math.exp %472 : vector<8x128xf32>
    %cst_137 = arith.constant 1.000000e+00 : f32
    %474 = vector.broadcast %cst_137 : f32 to vector<8x128xf32>
    %475 = arith.addf %474, %473 : vector<8x128xf32>
    %476 = arith.divf %474, %475 : vector<8x128xf32>
    %477 = vector.extract_strided_slice %457 {offsets = [0, 256], sizes = [8, 128], strides = [1, 1]} : vector<8x384xf32> to vector<8x128xf32>
    %478 = vector.extract_strided_slice %460 {offsets = [0, 256], sizes = [8, 128], strides = [1, 1]} : vector<8x384xf32> to vector<8x128xf32>
    %479 = vector.broadcast %8 : vector<1x128xf32> to vector<8x128xf32>
    %480 = arith.addf %478, %479 : vector<8x128xf32>
    %481 = arith.mulf %468, %480 : vector<8x128xf32>
    %482 = arith.addf %477, %481 : vector<8x128xf32>
    %483 = math.tanh %482 : vector<8x128xf32>
    %cst_138 = arith.constant 1.000000e+00 : f32
    %484 = vector.broadcast %cst_138 : f32 to vector<8x128xf32>
    %485 = arith.subf %484, %476 : vector<8x128xf32>
    %486 = arith.mulf %485, %483 : vector<8x128xf32>
    %487 = arith.mulf %476, %414 : vector<8x128xf32>
    %488 = arith.addf %486, %487 : vector<8x128xf32>
    %489 = arith.truncf %488 : vector<8x128xf32> to vector<8x128xbf16>
    %490 = arith.truncf %443 : vector<8x128xf32> to vector<8x128xbf16>
    %491 = tpu.concatenate %489, %490 in 1 : vector<8x128xbf16>, vector<8x128xbf16> -> vector<8x256xbf16>
    %c0_139 = arith.constant 0 : index
    %c0_140 = arith.constant 0 : index
    %492 = vector.load %arg6[%c0_139, %c0_140] : memref<256x512xbf16, #tpu.memory_space<vmem>>, vector<256x512xbf16>
    %cst_141 = arith.constant dense<0.000000e+00> : vector<8x512xf32>
    %493 = tpu.matmul %491, %492, %cst_141 {dimension_numbers = #tpu.dot_dimension_numbers<[1], [0], [0], [1], [0, 0, 1, 1], [], []>} : vector<8x256xbf16>, vector<256x512xbf16>, vector<8x512xf32> -> vector<8x512xf32>
    %494 = vector.broadcast %10 : vector<1x512xf32> to vector<8x512xf32>
    %495 = arith.addf %493, %494 : vector<8x512xf32>
    %496 = vector.extract_strided_slice %495 {offsets = [0, 0], sizes = [8, 128], strides = [1, 1]} : vector<8x512xf32> to vector<8x128xf32>
    %497 = arith.negf %496 : vector<8x128xf32>
    %498 = math.exp %497 : vector<8x128xf32>
    %cst_142 = arith.constant 1.000000e+00 : f32
    %499 = vector.broadcast %cst_142 : f32 to vector<8x128xf32>
    %500 = arith.addf %499, %498 : vector<8x128xf32>
    %501 = arith.divf %499, %500 : vector<8x128xf32>
    %502 = vector.extract_strided_slice %495 {offsets = [0, 128], sizes = [8, 128], strides = [1, 1]} : vector<8x512xf32> to vector<8x128xf32>
    %503 = arith.negf %502 : vector<8x128xf32>
    %504 = math.exp %503 : vector<8x128xf32>
    %cst_143 = arith.constant 1.000000e+00 : f32
    %505 = vector.broadcast %cst_143 : f32 to vector<8x128xf32>
    %506 = arith.addf %505, %504 : vector<8x128xf32>
    %507 = arith.divf %505, %506 : vector<8x128xf32>
    %508 = vector.extract_strided_slice %495 {offsets = [0, 256], sizes = [8, 128], strides = [1, 1]} : vector<8x512xf32> to vector<8x128xf32>
    %509 = vector.extract_strided_slice %495 {offsets = [0, 384], sizes = [8, 128], strides = [1, 1]} : vector<8x512xf32> to vector<8x128xf32>
    %510 = arith.mulf %501, %509 : vector<8x128xf32>
    %511 = arith.addf %508, %510 : vector<8x128xf32>
    %512 = math.tanh %511 : vector<8x128xf32>
    %cst_144 = arith.constant 1.000000e+00 : f32
    %513 = vector.broadcast %cst_144 : f32 to vector<8x128xf32>
    %514 = arith.subf %513, %507 : vector<8x128xf32>
    %515 = arith.mulf %514, %512 : vector<8x128xf32>
    %516 = arith.mulf %507, %443 : vector<8x128xf32>
    %517 = arith.addf %515, %516 : vector<8x128xf32>
    %518 = arith.truncf %517 : vector<8x128xf32> to vector<8x128xbf16>
    %c0_145 = arith.constant 0 : index
    %c0_146 = arith.constant 0 : index
    %519 = vector.load %arg8[%c0_145, %c0_146] : memref<128x128xbf16, #tpu.memory_space<vmem>>, vector<128x128xbf16>
    %cst_147 = arith.constant dense<0.000000e+00> : vector<8x128xf32>
    %520 = tpu.matmul %518, %519, %cst_147 {dimension_numbers = #tpu.dot_dimension_numbers<[1], [0], [0], [1], [0, 0, 1, 1], [], []>} : vector<8x128xbf16>, vector<128x128xbf16>, vector<8x128xf32> -> vector<8x128xf32>
    %521 = vector.broadcast %9 : vector<1x128xf32> to vector<8x128xf32>
    %522 = arith.addf %520, %521 : vector<8x128xf32>
    %523 = arith.negf %522 : vector<8x128xf32>
    %524 = math.exp %523 : vector<8x128xf32>
    %cst_148 = arith.constant 1.000000e+00 : f32
    %525 = vector.broadcast %cst_148 : f32 to vector<8x128xf32>
    %526 = arith.addf %525, %524 : vector<8x128xf32>
    %527 = arith.divf %525, %526 : vector<8x128xf32>
    %c0_149 = arith.constant 0 : index
    %c6 = arith.constant 6 : index
    %c0_150 = arith.constant 0 : index
    %528 = vector.load %arg10[%c0_149, %c6, %c0_150] : memref<8x8x128xf32, #tpu.memory_space<vmem>>, vector<8x1x128xf32>
    %529 = vector.shape_cast %528 : vector<8x1x128xf32> to vector<8x128xf32>
    %530 = vector.shape_cast %527 : vector<8x128xf32> to vector<8x1x128xf32>
    tpu.vector_store %arg10[%c0_149, %c6, %c0_150], %530 {strides = array<i32>} : memref<8x8x128xf32, #tpu.memory_space<vmem>>, vector<8x1x128xf32>,
    %c56 = arith.constant 56 : index
    %c0_151 = arith.constant 0 : index
    %531 = vector.load %arg12[%c56, %c0_151] : memref<64x384xf32, #tpu.memory_space<vmem>>, vector<8x384xf32>
    %532 = arith.truncf %488 : vector<8x128xf32> to vector<8x128xbf16>
    %c0_152 = arith.constant 0 : index
    %c0_153 = arith.constant 0 : index
    %533 = vector.load %arg3[%c0_152, %c0_153] : memref<128x384xbf16, #tpu.memory_space<vmem>>, vector<128x384xbf16>
    %cst_154 = arith.constant dense<0.000000e+00> : vector<8x384xf32>
    %534 = tpu.matmul %532, %533, %cst_154 {dimension_numbers = #tpu.dot_dimension_numbers<[1], [0], [0], [1], [0, 0, 1, 1], [], []>} : vector<8x128xbf16>, vector<128x384xbf16>, vector<8x384xf32> -> vector<8x384xf32>
    %535 = vector.extract_strided_slice %531 {offsets = [0, 0], sizes = [8, 128], strides = [1, 1]} : vector<8x384xf32> to vector<8x128xf32>
    %536 = vector.extract_strided_slice %534 {offsets = [0, 0], sizes = [8, 128], strides = [1, 1]} : vector<8x384xf32> to vector<8x128xf32>
    %537 = arith.addf %535, %536 : vector<8x128xf32>
    %538 = arith.negf %537 : vector<8x128xf32>
    %539 = math.exp %538 : vector<8x128xf32>
    %cst_155 = arith.constant 1.000000e+00 : f32
    %540 = vector.broadcast %cst_155 : f32 to vector<8x128xf32>
    %541 = arith.addf %540, %539 : vector<8x128xf32>
    %542 = arith.divf %540, %541 : vector<8x128xf32>
    %543 = vector.extract_strided_slice %531 {offsets = [0, 128], sizes = [8, 128], strides = [1, 1]} : vector<8x384xf32> to vector<8x128xf32>
    %544 = vector.extract_strided_slice %534 {offsets = [0, 128], sizes = [8, 128], strides = [1, 1]} : vector<8x384xf32> to vector<8x128xf32>
    %545 = arith.addf %543, %544 : vector<8x128xf32>
    %546 = arith.negf %545 : vector<8x128xf32>
    %547 = math.exp %546 : vector<8x128xf32>
    %cst_156 = arith.constant 1.000000e+00 : f32
    %548 = vector.broadcast %cst_156 : f32 to vector<8x128xf32>
    %549 = arith.addf %548, %547 : vector<8x128xf32>
    %550 = arith.divf %548, %549 : vector<8x128xf32>
    %551 = vector.extract_strided_slice %531 {offsets = [0, 256], sizes = [8, 128], strides = [1, 1]} : vector<8x384xf32> to vector<8x128xf32>
    %552 = vector.extract_strided_slice %534 {offsets = [0, 256], sizes = [8, 128], strides = [1, 1]} : vector<8x384xf32> to vector<8x128xf32>
    %553 = vector.broadcast %8 : vector<1x128xf32> to vector<8x128xf32>
    %554 = arith.addf %552, %553 : vector<8x128xf32>
    %555 = arith.mulf %542, %554 : vector<8x128xf32>
    %556 = arith.addf %551, %555 : vector<8x128xf32>
    %557 = math.tanh %556 : vector<8x128xf32>
    %cst_157 = arith.constant 1.000000e+00 : f32
    %558 = vector.broadcast %cst_157 : f32 to vector<8x128xf32>
    %559 = arith.subf %558, %550 : vector<8x128xf32>
    %560 = arith.mulf %559, %557 : vector<8x128xf32>
    %561 = arith.mulf %550, %488 : vector<8x128xf32>
    %562 = arith.addf %560, %561 : vector<8x128xf32>
    %563 = arith.truncf %562 : vector<8x128xf32> to vector<8x128xbf16>
    %564 = arith.truncf %517 : vector<8x128xf32> to vector<8x128xbf16>
    %565 = tpu.concatenate %563, %564 in 1 : vector<8x128xbf16>, vector<8x128xbf16> -> vector<8x256xbf16>
    %c0_158 = arith.constant 0 : index
    %c0_159 = arith.constant 0 : index
    %566 = vector.load %arg6[%c0_158, %c0_159] : memref<256x512xbf16, #tpu.memory_space<vmem>>, vector<256x512xbf16>
    %cst_160 = arith.constant dense<0.000000e+00> : vector<8x512xf32>
    %567 = tpu.matmul %565, %566, %cst_160 {dimension_numbers = #tpu.dot_dimension_numbers<[1], [0], [0], [1], [0, 0, 1, 1], [], []>} : vector<8x256xbf16>, vector<256x512xbf16>, vector<8x512xf32> -> vector<8x512xf32>
    %568 = vector.broadcast %10 : vector<1x512xf32> to vector<8x512xf32>
    %569 = arith.addf %567, %568 : vector<8x512xf32>
    %570 = vector.extract_strided_slice %569 {offsets = [0, 0], sizes = [8, 128], strides = [1, 1]} : vector<8x512xf32> to vector<8x128xf32>
    %571 = arith.negf %570 : vector<8x128xf32>
    %572 = math.exp %571 : vector<8x128xf32>
    %cst_161 = arith.constant 1.000000e+00 : f32
    %573 = vector.broadcast %cst_161 : f32 to vector<8x128xf32>
    %574 = arith.addf %573, %572 : vector<8x128xf32>
    %575 = arith.divf %573, %574 : vector<8x128xf32>
    %576 = vector.extract_strided_slice %569 {offsets = [0, 128], sizes = [8, 128], strides = [1, 1]} : vector<8x512xf32> to vector<8x128xf32>
    %577 = arith.negf %576 : vector<8x128xf32>
    %578 = math.exp %577 : vector<8x128xf32>
    %cst_162 = arith.constant 1.000000e+00 : f32
    %579 = vector.broadcast %cst_162 : f32 to vector<8x128xf32>
    %580 = arith.addf %579, %578 : vector<8x128xf32>
    %581 = arith.divf %579, %580 : vector<8x128xf32>
    %582 = vector.extract_strided_slice %569 {offsets = [0, 256], sizes = [8, 128], strides = [1, 1]} : vector<8x512xf32> to vector<8x128xf32>
    %583 = vector.extract_strided_slice %569 {offsets = [0, 384], sizes = [8, 128], strides = [1, 1]} : vector<8x512xf32> to vector<8x128xf32>
    %584 = arith.mulf %575, %583 : vector<8x128xf32>
    %585 = arith.addf %582, %584 : vector<8x128xf32>
    %586 = math.tanh %585 : vector<8x128xf32>
    %cst_163 = arith.constant 1.000000e+00 : f32
    %587 = vector.broadcast %cst_163 : f32 to vector<8x128xf32>
    %588 = arith.subf %587, %581 : vector<8x128xf32>
    %589 = arith.mulf %588, %586 : vector<8x128xf32>
    %590 = arith.mulf %581, %517 : vector<8x128xf32>
    %591 = arith.addf %589, %590 : vector<8x128xf32>
    %592 = arith.truncf %591 : vector<8x128xf32> to vector<8x128xbf16>
    %c0_164 = arith.constant 0 : index
    %c0_165 = arith.constant 0 : index
    %593 = vector.load %arg8[%c0_164, %c0_165] : memref<128x128xbf16, #tpu.memory_space<vmem>>, vector<128x128xbf16>
    %cst_166 = arith.constant dense<0.000000e+00> : vector<8x128xf32>
    %594 = tpu.matmul %592, %593, %cst_166 {dimension_numbers = #tpu.dot_dimension_numbers<[1], [0], [0], [1], [0, 0, 1, 1], [], []>} : vector<8x128xbf16>, vector<128x128xbf16>, vector<8x128xf32> -> vector<8x128xf32>
    %595 = vector.broadcast %9 : vector<1x128xf32> to vector<8x128xf32>
    %596 = arith.addf %594, %595 : vector<8x128xf32>
    %597 = arith.negf %596 : vector<8x128xf32>
    %598 = math.exp %597 : vector<8x128xf32>
    %cst_167 = arith.constant 1.000000e+00 : f32
    %599 = vector.broadcast %cst_167 : f32 to vector<8x128xf32>
    %600 = arith.addf %599, %598 : vector<8x128xf32>
    %601 = arith.divf %599, %600 : vector<8x128xf32>
    %c0_168 = arith.constant 0 : index
    %c7 = arith.constant 7 : index
    %c0_169 = arith.constant 0 : index
    %602 = vector.load %arg10[%c0_168, %c7, %c0_169] : memref<8x8x128xf32, #tpu.memory_space<vmem>>, vector<8x1x128xf32>
    %603 = vector.shape_cast %602 : vector<8x1x128xf32> to vector<8x128xf32>
    %604 = vector.shape_cast %601 : vector<8x128xf32> to vector<8x1x128xf32>
    tpu.vector_store %arg10[%c0_168, %c7, %c0_169], %604 {strides = array<i32>} : memref<8x8x128xf32, #tpu.memory_space<vmem>>, vector<8x1x128xf32>,
    %c0_170 = arith.constant 0 : index
    %c0_171 = arith.constant 0 : index
    %c0_172 = arith.constant 0 : index
    %605 = vector.load %arg11[%c0_170, %c0_171, %c0_172] : memref<2x8x128xf32, #tpu.memory_space<vmem>>, vector<1x8x128xf32>
    %606 = vector.shape_cast %605 : vector<1x8x128xf32> to vector<8x128xf32>
    %607 = vector.shape_cast %562 : vector<8x128xf32> to vector<1x8x128xf32>
    tpu.vector_store %arg11[%c0_170, %c0_171, %c0_172], %607 {strides = array<i32>} : memref<2x8x128xf32, #tpu.memory_space<vmem>>, vector<1x8x128xf32>,
    %c1_173 = arith.constant 1 : index
    %c0_174 = arith.constant 0 : index
    %c0_175 = arith.constant 0 : index
    %608 = vector.load %arg11[%c1_173, %c0_174, %c0_175] : memref<2x8x128xf32, #tpu.memory_space<vmem>>, vector<1x8x128xf32>
    %609 = vector.shape_cast %608 : vector<1x8x128xf32> to vector<8x128xf32>
    %610 = vector.shape_cast %591 : vector<8x128xf32> to vector<1x8x128xf32>
    tpu.vector_store %arg11[%c1_173, %c0_174, %c0_175], %610 {strides = array<i32>} : memref<2x8x128xf32, #tpu.memory_space<vmem>>, vector<1x8x128xf32>,
    return
  }
  func.func @transform_0(%arg0: i32) -> (i32, i32, i32) {
    %c0_i32 = arith.constant 0 : i32
    %c0_i32_0 = arith.constant 0 : i32
    %c0_i32_1 = arith.constant 0 : i32
    return %c0_i32, %arg0, %c0_i32_0 : i32, i32, i32
  }
  func.func @transform_1(%arg0: i32) -> (i32, i32) {
    %c0_i32 = arith.constant 0 : i32
    %c0_i32_0 = arith.constant 0 : i32
    %c0_i32_1 = arith.constant 0 : i32
    return %c0_i32, %c0_i32_0 : i32, i32
  }
  func.func @transform_2(%arg0: i32) -> (i32, i32) {
    %c0_i32 = arith.constant 0 : i32
    %c0_i32_0 = arith.constant 0 : i32
    %c0_i32_1 = arith.constant 0 : i32
    return %c0_i32, %c0_i32_0 : i32, i32
  }
  func.func @transform_3(%arg0: i32) -> (i32, i32) {
    %c0_i32 = arith.constant 0 : i32
    %c0_i32_0 = arith.constant 0 : i32
    %c0_i32_1 = arith.constant 0 : i32
    return %c0_i32, %c0_i32_0 : i32, i32
  }
  func.func @transform_4(%arg0: i32) -> (i32, i32) {
    %c0_i32 = arith.constant 0 : i32
    %c0_i32_0 = arith.constant 0 : i32
    %c0_i32_1 = arith.constant 0 : i32
    return %c0_i32, %c0_i32_0 : i32, i32
  }
  func.func @transform_5(%arg0: i32) -> (i32, i32) {
    %c0_i32 = arith.constant 0 : i32
    %c0_i32_0 = arith.constant 0 : i32
    %c0_i32_1 = arith.constant 0 : i32
    return %c0_i32, %c0_i32_0 : i32, i32
  }
  func.func @transform_6(%arg0: i32) -> (i32, i32) {
    %c0_i32 = arith.constant 0 : i32
    %c0_i32_0 = arith.constant 0 : i32
    %c0_i32_1 = arith.constant 0 : i32
    return %c0_i32, %c0_i32_0 : i32, i32
  }
  func.func @transform_7(%arg0: i32) -> (i32, i32) {
    %c0_i32 = arith.constant 0 : i32
    %c0_i32_0 = arith.constant 0 : i32
    %c0_i32_1 = arith.constant 0 : i32
    return %c0_i32, %c0_i32_0 : i32, i32
  }
  func.func @transform_8(%arg0: i32) -> (i32, i32) {
    %c0_i32 = arith.constant 0 : i32
    %c0_i32_0 = arith.constant 0 : i32
    %c0_i32_1 = arith.constant 0 : i32
    return %c0_i32, %c0_i32_0 : i32, i32
  }
  func.func @transform_9(%arg0: i32) -> (i32, i32, i32) {
    %c0_i32 = arith.constant 0 : i32
    %c0_i32_0 = arith.constant 0 : i32
    %c0_i32_1 = arith.constant 0 : i32
    return %arg0, %c0_i32, %c0_i32_0 : i32, i32, i32
  }
  func.func @transform_10(%arg0: i32) -> (i32, i32, i32) {
    %c0_i32 = arith.constant 0 : i32
    %c0_i32_0 = arith.constant 0 : i32
    %c0_i32_1 = arith.constant 0 : i32
    return %c0_i32, %arg0, %c0_i32_0 : i32, i32, i32
  }
}

</mosaic_0001>

<bundles_post_ra>
// kernel: timegan_forward.1
= control target key start
LH: loop header
LB: loop body
LE: loop exit
PB: predicated region body
PF: predicated region fallthrough
CT: control target
= control target key end

     0   :  { %vm103_vm0 = vcmask 1043456   ;;  %v13411_v1 = vmov 0   ;;  %vm90_vm1 = vcmask 64512   ;;  %v13409_v16 = vmov 0.0   ;;  %s13395_s1 = inlined_call_operand.vmem [shape: bf16[8,384], index: 1, kind: input, shape index: {}]   ;;  %s13396_s0 = inlined_call_operand.vmem [shape: bf16[8,8,8], index: 0, kind: input, shape index: {}]   ;;  %s13397_s2 = inlined_call_operand.vmem [shape: bf16[128,384], index: 2, kind: input, shape index: {}]   ;;  %s13398_s5 = inlined_call_operand.vmem [shape: bf16[256,512], index: 5, kind: input, shape index: {}]   ;;  %s13399_s3 = inlined_call_operand.vmem [shape: f32[1,384], index: 3, kind: input, shape index: {}]   ;;  %s13400_s4 = inlined_call_operand.vmem [shape: f32[1,128], index: 4, kind: input, shape index: {}]   ;;  %s13401_s7 = inlined_call_operand.vmem [shape: bf16[128,128], index: 7, kind: input, shape index: {}]   ;;  %s13402_s6 = inlined_call_operand.vmem [shape: f32[1,512], index: 6, kind: input, shape index: {}]   ;;  %s13403_s8 = inlined_call_operand.vmem [shape: f32[1,128], index: 8, kind: input, shape index: {}]   ;;  %s13404_s9 = inlined_call_operand.vmem [shape: f32[8,8,128], index: 9, kind: output, shape index: {0}]   ;;  %s13405_s10 = inlined_call_operand.vmem [shape: f32[2,8,128], index: 10, kind: output, shape index: {1}]  }
   0x1   :  { %v43_v0 = vld [vmem:[%s13395_s1] sm:$0xff]  ;;  %145 = vmatprep.mubr.bf16.mxu0 %v13411_v1  ;;  %v9105_v8 = vld [vmem:[%s13397_s2 + $0x1c] ss:$12 sps:$4 sm:$0xff]   ;;  %v9112_v15 = vld [vmem:[%s13397_s2 + $0x4c] ss:$12 sps:$4 sm:$0xff]   ;;  %vm9960_vm2 = vmmov 0  }
   0x2   :  { %v7759_v2 = vcombine.high %v43_v0, %v43_v0  ;;  %v7758_v3 = vcombine.low %v43_v0, %v43_v0  ;;  %v9099_v4 = vld [vmem:[%s13396_s0] sm:$0xff]   ;;  %v9117_v11 = vld [vmem:[%s13395_s1 + $0x8] ss:$0 sps:$4 sm:$0xff]   ;;  %v9107_v13 = vld [vmem:[%s13397_s2 + $0x30] ss:$12 sps:$4 sm:$0xff]  }
   0x3   :  { %v9102_v5 = vld [vmem:[%s13397_s2 + $0x4] ss:$12 sps:$4 sm:$0xff]   ;;  %8764 = vmatprep.mubr.msk.bf16.mxu1 %vm90_vm1, %v9099_v4  ;;  %v9100_v7 = vld [vmem:[%s13397_s2] ss:$12 sps:$4 sm:$0xff]   ;;  %9092 = vmatprep.subr.msk.bf16.mxu1 %vm103_vm0, %v9117_v11  ;;  %v111_v14 = vsel %vm103_vm0, %v9117_v11, 0  ;;  %v9121_v26 = vld [vmem:[%s13396_s0 + $0x18] sm:$0xff]  }
   0x4   :  { %7761 = vmatprep.subr.msk.bf16.mxu0 %vm103_vm0, %v7759_v2  ;;  %v105_v6 = vsel %vm103_vm0, %v7758_v3, 0  ;;  %v9103_v9 = vld [vmem:[%s13397_s2 + $0x18] ss:$12 sps:$4 sm:$0xff]   ;;  %v9109_v10 = vld [vmem:[%s13397_s2 + $0x34] ss:$12 sps:$4 sm:$0xff]   ;;  %v9106_v12 = vld [vmem:[%s13396_s0 + $0x8] sm:$0xff]   ;;  %8763 = vmatpush3.bf16.msra.mxu1 %v111_v14 }
   0x5   :  { %114 = vmatpush1.bf16.msra.mxu0 %v105_v6  ;;  %8772 = vmatprep.subr.bf16.mxu1 %v13409_v16  ;;  %v9125_v17 = vld [vmem:[%s13397_s2 + $0x8] ss:$12 sps:$4 sm:$0xff]   ;;  %v9116_v20 = vld [vmem:[%s13397_s2 + $0x64] ss:$12 sps:$4 sm:$0xff]   ;;  %v9129_v21 = vld [vmem:[%s13397_s2 + $0x20] ss:$12 sps:$4 sm:$0xff]  }
   0x6   :  { %441 = vmatprep.subr.bf16.mxu0 %v9102_v5  ;;  %v9110_v18 = vld [vmem:[%s13397_s2 + $0x48] ss:$12 sps:$4 sm:$0xff]   ;;  %v9114_v22 = vld [vmem:[%s13397_s2 + $0x60] ss:$12 sps:$4 sm:$0xff]   ;;  %v9118_v24 = vld [vmem:[%s13397_s2 + $0x78] ss:$12 sps:$4 sm:$0xff]  }
   0x7   :  { %v9113_v19 = vld [vmem:[%s13396_s0 + $0x10] sm:$0xff]   ;;  %8765 = vmatmul.mubr.msk.bf16.vlgmr.msra.gmra.mrb[0].mxu1 %vm90_vm1, %v9106_v12  ;;  %v9120_v23 = vld [vmem:[%s13397_s2 + $0x7c] ss:$12 sps:$4 sm:$0xff]   ;;  %v9130_v25 = vld [vmem:[%s13397_s2 + $0x38] ss:$12 sps:$4 sm:$0xff]  }
   0x8   :  { %7762 = vmatmul.mubr.msk.bf16.vlgmr.msra.gmra.mrb[0].mxu0 %vm90_vm1, %v9099_v4  ;;  %8773 = vmatpush3.bf16.msra.mxu1 %v9125_v17  ;;  %v9124_v27 = vld [vmem:[%s13397_s2 + $0x94] ss:$12 sps:$4 sm:$0xff]   ;;  %v9131_v28 = vld [vmem:[%s13397_s2 + $0x50] ss:$12 sps:$4 sm:$0xff]   ;;  %v9128_v30 = vld [vmem:[%s13397_s2 + $0xac] ss:$12 sps:$4 sm:$0xff]  }
   0x9   :  { %442 = vmatpush1.bf16.msra.mxu0 %v9100_v7  ;;  %155 = vmatprep.mubr.bf16.mxu0 %v13411_v1  ;;  %v9122_v29 = vld [vmem:[%s13397_s2 + $0x90] ss:$12 sps:$4 sm:$0xff]   ;;  %v9132_v31 = vld [vmem:[%s13397_s2 + $0x68] ss:$12 sps:$4 sm:$0xff]   ;;  %v9133_v33 = vld [vmem:[%s13397_s2 + $0x80] ss:$12 sps:$4 sm:$0xff]  }
   0xa   :  { %443 = vmatprep.subr.bf16.mxu0 %v9105_v8  ;;  %8768 = vmatprep.mubr.msk.bf16.mxu1 %vm90_vm1, %v9113_v19  ;;  %v9126_v32 = vld [vmem:[%s13397_s2 + $0xa8] ss:$12 sps:$4 sm:$0xff]   ;;  %v9134_v34 = vld [vmem:[%s13397_s2 + $0x98] ss:$12 sps:$4 sm:$0xff]   ;;  %v9135_v35 = vld [vmem:[%s13397_s2 + $0xb0] ss:$12 sps:$4 sm:$0xff]  }
   0xb   :  { %8774 = vmatprep.subr.bf16.mxu1 %v13409_v16  ;;  %v9138_v36 = vld [vmem:[%s13398_s5 + $0xc] ss:$16 sps:$4 sm:$0xff]   ;;  %v9136_v37 = vld [vmem:[%s13398_s5 + $0x8] ss:$16 sps:$4 sm:$0xff]   ;;  %v10147_v38 = vld [vmem:[%s13398_s5] ss:$16 sps:$4 sm:$0xff]  }
   0xc   :  { %8775 = vmatpush3.bf16.msra.mxu1 %v9129_v21  ;;  %v10152_v39 = vld [vmem:[%s13398_s5 + $0x4] ss:$16 sps:$4 sm:$0xff]   ;;  %v9144_v40 = vld [vmem:[%s13398_s5 + $0x2c] ss:$16 sps:$4 sm:$0xff]   ;;  %v9142_v41 = vld [vmem:[%s13398_s5 + $0x28] ss:$16 sps:$4 sm:$0xff]  }
   0xd   :  { %444 = vmatpush1.bf16.msra.mxu0 %v9103_v9  ;;  %8776 = vmatprep.subr.bf16.mxu1 %v13409_v16  ;;  %v10165_v42 = vld [vmem:[%s13398_s5 + $0x20] ss:$16 sps:$4 sm:$0xff]   ;;  %v10170_v43 = vld [vmem:[%s13398_s5 + $0x24] ss:$16 sps:$4 sm:$0xff]   ;;  %v9150_v44 = vld [vmem:[%s13398_s5 + $0x4c] ss:$16 sps:$4 sm:$0xff]  }
   0xe   :  { %445 = vmatprep.subr.bf16.mxu0 %v9109_v10  ;;  %v9148_v45 = vld [vmem:[%s13398_s5 + $0x48] ss:$16 sps:$4 sm:$0xff]   ;;  %v10183_v46 = vld [vmem:[%s13398_s5 + $0x44] ss:$16 sps:$4 sm:$0xff]   ;;  %v10188_v47 = vld [vmem:[%s13398_s5 + $0x40] ss:$16 sps:$4 sm:$0xff]  }
   0xf   :  { %8769 = vmatmul.mubr.msk.bf16.gmra.mrb[4].mxu1 %vm90_vm1, %v9121_v26  ;;  %v9156_v48 = vld [vmem:[%s13398_s5 + $0x6c] ss:$16 sps:$4 sm:$0xff]   ;;  %v9154_v49 = vld [vmem:[%s13398_s5 + $0x68] ss:$16 sps:$4 sm:$0xff]   ;;  %v10201_v50 = vld [vmem:[%s13398_s5 + $0x60] ss:$16 sps:$4 sm:$0xff]  }
  0x10   :  { %7763 = vmatmul.mubr.msk.bf16.gmra.mrb[4].mxu0 %vm90_vm1, %v9106_v12  ;;  %8777 = vmatpush3.bf16.msra.mxu1 %v9130_v25  ;;  %v10206_v51 = vld [vmem:[%s13398_s5 + $0x64] ss:$16 sps:$4 sm:$0xff]   ;;  %v9162_v52 = vld [vmem:[%s13398_s5 + $0x8c] ss:$16 sps:$4 sm:$0xff]   ;;  %v9160_v53 = vld [vmem:[%s13398_s5 + $0x88] ss:$16 sps:$4 sm:$0xff]  }
  0x11   :  { %446 = vmatpush1.bf16.msra.mxu0 %v9107_v13  ;;  %165 = vmatprep.mubr.bf16.mxu0 %v13411_v1  ;;  %v10219_v54 = vld [vmem:[%s13398_s5 + $0x84] ss:$16 sps:$4 sm:$0xff]   ;;  %v10224_v55 = vld [vmem:[%s13398_s5 + $0x80] ss:$16 sps:$4 sm:$0xff]   ;;  %v9168_v56 = vld [vmem:[%s13398_s5 + $0xac] ss:$16 sps:$4 sm:$0xff]  }
  0x12   :  { %447 = vmatprep.subr.bf16.mxu0 %v9112_v15  ;;  %8788 = vmatprep.mubr.msk.bf16.mxu1 %vm9960_vm2, %v13409_v16  ;;  %v9166_v57 = vld [vmem:[%s13398_s5 + $0xa8] ss:$16 sps:$4 sm:$0xff]   ;;  %v10237_v58 = vld [vmem:[%s13398_s5 + $0xa4] ss:$16 sps:$4 sm:$0xff]   ;;  %v10242_v59 = vld [vmem:[%s13398_s5 + $0xa0] ss:$16 sps:$4 sm:$0xff]  }
  0x13   :  { %8778 = vmatprep.subr.bf16.mxu1 %v13409_v16  ;;  %v9174_v60 = vld [vmem:[%s13398_s5 + $0xcc] ss:$16 sps:$4 sm:$0xff]   ;;  %v9172_v61 = vld [vmem:[%s13398_s5 + $0xc8] ss:$16 sps:$4 sm:$0xff]   ;;  %v10255_v62 = vld [vmem:[%s13398_s5 + $0xc4] ss:$16 sps:$4 sm:$0xff]  }
  0x14   :  { %8779 = vmatpush3.bf16.msra.mxu1 %v9131_v28  ;;  %v10260_v63 = vld [vmem:[%s13398_s5 + $0xc0] ss:$16 sps:$4 sm:$0xff]   ;;  %v9180_v0 = vld [vmem:[%s13398_s5 + $0xec] ss:$16 sps:$4 sm:$0xff]   ;;  %v9178_v2 = vld [vmem:[%s13398_s5 + $0xe8] ss:$16 sps:$4 sm:$0xff]  }
  0x15   :  { %448 = vmatpush1.bf16.msra.mxu0 %v9110_v18  ;;  %8780 = vmatprep.subr.bf16.mxu1 %v13409_v16  ;;  %v10273_v3 = vld [vmem:[%s13398_s5 + $0xe4] ss:$16 sps:$4 sm:$0xff]   ;;  %v10278_v4 = vld [vmem:[%s13398_s5 + $0xe0] ss:$16 sps:$4 sm:$0xff]   ;;  %v9186_v5 = vld [vmem:[%s13398_s5 + $0x10c] ss:$16 sps:$4 sm:$0xff]  }
  0x16   :  { %449 = vmatprep.subr.bf16.mxu0 %v9116_v20  ;;  %v9184_v6 = vld [vmem:[%s13398_s5 + $0x108] ss:$16 sps:$4 sm:$0xff]   ;;  %v10291_v7 = vld [vmem:[%s13398_s5 + $0x104] ss:$16 sps:$4 sm:$0xff]   ;;  %v10296_v8 = vld [vmem:[%s13398_s5 + $0x100] ss:$16 sps:$4 sm:$0xff]  }
  0x17   :  { %v9190_v9 = vld [vmem:[%s13398_s5 + $0x128] ss:$16 sps:$4 sm:$0xff]   ;;  %v9192_v10 = vld [vmem:[%s13398_s5 + $0x12c] ss:$16 sps:$4 sm:$0xff]   ;;  %v10309_v11 = vld [vmem:[%s13398_s5 + $0x120] ss:$16 sps:$4 sm:$0xff]  }
  0x18   :  { %7764 = vmatmul.mubr.msk.bf16.gmra.mrb[8].mxu0 %vm90_vm1, %v9113_v19  ;;  %8781 = vmatpush3.bf16.msra.mxu1 %v9132_v31  ;;  %v10314_v12 = vld [vmem:[%s13398_s5 + $0x124] ss:$16 sps:$4 sm:$0xff]   ;;  %v9198_v13 = vld [vmem:[%s13398_s5 + $0x14c] ss:$16 sps:$4 sm:$0xff]   ;;  %v9196_v14 = vld [vmem:[%s13398_s5 + $0x148] ss:$16 sps:$4 sm:$0xff]  }
  0x19   :  { %450 = vmatpush1.bf16.msra.mxu0 %v9114_v22  ;;  %175 = vmatprep.mubr.bf16.mxu0 %v13411_v1  ;;  %v10327_v15 = vld [vmem:[%s13398_s5 + $0x144] ss:$16 sps:$4 sm:$0xff]   ;;  %v10332_v17 = vld [vmem:[%s13398_s5 + $0x140] ss:$16 sps:$4 sm:$0xff]   ;;  %v9204_v18 = vld [vmem:[%s13398_s5 + $0x16c] ss:$16 sps:$4 sm:$0xff]  }
  0x1a   :  { %451 = vmatprep.subr.bf16.mxu0 %v9120_v23  ;;  %8782 = vmatprep.subr.bf16.mxu1 %v13409_v16  ;;  %v9202_v19 = vld [vmem:[%s13398_s5 + $0x168] ss:$16 sps:$4 sm:$0xff]   ;;  %v10345_v20 = vld [vmem:[%s13398_s5 + $0x164] ss:$16 sps:$4 sm:$0xff]   ;;  %v10350_v21 = vld [vmem:[%s13398_s5 + $0x160] ss:$16 sps:$4 sm:$0xff]  }
  0x1b   :  { %v9210_v22 = vld [vmem:[%s13398_s5 + $0x18c] ss:$16 sps:$4 sm:$0xff]   ;;  %v9208_v23 = vld [vmem:[%s13398_s5 + $0x188] ss:$16 sps:$4 sm:$0xff]   ;;  %v10368_v25 = vld [vmem:[%s13398_s5 + $0x180] ss:$16 sps:$4 sm:$0xff]  }
  0x1c   :  { %8783 = vmatpush3.bf16.msra.mxu1 %v9133_v33  ;;  %v10380_v28 = vld [vmem:[%s13398_s5 + $0x1a4] ss:$16 sps:$4 sm:$0xff]   ;;  %v9220_v31 = vld [vmem:[%s13398_s5 + $0x1c8] ss:$16 sps:$4 sm:$0xff]   ;;  %v9228_v33 = vld [vmem:[%s13398_s5 + $0x1ec] ss:$16 sps:$4 sm:$0xff]  }
  0x1d   :  { %452 = vmatpush1.bf16.msra.mxu0 %v9118_v24  ;;  %8784 = vmatprep.subr.bf16.mxu1 %v13409_v16  ;;  %v10363_v24 = vld [vmem:[%s13398_s5 + $0x184] ss:$16 sps:$4 sm:$0xff]  }
  0x1e   :  { %453 = vmatprep.subr.bf16.mxu0 %v9124_v27  ;;  %v9214_v27 = vld [vmem:[%s13398_s5 + $0x1a8] ss:$16 sps:$4 sm:$0xff]  }
  0x20   :  { %7765 = vmatmul.mubr.msk.bf16.gmra.mrb[12].mxu0 %vm90_vm1, %v9121_v26  ;;  %8785 = vmatpush3.bf16.msra.mxu1 %v9134_v34  ;;  %v9216_v26 = vld [vmem:[%s13398_s5 + $0x1ac] ss:$16 sps:$4 sm:$0xff]   ;;  %v10406_v34 = vld [vmem:[%s13398_s5 + $0x1c0] ss:$16 sps:$4 sm:$0xff]  }
  0x21   :  { %454 = vmatpush1.bf16.msra.mxu0 %v9122_v29  ;;  %473 = vmatprep.mubr.bf16.mxu0 %v13411_v1  ;;  %v9222_v29 = vld [vmem:[%s13398_s5 + $0x1cc] ss:$16 sps:$4 sm:$0xff]  }
  0x22   :  { %455 = vmatprep.subr.bf16.mxu0 %v9128_v30  ;;  %8786 = vmatprep.subr.bf16.mxu1 %v13409_v16  ;;  %v10389_v30 = vld [vmem:[%s13398_s5 + $0x1a0] ss:$16 sps:$4 sm:$0xff]  }
  0x24   :  { %8787 = vmatpush3.bf16.msra.mxu1 %v9135_v35  ;;  %v10411_v35 = vld [vmem:[%s13398_s5 + $0x1e4] ss:$16 sps:$4 sm:$0xff]  }
  0x25   :  { %456 = vmatpush1.bf16.msra.mxu0 %v9126_v32  ;;  %997 = vmatprep.subr.bf16.mxu1 %v9138_v36  ;;  %v10397_v32 = vld [vmem:[%s13398_s5 + $0x1c4] ss:$16 sps:$4 sm:$0xff]   ;;  %v9226_v36 = vld [vmem:[%s13398_s5 + $0x1e8] ss:$16 sps:$4 sm:$0xff]  }
  0x26   :  { %956 = vmatprep.subr.bf16.mxu0 %v10152_v39 }
  0x27   :  { %8789 = vmatmul.mubr.bf16.vlgmr.msra.gmra.mrb[8].mxu1 %v13411_v1 }
  0x28   :  { %474 = vmatmul.mubr.bf16.vlgmr.msra.gmra.mrb[16].mxu0 %v13411_v1  ;;  %1029 = vmatprep.mubr.bf16.mxu1 %v13411_v1 }
  0x29   :  { %988 = vmatprep.mubr.bf16.mxu0 %v13411_v1  ;;  %998 = vmatpush1.bf16.msra.mxu1 %v9136_v37  ;;  %v10421_v37 = vld [vmem:[%s13398_s5 + $0x1e0] ss:$16 sps:$4 sm:$0xff]  }
  0x2a   :  { %957 = vmatpush1.bf16.msra.mxu0 %v10147_v38  ;;  %999 = vmatprep.subr.bf16.mxu1 %v9144_v40  ;;  %v9904_v40 = vld [vmem:[%s13397_s2 + $0x4] ss:$12 sps:$4 sm:$0xff]  }
  0x2b   :  { %958 = vmatprep.subr.bf16.mxu0 %v10170_v43 }
  0x2d   :  { %1000 = vmatpush1.bf16.msra.mxu1 %v9142_v41  ;;  %v47_v41 = vlaneseq }
  0x2e   :  { %959 = vmatpush1.bf16.msra.mxu0 %v10165_v42  ;;  %1001 = vmatprep.subr.bf16.mxu1 %v9150_v44 }
  0x2f   :  { %960 = vmatprep.subr.bf16.mxu0 %v10183_v46  ;;  %v10430_v44 = vshrl.u32 %v47_v41, 7 }
  0x31   :  { %1002 = vmatpush1.bf16.msra.mxu1 %v9148_v45  ;;  %v13408_v45 = vsub.s32 0, %v10430_v44 }
  0x32   :  { %961 = vmatpush1.bf16.msra.mxu0 %v10188_v47  ;;  %1003 = vmatprep.subr.bf16.mxu1 %v9156_v48  ;;  %v45_v48 = vld [vmem:[%s13399_s3] sm:$0x7] }
  0x33   :  { %962 = vmatprep.subr.bf16.mxu0 %v10206_v51 }
  0x35   :  { %1004 = vmatpush1.bf16.msra.mxu1 %v9154_v49  ;;  %v13407_v49 = vsub.s32 1, %v10430_v44 }
  0x36   :  { %963 = vmatpush1.bf16.msra.mxu0 %v10201_v50  ;;  %1005 = vmatprep.subr.bf16.mxu1 %v9162_v52 }
  0x37   :  { %964 = vmatprep.subr.bf16.mxu0 %v10219_v54 }
  0x39   :  { %1006 = vmatpush1.bf16.msra.mxu1 %v9160_v53  ;;  %v50_v53 = vrot.slane %v45_v48, %v13408_v45 }
  0x3a   :  { %965 = vmatpush1.bf16.msra.mxu0 %v10224_v55  ;;  %1007 = vmatprep.subr.bf16.mxu1 %v9168_v56 }
  0x3b   :  { %966 = vmatprep.subr.bf16.mxu0 %v10237_v58 }
  0x3d   :  { %1008 = vmatpush1.bf16.msra.mxu1 %v9166_v57  ;;  %v54_v57 = vrot.slane %v45_v48, %v13407_v49 }
  0x3e   :  { %967 = vmatpush1.bf16.msra.mxu0 %v10242_v59  ;;  %1009 = vmatprep.subr.bf16.mxu1 %v9174_v60 }
  0x3f   :  { %968 = vmatprep.subr.bf16.mxu0 %v10255_v62 }
  0x41   :  { %1010 = vmatpush1.bf16.msra.mxu1 %v9172_v61 }
  0x42   :  { %969 = vmatpush1.bf16.msra.mxu0 %v10260_v63  ;;  %1011 = vmatprep.subr.bf16.mxu1 %v9180_v0 }
  0x43   :  { %970 = vmatprep.subr.bf16.mxu0 %v10273_v3 }
  0x45   :  { %1012 = vmatpush1.bf16.msra.mxu1 %v9178_v2  ;;  %v13406_v2 = vsub.s32 2, %v10430_v44 }
  0x46   :  { %971 = vmatpush1.bf16.msra.mxu0 %v10278_v4  ;;  %1013 = vmatprep.subr.bf16.mxu1 %v9186_v5 }
  0x47   :  { %972 = vmatprep.subr.bf16.mxu0 %v10291_v7 }
  0x49   :  { %1014 = vmatpush1.bf16.msra.mxu1 %v9184_v6  ;;  %v10448_v6 = vrot.slane %v45_v48, %v13406_v2 }
  0x4a   :  { %973 = vmatpush1.bf16.msra.mxu0 %v10296_v8  ;;  %1015 = vmatprep.subr.bf16.mxu1 %v9192_v10 }
  0x4b   :  { %974 = vmatprep.subr.bf16.mxu0 %v10314_v12 }
  0x4d   :  { %1016 = vmatpush1.bf16.msra.mxu1 %v9190_v9 }
  0x4e   :  { %975 = vmatpush1.bf16.msra.mxu0 %v10309_v11  ;;  %1017 = vmatprep.subr.bf16.mxu1 %v9198_v13 }
  0x4f   :  { %976 = vmatprep.subr.bf16.mxu0 %v10327_v15 }
  0x51   :  { %1018 = vmatpush1.bf16.msra.mxu1 %v9196_v14 }
  0x52   :  { %977 = vmatpush1.bf16.msra.mxu0 %v10332_v17  ;;  %1019 = vmatprep.subr.bf16.mxu1 %v9204_v18 }
  0x53   :  { %978 = vmatprep.subr.bf16.mxu0 %v10345_v20 }
  0x55   :  { %1020 = vmatpush1.bf16.msra.mxu1 %v9202_v19 }
  0x56   :  { %979 = vmatpush1.bf16.msra.mxu0 %v10350_v21  ;;  %1021 = vmatprep.subr.bf16.mxu1 %v9210_v22 }
  0x57   :  { %980 = vmatprep.subr.bf16.mxu0 %v10363_v24 }
  0x59   :  { %1022 = vmatpush1.bf16.msra.mxu1 %v9208_v23 }
  0x5a   :  { %1023 = vmatprep.subr.bf16.mxu1 %v9216_v26  ;;  %981 = vmatpush1.bf16.msra.mxu0 %v10368_v25 }
  0x5b   :  { %982 = vmatprep.subr.bf16.mxu0 %v10380_v28 }
  0x5d   :  { %1024 = vmatpush1.bf16.msra.mxu1 %v9214_v27 }
  0x5e   :  { %1025 = vmatprep.subr.bf16.mxu1 %v9222_v29  ;;  %983 = vmatpush1.bf16.msra.mxu0 %v10389_v30 }
  0x5f   :  { %984 = vmatprep.subr.bf16.mxu0 %v10397_v32 }
  0x61   :  { %1026 = vmatpush1.bf16.msra.mxu1 %v9220_v31 }
  0x62   :  { %1027 = vmatprep.subr.bf16.mxu1 %v9228_v33  ;;  %985 = vmatpush1.bf16.msra.mxu0 %v10406_v34 }
  0x63   :  { %986 = vmatprep.subr.bf16.mxu0 %v10411_v35 }
  0x65   :  { %1028 = vmatpush1.bf16.msra.mxu1 %v9226_v36 }
  0x66   :  { %1403 = vmatprep.subr.bf16.mxu1 %v9904_v40  ;;  %987 = vmatpush1.bf16.msra.mxu0 %v10421_v37 }
  0x67   :  { %8792 = vmatprep.subr.bf16.mxu0 %v13409_v16 }
  0xda   :  { %v8766_v19 = vpop.f32.mrb[0].mxu1 }
  0xdb   :  { %v147_v52 = vpop.f32.mrb[0].mxu0  ;;  %v10457_v26 = vadd.f32 %v8766_v19, %v10448_v6  ;;  %v220_v27 = vpop.f32.mrb[1].mxu1 }
  0xdc   :  { %v149_v56 = vpop.f32.mrb[1].mxu0  ;;  %v8767_v31 = vpop.f32.mrb[2].mxu1 }
  0xdd   :  { %v151_v60 = vpop.f32.mrb[2].mxu0  ;;  %v10462_v33 = vadd.f32 %v8767_v31, %v10448_v6  ;;  %v223_v36 = vpop.f32.mrb[3].mxu1 }
  0xde   :  { %v10441_v61 = vadd.f32 %v151_v60, %v50_v53  ;;  %v153_v0 = vpop.f32.mrb[3].mxu0  ;;  %v10465_v40 = vadd.f32 %v223_v36, %v10448_v6 }
  0xdf   :  { %v10444_v5 = vadd.f32 %v153_v0, %v54_v57  ;;  %13543 = vst [vmem:[#allocation5_spill] sm:$0xff] %v10462_v33 }
  0xe3   :  { %v157_v9 = vpop.f32.mrb[4].mxu0 }
  0xe4   :  { %v10450_v10 = vadd.f32 %v157_v9, %v50_v53  ;;  %v159_v13 = vpop.f32.mrb[5].mxu0 }
  0xe5   :  { %v10452_v14 = vadd.f32 %v159_v13, %v54_v57  ;;  %v161_v18 = vpop.f32.mrb[6].mxu0  ;;  %v8770_v13 = vpop.f32.mrb[4].mxu1 }
  0xe6   :  { %v10454_v22 = vadd.f32 %v161_v18, %v50_v53  ;;  %v163_v23 = vpop.f32.mrb[7].mxu0  ;;  %v236_v31 = vpop.f32.mrb[5].mxu1 }
  0xe7   :  { %v10459_v29 = vadd.f32 %v163_v23, %v54_v57  ;;  %v10474_v23 = vadd.f32 %v8770_v13, %v10448_v6  ;;  %v10479_v36 = vadd.f32 %v236_v31, %v10448_v6  ;;  %v8771_v49 = vpop.f32.mrb[6].mxu1 }
  0xe8   :  { %13541 = vst [vmem:[#allocation3_spill] sm:$0xff] %v10454_v22 }
  0xe9   :  { %13542 = vst [vmem:[#allocation4_spill] sm:$0xff] %v10459_v29  ;;  %13547 = vst [vmem:[#allocation9_spill] sm:$0xff] %v10474_v23 }
  0xea   :  { %13549 = vst [vmem:[#allocation11_spill] sm:$0xff] %v10479_v36  ;;  %v150_v36 = vadd.f32 %v149_v56, %v54_v57 }
  0xeb   :  { %v167_v41 = vpop.f32.mrb[8].mxu0 }
  0xec   :  { %v10467_v48 = vadd.f32 %v167_v41, %v50_v53  ;;  %v169_v60 = vpop.f32.mrb[9].mxu0  ;;  %v10482_v41 = vadd.f32 %v8771_v49, %v10448_v6 }
  0xed   :  { %v10469_v0 = vadd.f32 %v169_v60, %v54_v57  ;;  %v171_v9 = vpop.f32.mrb[10].mxu0  ;;  %v239_v60 = vpop.f32.mrb[7].mxu1 }
  0xee   :  { %13544 = vst [vmem:[#allocation6_spill] sm:$0xff] %v10467_v48  ;;  %v10471_v18 = vadd.f32 %v171_v9, %v50_v53  ;;  %v173_v19 = vpop.f32.mrb[11].mxu0  ;;  %13550 = vst [vmem:[#allocation12_spill] sm:$0xff] %v10482_v41  ;;  %v10485_v45 = vadd.f32 %v239_v60, %v10448_v6 }
  0xef   :  { %13545 = vst [vmem:[#allocation7_spill] sm:$0xff] %v10469_v0  ;;  %v10476_v2 = vadd.f32 %v173_v19, %v54_v57 }
  0xf0   :  { %13546 = vst [vmem:[#allocation8_spill] sm:$0xff] %v10471_v18  ;;  %13551 = vst [vmem:[#allocation13_spill] sm:$0xff] %v10485_v45  ;;  %v148_v18 = vadd.f32 %v147_v52, %v50_v53  ;;  %v10498_v52 = vld [vmem:[%s13400_s4] ss:$0 sm:$0xff] }
  0xf1   :  { %13548 = vst [vmem:[#allocation10_spill] sm:$0xff] %v10476_v2 }
  0xf3   :  { %v177_v9 = vpop.f32.mrb[12].mxu0 }
  0xf4   :  { %v10487_v16 = vadd.f32 %v177_v9, %v50_v53  ;;  %v179_v1 = vpop.f32.mrb[13].mxu0 }
  0xf5   :  { %v10489_v13 = vadd.f32 %v179_v1, %v54_v57  ;;  %v181_v23 = vpop.f32.mrb[14].mxu0 }
  0xf6   :  { %13552 = vst [vmem:[#allocation14_spill] sm:$0xff] %v10487_v16  ;;  %v10491_v19 = vadd.f32 %v181_v23, %v50_v53  ;;  %v183_v2 = vpop.f32.mrb[15].mxu0 }
  0xf7   :  { %13553 = vst [vmem:[#allocation15_spill] sm:$0xff] %v10489_v13  ;;  %v10493_v31 = vadd.f32 %v183_v2, %v54_v57 }
  0xf8   :  { %13554 = vst [vmem:[#allocation16_spill] sm:$0xff] %v10491_v19 }
  0xf9   :  { %13555 = vst [vmem:[#allocation17_spill] sm:$0xff] %v10493_v31  ;;  %v11219_v31 = vld [vmem:[%s13398_s5 + $0x108] ss:$16 sps:$4 sm:$0xff]  }
  0xfa   :  { %v516_v16 = vpop.f32.mrb[8].mxu1  ;;  %13583 = vst [vmem:[#allocation40_spill] sm:$0xff] %v11219_v31 }
  0xfb   :  { %v475_v49 = vpop.f32.mrb[16].mxu0  ;;  %v8790_v1 = vpop.f32.mrb[9].mxu1  ;;  %v542_v56 = vadd.f32 %v10498_v52, %v516_v16  ;;  %v9905_v16 = vld [vmem:[%s13397_s2] ss:$12 sps:$4 sm:$0xff]  }
  0xfc   :  { %v522_v41 = vadd.f32 %v475_v49, %v148_v18  ;;  %v477_v0 = vpop.f32.mrb[17].mxu0  ;;  %v519_v13 = vpop.f32.mrb[10].mxu1  ;;  %v13557_v49 = vmov 0.0   ;;  %v9909_v1 = vld [vmem:[%s13397_s2 + $0x30] ss:$12 sps:$4 sm:$0xff]  }
  0xfd   :  { %v529_v48 = vadd.f32 %v477_v0, %v150_v36  ;;  %v479_v60 = vpop.f32.mrb[18].mxu0  ;;  %v8791_v23 = vpop.f32.mrb[11].mxu1 }
  0xfe   :  { %v7794_v45 = vmul.f32 -1.442695, %v522_v41  ;;  %v480_v33 = vpop.f32.mrb[19].mxu0  ;;  %v9907_v60 = vld [vmem:[%s13397_s2 + $0x18] ss:$12 sps:$4 sm:$0xff]  }
  0xff   :  { %v7795_v9 = vmul.f32 -1.442695, %v529_v48  ;;  %v9910_v23 = vld [vmem:[%s13397_s2 + $0x4c] ss:$12 sps:$4 sm:$0xff]  }
 0x100   :  { %9712 = vpow2.f32 %v7794_v45  ;;  %v221_v45 = vadd.f32 %v220_v27, %v10448_v6  ;;  %v13556_v6 = vmov 0   ;;  %v9906_v27 = vld [vmem:[%s13397_s2 + $0x1c] ss:$12 sps:$4 sm:$0xff]  }
 0x101   :  { %9714 = vpow2.f32 %v7795_v9  ;;  %v9908_v9 = vld [vmem:[%s13397_s2 + $0x34] ss:$12 sps:$4 sm:$0xff]  }
 0x10a   :  { %v9713_v19 = vpop.eup %9712 }
 0x10b   :  { %v526_v29 = vadd.f32 1.0, %v9713_v19  ;;  %v9715_v2 = vpop.eup %9714 }
 0x10c   :  { %v533_v53 = vadd.f32 1.0, %v9715_v2  ;;  %v9911_v2 = vld [vmem:[%s13397_s2 + $0x48] ss:$12 sps:$4 sm:$0xff]  }
 0x10d   :  { %9716 = vrcp.f32 %v526_v29 }
 0x10e   :  { %9718 = vrcp.f32 %v533_v53  ;;  %v9912_v53 = vld [vmem:[%s13397_s2 + $0x64] ss:$12 sps:$4 sm:$0xff]  }
 0x117   :  { %v9717_v57 = vpop.eup %9716 }
 0x118   :  { %v543_v33 = vmul.f32 %v9717_v57, %v542_v56  ;;  %v9719_v0 = vpop.eup %9718  ;;  %v9913_v56 = vld [vmem:[%s13397_s2 + $0x60] ss:$12 sps:$4 sm:$0xff]   ;;  %v9914_v57 = vld [vmem:[%s13397_s2 + $0x7c] ss:$12 sps:$4 sm:$0xff]  }
 0x119   :  { %v546_v18 = vsub.f32 1.0, %v9719_v0  ;;  %v548_v41 = vmul.f32 0.0, %v9719_v0  ;;  %v9918_v0 = vld [vmem:[%s13397_s2 + $0xac] ss:$12 sps:$4 sm:$0xff]  }
 0x11a   :  { %v544_v48 = vadd.f32 %v543_v33, %v221_v45  ;;  %v9915_v45 = vld [vmem:[%s13397_s2 + $0x78] ss:$12 sps:$4 sm:$0xff]   ;;  %v9916_v33 = vld [vmem:[%s13397_s2 + $0x94] ss:$12 sps:$4 sm:$0xff]  }
 0x11c   :  { %9720 = vtanh.f32 %v544_v48  ;;  %v9917_v48 = vld [vmem:[%s13397_s2 + $0x90] ss:$12 sps:$4 sm:$0xff]  }
 0x126   :  { %v9721_v36 = vpop.eup %9720 }
 0x127   :  { %v547_v29 = vmul.f32 %v9721_v36, %v546_v18  ;;  %v9919_v18 = vld [vmem:[%s13397_s2 + $0xa8] ss:$12 sps:$4 sm:$0xff]  }
 0x129   :  { %v10502_v13 = vadd.f32 %v548_v41, %v547_v29 }
 0x12b   :  { %v10506_v19 = vpack.c.bf16 %v10502_v13, %v10502_v13 }
 0x12d   :  { %989 = vmatmul.mubr.bf16.vlgmr.msra.gmra.mrb[20].mxu0 %v10506_v19  ;;  %1030 = vmatmul.mubr.bf16.vlgmr.msra.gmra.mrb[12].mxu1 %v10506_v19 }
 0x12e   :  { %1404 = vmatpush1.bf16.msra.mxu1 %v9905_v16  ;;  %1435 = vmatprep.mubr.bf16.mxu1 %v13556_v6 }
 0x12f   :  { %1405 = vmatprep.subr.bf16.mxu1 %v9906_v27  ;;  %8808 = vmatprep.mubr.msk.bf16.mxu0 %vm9960_vm2, %v13557_v49 }
 0x132   :  { %1406 = vmatpush1.bf16.msra.mxu1 %v9907_v60 }
 0x133   :  { %1407 = vmatprep.subr.bf16.mxu1 %v9908_v9 }
 0x136   :  { %1408 = vmatpush1.bf16.msra.mxu1 %v9909_v1 }
 0x137   :  { %1409 = vmatprep.subr.bf16.mxu1 %v9910_v23 }
 0x13a   :  { %1410 = vmatpush1.bf16.msra.mxu1 %v9911_v2 }
 0x13b   :  { %1411 = vmatprep.subr.bf16.mxu1 %v9912_v53 }
 0x13e   :  { %1412 = vmatpush1.bf16.msra.mxu1 %v9913_v56 }
 0x13f   :  { %1413 = vmatprep.subr.bf16.mxu1 %v9914_v57 }
 0x142   :  { %1414 = vmatpush1.bf16.msra.mxu1 %v9915_v45 }
 0x143   :  { %1415 = vmatprep.subr.bf16.mxu1 %v9916_v33 }
 0x146   :  { %1416 = vmatpush1.bf16.msra.mxu1 %v9917_v48 }
 0x147   :  { %1417 = vmatprep.subr.bf16.mxu1 %v9918_v0 }
 0x14a   :  { %1418 = vmatpush1.bf16.msra.mxu1 %v9919_v18 }
 0x14b   :  { %1891 = vmatprep.subr.bf16.mxu1 %v10152_v39  ;;  %v9233_v39 = vld [vmem:[%s13401_s7 + $0x8] sm:$0xff]  }
 0x14d   :  { %1436 = vmatmul.mubr.bf16.vlgmr.msra.gmra.mrb[16].mxu1 %v10506_v19 }
 0x14e   :  { %1892 = vmatpush1.bf16.msra.mxu1 %v10147_v38  ;;  %v9232_v38 = vld [vmem:[%s13401_s7] sm:$0xff]  }
 0x14f   :  { %1893 = vmatprep.subr.bf16.mxu1 %v10170_v43  ;;  %8793 = vmatpush3.bf16.msra.mxu0 %v9232_v38  ;;  %v9235_v43 = vld [vmem:[%s13401_s7 + $0x18] sm:$0xff]   ;;  %v9240_v38 = vld [vmem:[%s13397_s2 + $0x8] ss:$12 sps:$4 sm:$0xff]  }
 0x150   :  { %8794 = vmatprep.subr.bf16.mxu0 %v13557_v49 }
 0x152   :  { %1894 = vmatpush1.bf16.msra.mxu1 %v10165_v42  ;;  %v9234_v42 = vld [vmem:[%s13401_s7 + $0x10] sm:$0xff]  }
 0x153   :  { %1895 = vmatprep.subr.bf16.mxu1 %v10183_v46  ;;  %8795 = vmatpush3.bf16.msra.mxu0 %v9233_v39  ;;  %v9236_v46 = vld [vmem:[%s13401_s7 + $0x20] sm:$0xff]  }
 0x154   :  { %8796 = vmatprep.subr.bf16.mxu0 %v13557_v49  ;;  %v9242_v39 = vld [vmem:[%s13397_s2 + $0x38] ss:$12 sps:$4 sm:$0xff]  }
 0x156   :  { %1896 = vmatpush1.bf16.msra.mxu1 %v10188_v47  ;;  %v9237_v47 = vld [vmem:[%s13401_s7 + $0x28] sm:$0xff]  }
 0x157   :  { %1897 = vmatprep.subr.bf16.mxu1 %v10206_v51  ;;  %8797 = vmatpush3.bf16.msra.mxu0 %v9234_v42  ;;  %v9239_v51 = vld [vmem:[%s13401_s7 + $0x38] sm:$0xff]  }
 0x158   :  { %8798 = vmatprep.subr.bf16.mxu0 %v13557_v49  ;;  %v9243_v42 = vld [vmem:[%s13397_s2 + $0x50] ss:$12 sps:$4 sm:$0xff]  }
 0x15a   :  { %1898 = vmatpush1.bf16.msra.mxu1 %v10201_v50  ;;  %v9238_v50 = vld [vmem:[%s13401_s7 + $0x30] sm:$0xff]  }
 0x15b   :  { %1899 = vmatprep.subr.bf16.mxu1 %v10219_v54  ;;  %8799 = vmatpush3.bf16.msra.mxu0 %v9235_v43  ;;  %v277_v54 = vld [vmem:[%s13402_s6] sm:$0xf]  ;;  %v9244_v43 = vld [vmem:[%s13397_s2 + $0x68] ss:$12 sps:$4 sm:$0xff]  }
 0x15c   :  { %8800 = vmatprep.subr.bf16.mxu0 %v13557_v49 }
 0x15e   :  { %1900 = vmatpush1.bf16.msra.mxu1 %v10224_v55  ;;  %v13558_v55 = vsub.s32 0, %v10430_v44 }
 0x15f   :  { %1901 = vmatprep.subr.bf16.mxu1 %v10237_v58  ;;  %8801 = vmatpush3.bf16.msra.mxu0 %v9236_v46  ;;  %v9245_v46 = vld [vmem:[%s13397_s2 + $0x80] ss:$12 sps:$4 sm:$0xff]  }
 0x160   :  { %8802 = vmatprep.subr.bf16.mxu0 %v13557_v49  ;;  %v10629_v58 = vrot.slane %v277_v54, %v13558_v55  ;;  %v9922_v55 = vld [vmem:[%s13398_s5 + $0x2c] ss:$16 sps:$4 sm:$0xff]  }
 0x162   :  { %1902 = vmatpush1.bf16.msra.mxu1 %v10242_v59  ;;  %13559 = vst [vmem:[#allocation18_spill] sm:$0xff] %v10629_v58 }
 0x163   :  { %1903 = vmatprep.subr.bf16.mxu1 %v10255_v62  ;;  %8803 = vmatpush3.bf16.msra.mxu0 %v9237_v47  ;;  %v9246_v47 = vld [vmem:[%s13397_s2 + $0x98] ss:$12 sps:$4 sm:$0xff]  }
 0x164   :  { %8804 = vmatprep.subr.bf16.mxu0 %v13557_v49 }
 0x166   :  { %1904 = vmatpush1.bf16.msra.mxu1 %v10260_v63  ;;  %v13560_v63 = vsub.s32 1, %v10430_v44 }
 0x167   :  { %1905 = vmatprep.subr.bf16.mxu1 %v10273_v3  ;;  %8805 = vmatpush3.bf16.msra.mxu0 %v9238_v50  ;;  %v9247_v50 = vld [vmem:[%s13397_s2 + $0xb0] ss:$12 sps:$4 sm:$0xff]  }
 0x168   :  { %8806 = vmatprep.subr.bf16.mxu0 %v13557_v49  ;;  %v10633_v3 = vrot.slane %v277_v54, %v13560_v63  ;;  %v9926_v63 = vld [vmem:[%s13398_s5 + $0x6c] ss:$16 sps:$4 sm:$0xff]  }
 0x16a   :  { %1906 = vmatpush1.bf16.msra.mxu1 %v10278_v4  ;;  %13561 = vst [vmem:[#allocation19_spill] sm:$0xff] %v10633_v3 }
 0x16b   :  { %1907 = vmatprep.subr.bf16.mxu1 %v10291_v7  ;;  %8807 = vmatpush3.bf16.msra.mxu0 %v9239_v51  ;;  %v9920_v51 = vld [vmem:[%s13398_s5 + $0xc] ss:$16 sps:$4 sm:$0xff]  }
 0x16c   :  { %8812 = vmatprep.subr.bf16.mxu0 %v13557_v49 }
 0x16e   :  { %1908 = vmatpush1.bf16.msra.mxu1 %v10296_v8 }
 0x16f   :  { %1909 = vmatprep.subr.bf16.mxu1 %v10314_v12 }
 0x172   :  { %1910 = vmatpush1.bf16.msra.mxu1 %v10309_v11 }
 0x173   :  { %1911 = vmatprep.subr.bf16.mxu1 %v10327_v15 }
 0x176   :  { %1912 = vmatpush1.bf16.msra.mxu1 %v10332_v17 }
 0x177   :  { %1913 = vmatprep.subr.bf16.mxu1 %v10345_v20 }
 0x17a   :  { %1914 = vmatpush1.bf16.msra.mxu1 %v10350_v21 }
 0x17b   :  { %1915 = vmatprep.subr.bf16.mxu1 %v10363_v24 }
 0x17e   :  { %1916 = vmatpush1.bf16.msra.mxu1 %v10368_v25 }
 0x17f   :  { %1917 = vmatprep.subr.bf16.mxu1 %v10380_v28 }
 0x182   :  { %1918 = vmatpush1.bf16.msra.mxu1 %v10389_v30  ;;  %v630_v30 = vsub.s32 3, %v10430_v44 }
 0x183   :  { %1919 = vmatprep.subr.bf16.mxu1 %v10397_v32 }
 0x186   :  { %1920 = vmatpush1.bf16.msra.mxu1 %v10406_v34  ;;  %v10638_v34 = vrot.slane %v277_v54, %v630_v30  ;;  %v9939_v30 = vld [vmem:[%s13398_s5 + $0x128] ss:$16 sps:$4 sm:$0xff]  }
 0x187   :  { %1921 = vmatprep.subr.bf16.mxu1 %v10411_v35  ;;  %v13563_v35 = vsub.s32 2, %v10430_v44 }
 0x188   :  { %13562 = vst [vmem:[#allocation20_spill] sm:$0xff] %v10638_v34 }
 0x18a   :  { %1922 = vmatpush1.bf16.msra.mxu1 %v10421_v37  ;;  %v10642_v37 = vrot.slane %v277_v54, %v13563_v35  ;;  %v9921_v54 = vld [vmem:[%s13398_s5 + $0x8] ss:$16 sps:$4 sm:$0xff]  }
 0x18b   :  { %8832 = vmatprep.subr.bf16.mxu1 %v13557_v49  ;;  %v9941_v35 = vld [vmem:[%s13398_s5 + $0x148] ss:$16 sps:$4 sm:$0xff]  }
 0x18c   :  { %13564 = vst [vmem:[#allocation21_spill] sm:$0xff] %v10642_v37 }
 0x200   :  { %v990_v59 = vpop.f32.mrb[20].mxu0  ;;  %v1031_v62 = vpop.f32.mrb[12].mxu1 }
 0x201   :  { %v991_v4 = vadd.f32 %v990_v59, %v10629_v58  ;;  %v992_v7 = vpop.f32.mrb[21].mxu0  ;;  %v1033_v8 = vpop.f32.mrb[13].mxu1  ;;  %v1032_v16 = vadd.f32 %v1031_v62, %v10642_v37  ;;  %v9923_v59 = vld [vmem:[%s13398_s5 + $0x28] ss:$16 sps:$4 sm:$0xff]  }
 0x202   :  { %v994_v11 = vpop.f32.mrb[22].mxu0  ;;  %v1035_v12 = vpop.f32.mrb[14].mxu1  ;;  %v993_v21 = vadd.f32 %v992_v7, %v10633_v3  ;;  %v1034_v29 = vadd.f32 %v1033_v8, %v10638_v34  ;;  %v9925_v62 = vld [vmem:[%s13398_s5 + $0x48] ss:$16 sps:$4 sm:$0xff]   ;;  %v9928_v7 = vld [vmem:[%s13398_s5 + $0x8c] ss:$16 sps:$4 sm:$0xff]  }
 0x203   :  { %v7861_v15 = vmul.f32 -1.442695, %v991_v4  ;;  %v995_v17 = vpop.f32.mrb[23].mxu0  ;;  %v1036_v20 = vpop.f32.mrb[15].mxu1  ;;  %v9927_v4 = vld [vmem:[%s13398_s5 + $0x68] ss:$16 sps:$4 sm:$0xff]  }
 0x204   :  { %v7862_v24 = vmul.f32 -1.442695, %v993_v21  ;;  %v9929_v8 = vld [vmem:[%s13398_s5 + $0x88] ss:$16 sps:$4 sm:$0xff]   ;;  %v9930_v11 = vld [vmem:[%s13398_s5 + $0xac] ss:$16 sps:$4 sm:$0xff]  }
 0x205   :  { %9722 = vpow2.f32 %v7861_v15  ;;  %v9931_v12 = vld [vmem:[%s13398_s5 + $0xa8] ss:$16 sps:$4 sm:$0xff]   ;;  %v9932_v15 = vld [vmem:[%s13398_s5 + $0xcc] ss:$16 sps:$4 sm:$0xff]  }
 0x206   :  { %9724 = vpow2.f32 %v7862_v24  ;;  %v9933_v17 = vld [vmem:[%s13398_s5 + $0xc8] ss:$16 sps:$4 sm:$0xff]   ;;  %v9934_v20 = vld [vmem:[%s13398_s5 + $0xec] ss:$16 sps:$4 sm:$0xff]  }
 0x207   :  { %v9935_v21 = vld [vmem:[%s13398_s5 + $0xe8] ss:$16 sps:$4 sm:$0xff]   ;;  %v9936_v24 = vld [vmem:[%s13398_s5 + $0x10c] ss:$16 sps:$4 sm:$0xff]  }
 0x20f   :  { %v9723_v25 = vpop.eup %9722 }
 0x210   :  { %v1041_v28 = vadd.f32 1.0, %v9723_v25  ;;  %v9725_v32 = vpop.eup %9724  ;;  %v9937_v25 = vld [vmem:[%s13398_s5 + $0x108] ss:$16 sps:$4 sm:$0xff]  }
 0x211   :  { %v1047_v36 = vadd.f32 1.0, %v9725_v32  ;;  %v9940_v32 = vld [vmem:[%s13398_s5 + $0x14c] ss:$16 sps:$4 sm:$0xff]  }
 0x212   :  { %9726 = vrcp.f32 %v1041_v28  ;;  %v9938_v28 = vld [vmem:[%s13398_s5 + $0x12c] ss:$16 sps:$4 sm:$0xff]  }
 0x213   :  { %9728 = vrcp.f32 %v1047_v36  ;;  %v9942_v36 = vld [vmem:[%s13398_s5 + $0x16c] ss:$16 sps:$4 sm:$0xff]  }
 0x21c   :  { %v9727_v41 = vpop.eup %9726 }
 0x21d   :  { %v1050_v27 = vmul.f32 %v9727_v41, %v1034_v29  ;;  %v9729_v57 = vpop.eup %9728  ;;  %v9943_v29 = vld [vmem:[%s13398_s5 + $0x168] ss:$16 sps:$4 sm:$0xff]   ;;  %v9944_v41 = vld [vmem:[%s13398_s5 + $0x18c] ss:$16 sps:$4 sm:$0xff]  }
 0x21e   :  { %v1053_v45 = vsub.f32 1.0, %v9729_v57  ;;  %v1055_v0 = vmul.f32 0.0, %v9729_v57  ;;  %v10789_v57 = vld [vmem:[%s13397_s2 + $0x4] ss:$12 sps:$4 sm:$0xff]  }
 0x21f   :  { %v1051_v60 = vadd.f32 %v1050_v27, %v1032_v16  ;;  %v9945_v16 = vld [vmem:[%s13398_s5 + $0x188] ss:$16 sps:$4 sm:$0xff]   ;;  %v9946_v27 = vld [vmem:[%s13398_s5 + $0x1ac] ss:$16 sps:$4 sm:$0xff]  }
 0x220   :  { %v1437_v9 = vpop.f32.mrb[16].mxu1 }
 0x221   :  { %9730 = vtanh.f32 %v1051_v60  ;;  %v10647_v1 = vadd.f32 %v1437_v9, %v10441_v61  ;;  %v1439_v23 = vpop.f32.mrb[17].mxu1  ;;  %v9947_v60 = vld [vmem:[%s13398_s5 + $0x1a8] ss:$16 sps:$4 sm:$0xff]   ;;  %v9948_v9 = vld [vmem:[%s13398_s5 + $0x1cc] ss:$16 sps:$4 sm:$0xff]  }
 0x222   :  { %v10650_v2 = vadd.f32 %v1439_v23, %v10444_v5  ;;  %v1441_v53 = vpop.f32.mrb[18].mxu1  ;;  %v9241_v5 = vld [vmem:[%s13397_s2 + $0x20] ss:$12 sps:$4 sm:$0xff]   ;;  %v9949_v23 = vld [vmem:[%s13398_s5 + $0x1c8] ss:$16 sps:$4 sm:$0xff]  }
 0x223   :  { %v1442_v56 = vpop.f32.mrb[19].mxu1  ;;  %v9950_v53 = vld [vmem:[%s13398_s5 + $0x1ec] ss:$16 sps:$4 sm:$0xff]  }
 0x224   :  { %v9951_v56 = vld [vmem:[%s13398_s5 + $0x1e8] ss:$16 sps:$4 sm:$0xff]  }
 0x22b   :  { %v9731_v33 = vpop.eup %9730 }
 0x22c   :  { %v1054_v48 = vmul.f32 %v9731_v33, %v1053_v45  ;;  %v10795_v45 = vld [vmem:[%s13403_s8] ss:$0 sm:$0xff] }
 0x22e   :  { %v10652_v18 = vadd.f32 %v1055_v0, %v1054_v48 }
 0x230   :  { %v1057_v61 = vpack.c.bf16 %v10652_v18, %v10652_v18 }
 0x232   :  { %8809 = vmatmul.mubr.bf16.vlgmr.msra.gmra.mrb[24].mxu0 %v1057_v61  ;;  %1923 = vmatprep.mubr.bf16.mxu1 %v1057_v61 }
 0x233   :  { %8813 = vmatpush3.bf16.msra.mxu0 %v9240_v38  ;;  %8828 = vmatprep.mubr.msk.bf16.mxu0 %vm9960_vm2, %v13557_v49 }
 0x234   :  { %8814 = vmatprep.subr.bf16.mxu0 %v13557_v49 }
 0x237   :  { %8815 = vmatpush3.bf16.msra.mxu0 %v9241_v5 }
 0x238   :  { %8816 = vmatprep.subr.bf16.mxu0 %v13557_v49 }
 0x23b   :  { %8817 = vmatpush3.bf16.msra.mxu0 %v9242_v39  ;;  %v7901_v39 = vmul.f32 -1.442695, %v10647_v1 }
 0x23c   :  { %8818 = vmatprep.subr.bf16.mxu0 %v13557_v49 }
 0x23f   :  { %8819 = vmatpush3.bf16.msra.mxu0 %v9243_v42 }
 0x240   :  { %8820 = vmatprep.subr.bf16.mxu0 %v13557_v49 }
 0x243   :  { %8821 = vmatpush3.bf16.msra.mxu0 %v9244_v43  ;;  %v7902_v43 = vmul.f32 -1.442695, %v10650_v2 }
 0x244   :  { %8822 = vmatprep.subr.bf16.mxu0 %v13557_v49 }
 0x247   :  { %8823 = vmatpush3.bf16.msra.mxu0 %v9245_v46 }
 0x248   :  { %8824 = vmatprep.subr.bf16.mxu0 %v13557_v49 }
 0x24b   :  { %8825 = vmatpush3.bf16.msra.mxu0 %v9246_v47  ;;  %v9961_v47 = vmov 1966171168  }
 0x24c   :  { %8826 = vmatprep.subr.bf16.mxu0 %v13557_v49 }
 0x24f   :  { %8827 = vmatpush3.bf16.msra.mxu0 %v9247_v50  ;;  %v1177_v50 = vunpack.c.l.s4 %v9961_v47  ;;  %v10927_v47 = vld [vmem:[%s13397_s2 + $0xac] ss:$12 sps:$4 sm:$0xff]  }
 0x250   :  { %1932 = vmatprep.subr.bf16.mxu0 %v9920_v51 }
 0x252   :  { %8829 = vmatmul.mubr.bf16.vlgmr.msra.gmra.mrb[28].mxu0 %v10506_v19  ;;  %v9924_v19 = vld [vmem:[%s13398_s5 + $0x4c] ss:$16 sps:$4 sm:$0xff]  }
 0x253   :  { %1964 = vmatprep.mubr.bf16.mxu0 %v1057_v61  ;;  %1933 = vmatpush1.bf16.msra.mxu0 %v9921_v54 }
 0x254   :  { %1934 = vmatprep.subr.bf16.mxu0 %v9922_v55  ;;  %v1178_v55 = vunpack.c.0.s8 %v1177_v50  ;;  %v10933_v50 = vld [vmem:[%s13397_s2 + $0xa8] ss:$12 sps:$4 sm:$0xff]  }
 0x257   :  { %1935 = vmatpush1.bf16.msra.mxu0 %v9923_v59  ;;  %v10801_v59 = vsub.s32 %v1178_v55, %v10430_v44  ;;  %v9274_v55 = vld [vmem:[%s13401_s7 + $0x10] sm:$0xff]  }
 0x258   :  { %1936 = vmatprep.subr.bf16.mxu0 %v9924_v19 }
 0x25b   :  { %1937 = vmatpush1.bf16.msra.mxu0 %v9925_v62 }
 0x25c   :  { %1938 = vmatprep.subr.bf16.mxu0 %v9926_v63 }
 0x25f   :  { %1939 = vmatpush1.bf16.msra.mxu0 %v9927_v4 }
 0x260   :  { %1940 = vmatprep.subr.bf16.mxu0 %v9928_v7 }
 0x263   :  { %1941 = vmatpush1.bf16.msra.mxu0 %v9929_v8 }
 0x264   :  { %1942 = vmatprep.subr.bf16.mxu0 %v9930_v11 }
 0x267   :  { %1943 = vmatpush1.bf16.msra.mxu0 %v9931_v12 }
 0x268   :  { %1944 = vmatprep.subr.bf16.mxu0 %v9932_v15 }
 0x26b   :  { %1945 = vmatpush1.bf16.msra.mxu0 %v9933_v17 }
 0x26c   :  { %1946 = vmatprep.subr.bf16.mxu0 %v9934_v20 }
 0x26f   :  { %1947 = vmatpush1.bf16.msra.mxu0 %v9935_v21 }
 0x270   :  { %1948 = vmatprep.subr.bf16.mxu0 %v9936_v24 }
 0x273   :  { %1949 = vmatpush1.bf16.msra.mxu0 %v9937_v25 }
 0x274   :  { %1950 = vmatprep.subr.bf16.mxu0 %v9938_v28 }
 0x277   :  { %1951 = vmatpush1.bf16.msra.mxu0 %v9939_v30 }
 0x278   :  { %1952 = vmatprep.subr.bf16.mxu0 %v9940_v32 }
 0x27b   :  { %1953 = vmatpush1.bf16.msra.mxu0 %v9941_v35 }
 0x27c   :  { %1954 = vmatprep.subr.bf16.mxu0 %v9942_v36 }
 0x27f   :  { %1955 = vmatpush1.bf16.msra.mxu0 %v9943_v29 }
 0x280   :  { %1956 = vmatprep.subr.bf16.mxu0 %v9944_v41 }
 0x283   :  { %1957 = vmatpush1.bf16.msra.mxu0 %v9945_v16 }
 0x284   :  { %1958 = vmatprep.subr.bf16.mxu0 %v9946_v27 }
 0x287   :  { %1959 = vmatpush1.bf16.msra.mxu0 %v9947_v60 }
 0x288   :  { %1960 = vmatprep.subr.bf16.mxu0 %v9948_v9 }
 0x28b   :  { %1961 = vmatpush1.bf16.msra.mxu0 %v9949_v23 }
 0x28c   :  { %1962 = vmatprep.subr.bf16.mxu0 %v9950_v53  ;;  %v10841_v53 = vld [vmem:[%s13397_s2] ss:$12 sps:$4 sm:$0xff]  }
 0x28f   :  { %1963 = vmatpush1.bf16.msra.mxu0 %v9951_v56  ;;  %v10850_v56 = vld [vmem:[%s13397_s2 + $0x1c] ss:$12 sps:$4 sm:$0xff]  }
 0x290   :  { %2332 = vmatprep.subr.bf16.mxu0 %v10789_v57 }
 0x305   :  { %v1162_v33 = vpop.f32.mrb[24].mxu0 }
 0x306   :  { %v1163_v48 = vadd.f32 %v10795_v45, %v1162_v33  ;;  %v8810_v0 = vpop.f32.mrb[25].mxu0  ;;  %v10865_v33 = vld [vmem:[%s13397_s2 + $0x34] ss:$12 sps:$4 sm:$0xff]  }
 0x307   :  { %v1165_v38 = vpop.f32.mrb[26].mxu0  ;;  %v10879_v0 = vld [vmem:[%s13397_s2 + $0x4c] ss:$12 sps:$4 sm:$0xff]  }
 0x308   :  { %v7872_v61 = vmul.f32 -1.442695, %v1163_v48  ;;  %v8811_v5 = vpop.f32.mrb[27].mxu0  ;;  %v10873_v48 = vld [vmem:[%s13397_s2 + $0x30] ss:$12 sps:$4 sm:$0xff]  }
 0x309   :  { %v10885_v38 = vld [vmem:[%s13397_s2 + $0x48] ss:$12 sps:$4 sm:$0xff]   ;;  %v10897_v5 = vld [vmem:[%s13397_s2 + $0x60] ss:$12 sps:$4 sm:$0xff]  }
 0x30a   :  { %9732 = vpow2.f32 %v7872_v61  ;;  %v10891_v61 = vld [vmem:[%s13397_s2 + $0x64] ss:$12 sps:$4 sm:$0xff]  }
 0x30b   :  { %9734 = vpow2.f32 %v7901_v39  ;;  %v10903_v39 = vld [vmem:[%s13397_s2 + $0x7c] ss:$12 sps:$4 sm:$0xff]  }
 0x314   :  { %v9733_v42 = vpop.eup %9732 }
 0x315   :  { %v1171_v46 = vadd.f32 1.0, %v9733_v42  ;;  %v9735_v51 = vpop.eup %9734  ;;  %v10909_v42 = vld [vmem:[%s13397_s2 + $0x78] ss:$12 sps:$4 sm:$0xff]  }
 0x316   :  { %v1488_v54 = vadd.f32 1.0, %v9735_v51  ;;  %v9272_v51 = vld [vmem:[%s13401_s7] sm:$0xff]  }
 0x317   :  { %9736 = vrcp.f32 %v1171_v46  ;;  %v10921_v46 = vld [vmem:[%s13397_s2 + $0x90] ss:$12 sps:$4 sm:$0xff]  }
 0x318   :  { %9738 = vpow2.f32 %v7902_v43  ;;  %v10915_v43 = vld [vmem:[%s13397_s2 + $0x94] ss:$12 sps:$4 sm:$0xff]  }
 0x319   :  { %9740 = vrcp.f32 %v1488_v54  ;;  %v9273_v54 = vld [vmem:[%s13401_s7 + $0x8] sm:$0xff]  }
 0x321   :  { %v9737_v19 = vpop.eup %9736 }
 0x322   :  { %v9739_v62 = vpop.eup %9738  ;;  %v1175_v1 = vcombine.high %v9737_v19, %v9737_v19  ;;  %v1182_v63 = vrot.slane %v9737_v19, %v10801_v59  ;;  %v9275_v19 = vld [vmem:[%s13401_s7 + $0x18] sm:$0xff]  }
 0x323   :  { %v1495_v8 = vadd.f32 1.0, %v9739_v62  ;;  %v9741_v25 = vpop.eup %9740  ;;  %v9276_v62 = vld [vmem:[%s13401_s7 + $0x20] sm:$0xff]  }
 0x324   :  { %v1189_v4 = vrot.slane %v1175_v1, %v10801_v59  ;;  %v1190_v2 = vcombine.high %v1182_v63, %v1182_v63  ;;  %v1198_v7 = vrot.slane %v1182_v63, %v10801_v59  ;;  %7873 = vst.sshfl [vmem:[%s13404_s9] sm:$0x1 pattern:$0x73625140] %v1182_v63  ;;  %v9277_v1 = vld [vmem:[%s13401_s7 + $0x28] sm:$0xff]   ;;  %v9278_v63 = vld [vmem:[%s13401_s7 + $0x30] sm:$0xff]  }
 0x325   :  { %v1478_v11 = vpop.f32.mrb[28].mxu0  ;;  %9742 = vrcp.f32 %v1495_v8  ;;  %v10983_v8 = vld [vmem:[%s13398_s5 + $0x24] ss:$16 sps:$4 sm:$0xff]  }
 0x326   :  { %v1191_v12 = vcombine.high %v1189_v4, %v1189_v4  ;;  %v1205_v44 = vrot.slane %v1189_v4, %v10801_v59  ;;  %v1212_v15 = vrot.slane %v1190_v2, %v10801_v59  ;;  %v1220_v17 = vcombine.high %v1198_v7, %v1198_v7  ;;  %7874 = vst.sshfl [vmem:[%s13404_s9 + $0x8] sm:$0x1 pattern:$0x73625140] %v1190_v2  ;;  %v8830_v20 = vpop.f32.mrb[29].mxu0 }
 0x327   :  { %7875 = vst.sshfl [vmem:[%s13404_s9 + $0x20] sm:$0x1 pattern:$0x73625140] %v1189_v4  ;;  %v1498_v21 = vadd.f32 %v10498_v52, %v1478_v11  ;;  %v1481_v24 = vpop.f32.mrb[30].mxu0  ;;  %v9279_v4 = vld [vmem:[%s13401_s7 + $0x38] sm:$0xff]  }
 0x328   :  { %v1219_v28 = vrot.slane %v1191_v12, %v10801_v59  ;;  %v1221_v30 = vcombine.high %v1205_v44, %v1205_v44  ;;  %v1222_v32 = vcombine.high %v1212_v15, %v1212_v15  ;;  %1234 = vst [vmem:[%s13404_s9 + $0x10] sm:$0x1] %v1220_v17  ;;  %7876 = vst.sshfl [vmem:[%s13404_s9 + $0x28] sm:$0x1 pattern:$0x73625140] %v1191_v12 }
 0x329   :  { %v8831_v35 = vpop.f32.mrb[31].mxu0  ;;  %v1499_v36 = vmul.f32 %v9741_v25, %v1498_v21  ;;  %v10973_v2 = vld [vmem:[%s13398_s5] ss:$16 sps:$4 sm:$0xff]   ;;  %v10978_v7 = vld [vmem:[%s13398_s5 + $0x4] ss:$16 sps:$4 sm:$0xff]  }
 0x32a   :  { %v1223_v29 = vcombine.high %v1219_v28, %v1219_v28  ;;  %1235 = vst [vmem:[%s13404_s9 + $0x18] sm:$0x1] %v1222_v32  ;;  %1238 = vst [vmem:[%s13404_s9 + $0x30] sm:$0x1] %v1221_v30  ;;  %v10990_v11 = vld [vmem:[%s13398_s5 + $0x20] ss:$16 sps:$4 sm:$0xff]  }
 0x32b   :  { %v1500_v52 = vadd.f32 %v1499_v36, %v10465_v40  ;;  %v10996_v12 = vld [vmem:[%s13398_s5 + $0x44] ss:$16 sps:$4 sm:$0xff]   ;;  %v11002_v44 = vld [vmem:[%s13398_s5 + $0x40] ss:$16 sps:$4 sm:$0xff]  }
 0x32c   :  { %1239 = vst [vmem:[%s13404_s9 + $0x38] sm:$0x1] %v1223_v29 }
 0x32d   :  { %9744 = vtanh.f32 %v1500_v52 }
 0x32f   :  { %v9743_v41 = vpop.eup %9742 }
 0x330   :  { %v1502_v16 = vsub.f32 1.0, %v9743_v41  ;;  %v1504_v9 = vmul.f32 %v9743_v41, %v10502_v13  ;;  %v10858_v13 = vld [vmem:[%s13397_s2 + $0x18] ss:$12 sps:$4 sm:$0xff]  }
 0x337   :  { %v9745_v27 = vpop.eup %9744 }
 0x338   :  { %v1503_v60 = vmul.f32 %v9745_v27, %v1502_v16 }
 0x33a   :  { %v10836_v23 = vadd.f32 %v1504_v9, %v1503_v60 }
 0x33c   :  { %v10845_v40 = vpack.c.bf16 %v10836_v23, %v10836_v23 }
 0x33e   :  { %1924 = vmatmul.mubr.bf16.vlgmr.msra.gmra.mrb[20].mxu1 %v10845_v40  ;;  %1965 = vmatmul.mubr.bf16.vlgmr.msra.gmra.mrb[32].mxu0 %v10845_v40 }
 0x33f   :  { %2333 = vmatpush1.bf16.msra.mxu0 %v10841_v53  ;;  %2364 = vmatprep.mubr.bf16.mxu0 %v13556_v6 }
 0x340   :  { %2334 = vmatprep.subr.bf16.mxu0 %v10850_v56  ;;  %8848 = vmatprep.mubr.msk.bf16.mxu1 %vm9960_vm2, %v13557_v49 }
 0x341   :  { %8833 = vmatpush3.bf16.msra.mxu1 %v9272_v51 }
 0x342   :  { %8834 = vmatprep.subr.bf16.mxu1 %v13557_v49 }
 0x343   :  { %2335 = vmatpush1.bf16.msra.mxu0 %v10858_v13 }
 0x344   :  { %2336 = vmatprep.subr.bf16.mxu0 %v10865_v33 }
 0x345   :  { %8835 = vmatpush3.bf16.msra.mxu1 %v9273_v54 }
 0x346   :  { %8836 = vmatprep.subr.bf16.mxu1 %v13557_v49 }
 0x347   :  { %2337 = vmatpush1.bf16.msra.mxu0 %v10873_v48 }
 0x348   :  { %2338 = vmatprep.subr.bf16.mxu0 %v10879_v0 }
 0x349   :  { %8837 = vmatpush3.bf16.msra.mxu1 %v9274_v55 }
 0x34a   :  { %8838 = vmatprep.subr.bf16.mxu1 %v13557_v49 }
 0x34b   :  { %2339 = vmatpush1.bf16.msra.mxu0 %v10885_v38 }
 0x34c   :  { %2340 = vmatprep.subr.bf16.mxu0 %v10891_v61 }
 0x34d   :  { %8839 = vmatpush3.bf16.msra.mxu1 %v9275_v19 }
 0x34e   :  { %8840 = vmatprep.subr.bf16.mxu1 %v13557_v49 }
 0x34f   :  { %2341 = vmatpush1.bf16.msra.mxu0 %v10897_v5 }
 0x350   :  { %2342 = vmatprep.subr.bf16.mxu0 %v10903_v39 }
 0x351   :  { %8841 = vmatpush3.bf16.msra.mxu1 %v9276_v62 }
 0x352   :  { %8842 = vmatprep.subr.bf16.mxu1 %v13557_v49 }
 0x353   :  { %2343 = vmatpush1.bf16.msra.mxu0 %v10909_v42 }
 0x354   :  { %2344 = vmatprep.subr.bf16.mxu0 %v10915_v43 }
 0x355   :  { %8843 = vmatpush3.bf16.msra.mxu1 %v9277_v1 }
 0x356   :  { %8844 = vmatprep.subr.bf16.mxu1 %v13557_v49 }
 0x357   :  { %2345 = vmatpush1.bf16.msra.mxu0 %v10921_v46 }
 0x358   :  { %2346 = vmatprep.subr.bf16.mxu0 %v10927_v47 }
 0x359   :  { %8845 = vmatpush3.bf16.msra.mxu1 %v9278_v63 }
 0x35a   :  { %8846 = vmatprep.subr.bf16.mxu1 %v13557_v49 }
 0x35b   :  { %2347 = vmatpush1.bf16.msra.mxu0 %v10933_v50 }
 0x35c   :  { %2820 = vmatprep.subr.bf16.mxu0 %v10978_v7 }
 0x35d   :  { %8847 = vmatpush3.bf16.msra.mxu1 %v9279_v4 }
 0x35e   :  { %2365 = vmatmul.mubr.bf16.vlgmr.msra.gmra.mrb[36].mxu0 %v10845_v40  ;;  %8852 = vmatprep.subr.bf16.mxu1 %v13557_v49 }
 0x35f   :  { %2821 = vmatpush1.bf16.msra.mxu0 %v10973_v2 }
 0x360   :  { %2822 = vmatprep.subr.bf16.mxu0 %v10983_v8 }
 0x363   :  { %2823 = vmatpush1.bf16.msra.mxu0 %v10990_v11 }
 0x364   :  { %2824 = vmatprep.subr.bf16.mxu0 %v10996_v12 }
 0x367   :  { %2825 = vmatpush1.bf16.msra.mxu0 %v11002_v44 }
 0x411   :  { %v1925_v15 = vpop.f32.mrb[20].mxu1  ;;  %v1966_v17 = vpop.f32.mrb[32].mxu0 }
 0x412   :  { %v1926_v20 = vadd.f32 %v1925_v15, %v10629_v58  ;;  %v1927_v21 = vpop.f32.mrb[21].mxu1  ;;  %v1968_v24 = vpop.f32.mrb[33].mxu0  ;;  %v1967_v51 = vadd.f32 %v1966_v17, %v10642_v37 }
 0x413   :  { %v1929_v25 = vpop.f32.mrb[22].mxu1  ;;  %v1970_v28 = vpop.f32.mrb[34].mxu0  ;;  %v1928_v36 = vadd.f32 %v1927_v21, %v10633_v3  ;;  %v1969_v60 = vadd.f32 %v1968_v24, %v10638_v34 }
 0x414   :  { %v7967_v30 = vmul.f32 -1.442695, %v1926_v20  ;;  %v1930_v32 = vpop.f32.mrb[23].mxu1  ;;  %v1971_v35 = vpop.f32.mrb[35].mxu0 }
 0x415   :  { %v7968_v29 = vmul.f32 -1.442695, %v1928_v36  ;;  %v9283_v32 = vld [vmem:[%s13397_s2 + $0x50] ss:$12 sps:$4 sm:$0xff]   ;;  %v9284_v35 = vld [vmem:[%s13397_s2 + $0x68] ss:$12 sps:$4 sm:$0xff]  }
 0x416   :  { %9746 = vpow2.f32 %v7967_v30  ;;  %v9280_v30 = vld [vmem:[%s13397_s2 + $0x8] ss:$12 sps:$4 sm:$0xff]   ;;  %v9285_v36 = vld [vmem:[%s13397_s2 + $0x80] ss:$12 sps:$4 sm:$0xff]  }
 0x417   :  { %9748 = vpow2.f32 %v7968_v29  ;;  %v9286_v29 = vld [vmem:[%s13397_s2 + $0x98] ss:$12 sps:$4 sm:$0xff]  }
 0x420   :  { %v9747_v52 = vpop.eup %9746 }
 0x421   :  { %v1976_v41 = vadd.f32 1.0, %v9747_v52  ;;  %v9749_v16 = vpop.eup %9748  ;;  %v9287_v52 = vld [vmem:[%s13397_s2 + $0xb0] ss:$12 sps:$4 sm:$0xff]  }
 0x422   :  { %v1982_v27 = vadd.f32 1.0, %v9749_v16  ;;  %v11062_v16 = vld [vmem:[%s13398_s5 + $0x8] ss:$16 sps:$4 sm:$0xff]  }
 0x423   :  { %9750 = vrcp.f32 %v1976_v41  ;;  %v11057_v41 = vld [vmem:[%s13398_s5 + $0xc] ss:$16 sps:$4 sm:$0xff]   ;;  %13567 = vst [vmem:[#allocation24_spill] sm:$0xff] %v11062_v16 }
 0x424   :  { %9752 = vrcp.f32 %v1982_v27  ;;  %13566 = vst [vmem:[#allocation23_spill] sm:$0xff] %v11057_v41  ;;  %v11068_v27 = vld [vmem:[%s13398_s5 + $0x2c] ss:$16 sps:$4 sm:$0xff]  }
 0x425   :  { %13568 = vst [vmem:[#allocation25_spill] sm:$0xff] %v11068_v27 }
 0x42d   :  { %v9751_v9 = vpop.eup %9750 }
 0x42e   :  { %v1985_v54 = vmul.f32 %v9751_v9, %v1969_v60  ;;  %v9753_v20 = vpop.eup %9752  ;;  %v11075_v60 = vld [vmem:[%s13398_s5 + $0x28] ss:$16 sps:$4 sm:$0xff]   ;;  %v11081_v9 = vld [vmem:[%s13398_s5 + $0x4c] ss:$16 sps:$4 sm:$0xff]  }
 0x42f   :  { %v1988_v21 = vsub.f32 1.0, %v9753_v20  ;;  %v1990_v17 = vmul.f32 %v9753_v20, %v10652_v18  ;;  %v9282_v18 = vld [vmem:[%s13397_s2 + $0x38] ss:$12 sps:$4 sm:$0xff]   ;;  %13569 = vst [vmem:[#allocation26_spill] sm:$0xff] %v11075_v60  ;;  %13570 = vst [vmem:[#allocation27_spill] sm:$0xff] %v11081_v9 }
 0x430   :  { %v1986_v55 = vadd.f32 %v1985_v54, %v1967_v51  ;;  %v11094_v51 = vld [vmem:[%s13398_s5 + $0x6c] ss:$16 sps:$4 sm:$0xff]   ;;  %v11099_v54 = vld [vmem:[%s13398_s5 + $0x68] ss:$16 sps:$4 sm:$0xff]   ;;  %v11134_v20 = vld [vmem:[%s13398_s5 + $0x80] ss:$16 sps:$4 sm:$0xff]  }
 0x431   :  { %v2366_v19 = vpop.f32.mrb[36].mxu0  ;;  %13572 = vst [vmem:[#allocation29_spill] sm:$0xff] %v11094_v51  ;;  %13573 = vst [vmem:[#allocation30_spill] sm:$0xff] %v11099_v54 }
 0x432   :  { %9754 = vtanh.f32 %v1986_v55  ;;  %v11011_v62 = vadd.f32 %v2366_v19, %v10450_v10  ;;  %v2368_v1 = vpop.f32.mrb[37].mxu0  ;;  %v11104_v55 = vld [vmem:[%s13398_s5 + $0x64] ss:$16 sps:$4 sm:$0xff]   ;;  %v11110_v19 = vld [vmem:[%s13398_s5 + $0x60] ss:$16 sps:$4 sm:$0xff]  }
 0x433   :  { %v11014_v63 = vadd.f32 %v2368_v1, %v10452_v14  ;;  %v2370_v4 = vpop.f32.mrb[38].mxu0  ;;  %v9281_v14 = vld [vmem:[%s13397_s2 + $0x20] ss:$12 sps:$4 sm:$0xff]   ;;  %2826 = vmatprep.subr.bf16.mxu0 %v11104_v55 }
 0x434   :  { %v2371_v15 = vpop.f32.mrb[39].mxu0  ;;  %2827 = vmatpush1.bf16.msra.mxu0 %v11110_v19  ;;  %v11118_v1 = vld [vmem:[%s13398_s5 + $0x8c] ss:$16 sps:$4 sm:$0xff]   ;;  %v11123_v4 = vld [vmem:[%s13398_s5 + $0x88] ss:$16 sps:$4 sm:$0xff]  }
 0x435   :  { %13574 = vst [vmem:[#allocation31_spill] sm:$0xff] %v11118_v1  ;;  %13575 = vst [vmem:[#allocation32_spill] sm:$0xff] %v11123_v4  ;;  %v11128_v15 = vld [vmem:[%s13398_s5 + $0x84] ss:$16 sps:$4 sm:$0xff]   ;;  %v8006_v58 = vmul.f32 -1.442695, %v11011_v62 }
 0x436   :  { %2828 = vmatprep.subr.bf16.mxu0 %v11128_v15 }
 0x438   :  { %2829 = vmatpush1.bf16.msra.mxu0 %v11134_v20 }
 0x43c   :  { %v9755_v24 = vpop.eup %9754 }
 0x43d   :  { %v1989_v25 = vmul.f32 %v9755_v24, %v1988_v21  ;;  %v11142_v21 = vld [vmem:[%s13398_s5 + $0xac] ss:$16 sps:$4 sm:$0xff]   ;;  %v11147_v24 = vld [vmem:[%s13398_s5 + $0xa8] ss:$16 sps:$4 sm:$0xff]  }
 0x43e   :  { %13576 = vst [vmem:[#allocation33_spill] sm:$0xff] %v11142_v21  ;;  %13577 = vst [vmem:[#allocation34_spill] sm:$0xff] %v11147_v24 }
 0x43f   :  { %v11017_v28 = vadd.f32 %v1990_v17, %v1989_v25  ;;  %v11152_v25 = vld [vmem:[%s13398_s5 + $0xa4] ss:$16 sps:$4 sm:$0xff]   ;;  %v11158_v17 = vld [vmem:[%s13398_s5 + $0xa0] ss:$16 sps:$4 sm:$0xff]  }
 0x440   :  { %2830 = vmatprep.subr.bf16.mxu0 %v11152_v25 }
 0x441   :  { %13565 = vst [vmem:[#allocation22_spill] sm:$0xff] %v11017_v28  ;;  %v1992_v10 = vpack.c.bf16 %v11017_v28, %v11017_v28  ;;  %2831 = vmatpush1.bf16.msra.mxu0 %v11158_v17  ;;  %v11398_v28 = vld [vmem:[%s13398_s5 + $0x1e0] ss:$16 sps:$4 sm:$0xff]  }
 0x442   :  { %13602 = vst [vmem:[#allocation59_spill] sm:$0xff] %v11398_v28 }
 0x443   :  { %8849 = vmatmul.mubr.bf16.vlgmr.msra.gmra.mrb[24].mxu1 %v1992_v10  ;;  %2852 = vmatprep.mubr.bf16.mxu0 %v1992_v10 }
 0x444   :  { %8853 = vmatpush3.bf16.msra.mxu1 %v9280_v30  ;;  %8868 = vmatprep.mubr.msk.bf16.mxu1 %vm9960_vm2, %v13557_v49  ;;  %v11166_v30 = vld [vmem:[%s13398_s5 + $0xcc] ss:$16 sps:$4 sm:$0xff]  }
 0x445   :  { %8854 = vmatprep.subr.bf16.mxu1 %v13557_v49  ;;  %13578 = vst [vmem:[#allocation35_spill] sm:$0xff] %v11166_v30 }
 0x448   :  { %8855 = vmatpush3.bf16.msra.mxu1 %v9281_v14  ;;  %v11176_v14 = vld [vmem:[%s13398_s5 + $0xc4] ss:$16 sps:$4 sm:$0xff]  }
 0x449   :  { %8856 = vmatprep.subr.bf16.mxu1 %v13557_v49  ;;  %2832 = vmatprep.subr.bf16.mxu0 %v11176_v14 }
 0x44c   :  { %8857 = vmatpush3.bf16.msra.mxu1 %v9282_v18  ;;  %v11182_v18 = vld [vmem:[%s13398_s5 + $0xc0] ss:$16 sps:$4 sm:$0xff]  }
 0x44d   :  { %8858 = vmatprep.subr.bf16.mxu1 %v13557_v49  ;;  %2833 = vmatpush1.bf16.msra.mxu0 %v11182_v18 }
 0x450   :  { %8859 = vmatpush3.bf16.msra.mxu1 %v9283_v32  ;;  %v11190_v32 = vld [vmem:[%s13398_s5 + $0xec] ss:$16 sps:$4 sm:$0xff]  }
 0x451   :  { %8860 = vmatprep.subr.bf16.mxu1 %v13557_v49  ;;  %13580 = vst [vmem:[#allocation37_spill] sm:$0xff] %v11190_v32 }
 0x454   :  { %8861 = vmatpush3.bf16.msra.mxu1 %v9284_v35  ;;  %v11195_v35 = vld [vmem:[%s13398_s5 + $0xe8] ss:$16 sps:$4 sm:$0xff]  }
 0x455   :  { %8862 = vmatprep.subr.bf16.mxu1 %v13557_v49  ;;  %13581 = vst [vmem:[#allocation38_spill] sm:$0xff] %v11195_v35 }
 0x458   :  { %8863 = vmatpush3.bf16.msra.mxu1 %v9285_v36  ;;  %v11200_v36 = vld [vmem:[%s13398_s5 + $0xe4] ss:$16 sps:$4 sm:$0xff]  }
 0x459   :  { %8864 = vmatprep.subr.bf16.mxu1 %v13557_v49  ;;  %2834 = vmatprep.subr.bf16.mxu0 %v11200_v36 }
 0x45c   :  { %8865 = vmatpush3.bf16.msra.mxu1 %v9286_v29  ;;  %v11206_v29 = vld [vmem:[%s13398_s5 + $0xe0] ss:$16 sps:$4 sm:$0xff]  }
 0x45d   :  { %8866 = vmatprep.subr.bf16.mxu1 %v13557_v49  ;;  %2835 = vmatpush1.bf16.msra.mxu0 %v11206_v29 }
 0x460   :  { %8867 = vmatpush3.bf16.msra.mxu1 %v9287_v52  ;;  %v11214_v52 = vld [vmem:[%s13398_s5 + $0x10c] ss:$16 sps:$4 sm:$0xff]  }
 0x461   :  { %2861 = vmatprep.subr.bf16.mxu1 %v11057_v41  ;;  %13582 = vst [vmem:[#allocation39_spill] sm:$0xff] %v11214_v52  ;;  %v11379_v41 = vld [vmem:[%s13398_s5 + $0x1ec] ss:$16 sps:$4 sm:$0xff]  }
 0x462   :  { %13599 = vst [vmem:[#allocation56_spill] sm:$0xff] %v11379_v41 }
 0x463   :  { %8869 = vmatmul.mubr.bf16.vlgmr.msra.gmra.mrb[28].mxu1 %v10845_v40  ;;  %v11087_v40 = vld [vmem:[%s13398_s5 + $0x48] ss:$16 sps:$4 sm:$0xff]  }
 0x464   :  { %2893 = vmatprep.mubr.bf16.mxu1 %v1992_v10  ;;  %2862 = vmatpush1.bf16.msra.mxu1 %v11062_v16  ;;  %13571 = vst [vmem:[#allocation28_spill] sm:$0xff] %v11087_v40  ;;  %v11171_v10 = vld [vmem:[%s13398_s5 + $0xc8] ss:$16 sps:$4 sm:$0xff]   ;;  %v11374_v16 = vld [vmem:[%s13398_s5 + $0x1c0] ss:$16 sps:$4 sm:$0xff]  }
 0x465   :  { %2863 = vmatprep.subr.bf16.mxu1 %v11068_v27  ;;  %13579 = vst [vmem:[#allocation36_spill] sm:$0xff] %v11171_v10  ;;  %v11361_v27 = vld [vmem:[%s13398_s5 + $0x1c4] ss:$16 sps:$4 sm:$0xff]   ;;  %13598 = vst [vmem:[#allocation55_spill] sm:$0xff] %v11374_v16 }
 0x466   :  { %13596 = vst [vmem:[#allocation53_spill] sm:$0xff] %v11361_v27 }
 0x468   :  { %2864 = vmatpush1.bf16.msra.mxu1 %v11075_v60  ;;  %v11350_v60 = vld [vmem:[%s13398_s5 + $0x1a0] ss:$16 sps:$4 sm:$0xff]  }
 0x469   :  { %2865 = vmatprep.subr.bf16.mxu1 %v11081_v9  ;;  %v11338_v9 = vld [vmem:[%s13398_s5 + $0x1a8] ss:$16 sps:$4 sm:$0xff]   ;;  %13594 = vst [vmem:[#allocation51_spill] sm:$0xff] %v11350_v60 }
 0x46a   :  { %13593 = vst [vmem:[#allocation50_spill] sm:$0xff] %v11338_v9 }
 0x46c   :  { %2866 = vmatpush1.bf16.msra.mxu1 %v11087_v40  ;;  %v11331_v40 = vld [vmem:[%s13398_s5 + $0x1ac] ss:$16 sps:$4 sm:$0xff]  }
 0x46d   :  { %2867 = vmatprep.subr.bf16.mxu1 %v11094_v51  ;;  %v11320_v51 = vld [vmem:[%s13398_s5 + $0x184] ss:$16 sps:$4 sm:$0xff]   ;;  %13592 = vst [vmem:[#allocation49_spill] sm:$0xff] %v11331_v40 }
 0x470   :  { %2868 = vmatpush1.bf16.msra.mxu1 %v11099_v54  ;;  %v11310_v54 = vld [vmem:[%s13398_s5 + $0x18c] ss:$16 sps:$4 sm:$0xff]  }
 0x471   :  { %2869 = vmatprep.subr.bf16.mxu1 %v11118_v1  ;;  %v11296_v1 = vld [vmem:[%s13398_s5 + $0x164] ss:$16 sps:$4 sm:$0xff]   ;;  %13590 = vst [vmem:[#allocation47_spill] sm:$0xff] %v11310_v54 }
 0x474   :  { %2870 = vmatpush1.bf16.msra.mxu1 %v11123_v4  ;;  %v11291_v4 = vld [vmem:[%s13398_s5 + $0x168] ss:$16 sps:$4 sm:$0xff]  }
 0x475   :  { %2871 = vmatprep.subr.bf16.mxu1 %v11142_v21  ;;  %v11273_v21 = vld [vmem:[%s13398_s5 + $0x144] ss:$16 sps:$4 sm:$0xff]   ;;  %13589 = vst [vmem:[#allocation46_spill] sm:$0xff] %v11291_v4 }
 0x478   :  { %2872 = vmatpush1.bf16.msra.mxu1 %v11147_v24  ;;  %v11262_v24 = vld [vmem:[%s13398_s5 + $0x14c] ss:$16 sps:$4 sm:$0xff]  }
 0x479   :  { %2873 = vmatprep.subr.bf16.mxu1 %v11166_v30  ;;  %v11248_v30 = vld [vmem:[%s13398_s5 + $0x124] ss:$16 sps:$4 sm:$0xff]   ;;  %13586 = vst [vmem:[#allocation43_spill] sm:$0xff] %v11262_v24 }
 0x47c   :  { %2874 = vmatpush1.bf16.msra.mxu1 %v11171_v10  ;;  %v11238_v10 = vld [vmem:[%s13398_s5 + $0x12c] ss:$16 sps:$4 sm:$0xff]  }
 0x47d   :  { %2875 = vmatprep.subr.bf16.mxu1 %v11190_v32  ;;  %v11224_v32 = vld [vmem:[%s13398_s5 + $0x104] ss:$16 sps:$4 sm:$0xff]   ;;  %13584 = vst [vmem:[#allocation41_spill] sm:$0xff] %v11238_v10 }
 0x47e   :  { %2836 = vmatprep.subr.bf16.mxu0 %v11224_v32 }
 0x480   :  { %2876 = vmatpush1.bf16.msra.mxu1 %v11195_v35  ;;  %v11230_v35 = vld [vmem:[%s13398_s5 + $0x100] ss:$16 sps:$4 sm:$0xff]  }
 0x481   :  { %2877 = vmatprep.subr.bf16.mxu1 %v11214_v52  ;;  %2837 = vmatpush1.bf16.msra.mxu0 %v11230_v35  ;;  %v11243_v52 = vld [vmem:[%s13398_s5 + $0x128] ss:$16 sps:$4 sm:$0xff]  }
 0x482   :  { %13585 = vst [vmem:[#allocation42_spill] sm:$0xff] %v11243_v52  ;;  %2838 = vmatprep.subr.bf16.mxu0 %v11248_v30 }
 0x484   :  { %2878 = vmatpush1.bf16.msra.mxu1 %v11219_v31  ;;  %v11254_v31 = vld [vmem:[%s13398_s5 + $0x120] ss:$16 sps:$4 sm:$0xff]  }
 0x485   :  { %2879 = vmatprep.subr.bf16.mxu1 %v11238_v10  ;;  %2839 = vmatpush1.bf16.msra.mxu0 %v11254_v31  ;;  %v11267_v10 = vld [vmem:[%s13398_s5 + $0x148] ss:$16 sps:$4 sm:$0xff]  }
 0x486   :  { %13587 = vst [vmem:[#allocation44_spill] sm:$0xff] %v11267_v10  ;;  %2840 = vmatprep.subr.bf16.mxu0 %v11273_v21 }
 0x488   :  { %2880 = vmatpush1.bf16.msra.mxu1 %v11243_v52  ;;  %v11278_v52 = vld [vmem:[%s13398_s5 + $0x140] ss:$16 sps:$4 sm:$0xff]  }
 0x489   :  { %2881 = vmatprep.subr.bf16.mxu1 %v11262_v24  ;;  %2841 = vmatpush1.bf16.msra.mxu0 %v11278_v52  ;;  %v11286_v24 = vld [vmem:[%s13398_s5 + $0x16c] ss:$16 sps:$4 sm:$0xff]  }
 0x48a   :  { %13588 = vst [vmem:[#allocation45_spill] sm:$0xff] %v11286_v24  ;;  %2842 = vmatprep.subr.bf16.mxu0 %v11296_v1 }
 0x48c   :  { %2882 = vmatpush1.bf16.msra.mxu1 %v11267_v10  ;;  %v11302_v10 = vld [vmem:[%s13398_s5 + $0x160] ss:$16 sps:$4 sm:$0xff]  }
 0x48d   :  { %2883 = vmatprep.subr.bf16.mxu1 %v11286_v24  ;;  %2843 = vmatpush1.bf16.msra.mxu0 %v11302_v10  ;;  %v11315_v24 = vld [vmem:[%s13398_s5 + $0x188] ss:$16 sps:$4 sm:$0xff]  }
 0x48e   :  { %13591 = vst [vmem:[#allocation48_spill] sm:$0xff] %v11315_v24  ;;  %2844 = vmatprep.subr.bf16.mxu0 %v11320_v51 }
 0x490   :  { %2884 = vmatpush1.bf16.msra.mxu1 %v11291_v4  ;;  %v11326_v4 = vld [vmem:[%s13398_s5 + $0x180] ss:$16 sps:$4 sm:$0xff]  }
 0x491   :  { %2885 = vmatprep.subr.bf16.mxu1 %v11310_v54  ;;  %v11343_v54 = vld [vmem:[%s13398_s5 + $0x1a4] ss:$16 sps:$4 sm:$0xff]   ;;  %2845 = vmatpush1.bf16.msra.mxu0 %v11326_v4 }
 0x492   :  { %2846 = vmatprep.subr.bf16.mxu0 %v11343_v54 }
 0x494   :  { %2886 = vmatpush1.bf16.msra.mxu1 %v11315_v24  ;;  %v11355_v24 = vld [vmem:[%s13398_s5 + $0x1cc] ss:$16 sps:$4 sm:$0xff]  }
 0x495   :  { %2887 = vmatprep.subr.bf16.mxu1 %v11331_v40  ;;  %13595 = vst [vmem:[#allocation52_spill] sm:$0xff] %v11355_v24  ;;  %v11367_v40 = vld [vmem:[%s13398_s5 + $0x1c8] ss:$16 sps:$4 sm:$0xff]   ;;  %2847 = vmatpush1.bf16.msra.mxu0 %v11350_v60 }
 0x496   :  { %13597 = vst [vmem:[#allocation54_spill] sm:$0xff] %v11367_v40  ;;  %2848 = vmatprep.subr.bf16.mxu0 %v11361_v27 }
 0x498   :  { %2888 = vmatpush1.bf16.msra.mxu1 %v11338_v9  ;;  %v11385_v9 = vld [vmem:[%s13398_s5 + $0x1e4] ss:$16 sps:$4 sm:$0xff]  }
 0x499   :  { %2889 = vmatprep.subr.bf16.mxu1 %v11355_v24  ;;  %13600 = vst [vmem:[#allocation57_spill] sm:$0xff] %v11385_v9  ;;  %v11391_v24 = vld [vmem:[%s13398_s5 + $0x1e8] ss:$16 sps:$4 sm:$0xff]   ;;  %2849 = vmatpush1.bf16.msra.mxu0 %v11374_v16 }
 0x49a   :  { %13601 = vst [vmem:[#allocation58_spill] sm:$0xff] %v11391_v24  ;;  %2850 = vmatprep.subr.bf16.mxu0 %v11385_v9 }
 0x49c   :  { %2890 = vmatpush1.bf16.msra.mxu1 %v11367_v40 }
 0x49d   :  { %2891 = vmatprep.subr.bf16.mxu1 %v11379_v41  ;;  %2851 = vmatpush1.bf16.msra.mxu0 %v11398_v28 }
 0x49e   :  { %8872 = vmatprep.subr.bf16.mxu0 %v13557_v49 }
 0x4a0   :  { %2892 = vmatpush1.bf16.msra.mxu1 %v11391_v24  ;;  %v8007_v24 = vmul.f32 -1.442695, %v11014_v63 }
 0x4a1   :  { %3261 = vmatprep.subr.bf16.mxu1 %v10789_v57 }
 0x516   :  { %v2091_v40 = vpop.f32.mrb[24].mxu1 }
 0x517   :  { %v2092_v22 = vadd.f32 %v10795_v45, %v2091_v40  ;;  %v8850_v37 = vpop.f32.mrb[25].mxu1 }
 0x518   :  { %v2094_v41 = vpop.f32.mrb[26].mxu1 }
 0x519   :  { %v7977_v34 = vmul.f32 -1.442695, %v2092_v22  ;;  %v8851_v3 = vpop.f32.mrb[27].mxu1 }
 0x51b   :  { %9756 = vpow2.f32 %v7977_v34 }
 0x51c   :  { %9758 = vpow2.f32 %v8006_v58 }
 0x525   :  { %v9757_v9 = vpop.eup %9756 }
 0x526   :  { %v2100_v16 = vadd.f32 1.0, %v9757_v9  ;;  %v9759_v28 = vpop.eup %9758 }
 0x527   :  { %v2417_v57 = vadd.f32 1.0, %v9759_v28 }
 0x528   :  { %9760 = vrcp.f32 %v2100_v16 }
 0x529   :  { %9762 = vpow2.f32 %v8007_v24 }
 0x52a   :  { %9764 = vrcp.f32 %v2417_v57 }
 0x532   :  { %v9761_v27 = vpop.eup %9760 }
 0x533   :  { %v9763_v60 = vpop.eup %9762  ;;  %v2104_v45 = vcombine.high %v9761_v27, %v9761_v27  ;;  %v2111_v37 = vrot.slane %v9761_v27, %v10801_v59 }
 0x534   :  { %v2424_v58 = vadd.f32 1.0, %v9763_v60  ;;  %v11425_v60 = vld [vmem:[%s13400_s4] ss:$0 sm:$0xff]  ;;  %v9765_v24 = vpop.eup %9764 }
 0x535   :  { %v2118_v22 = vrot.slane %v2104_v45, %v10801_v59  ;;  %v2119_v3 = vcombine.high %v2111_v37, %v2111_v37  ;;  %v2127_v34 = vrot.slane %v2111_v37, %v10801_v59  ;;  %7978 = vst.sshfl [vmem:[%s13404_s9 + $0x1] sm:$0x1 pattern:$0x73625140] %v2111_v37 }
 0x536   :  { %v2407_v62 = vpop.f32.mrb[28].mxu1  ;;  %9766 = vrcp.f32 %v2424_v58 }
 0x537   :  { %v2120_v63 = vcombine.high %v2118_v22, %v2118_v22  ;;  %v2134_v28 = vrot.slane %v2118_v22, %v10801_v59  ;;  %v2141_v41 = vrot.slane %v2119_v3, %v10801_v59  ;;  %v2149_v16 = vcombine.high %v2127_v34, %v2127_v34  ;;  %7979 = vst.sshfl [vmem:[%s13404_s9 + $0x9] sm:$0x1 pattern:$0x73625140] %v2119_v3  ;;  %v8870_v27 = vpop.f32.mrb[29].mxu1 }
 0x538   :  { %7980 = vst.sshfl [vmem:[%s13404_s9 + $0x21] sm:$0x1 pattern:$0x73625140] %v2118_v22  ;;  %v2427_v9 = vadd.f32 %v11425_v60, %v2407_v62  ;;  %v2410_v40 = vpop.f32.mrb[30].mxu1 }
 0x539   :  { %v2148_v57 = vrot.slane %v2120_v63, %v10801_v59  ;;  %v2150_v45 = vcombine.high %v2134_v28, %v2134_v28  ;;  %v2151_v37 = vcombine.high %v2141_v41, %v2141_v41  ;;  %2163 = vst [vmem:[%s13404_s9 + $0x11] sm:$0x1] %v2149_v16  ;;  %7981 = vst.sshfl [vmem:[%s13404_s9 + $0x29] sm:$0x1 pattern:$0x73625140] %v2120_v63 }
 0x53a   :  { %v8871_v22 = vpop.f32.mrb[31].mxu1  ;;  %v2428_v3 = vmul.f32 %v9765_v24, %v2427_v9 }
 0x53b   :  { %v2152_v34 = vcombine.high %v2148_v57, %v2148_v57  ;;  %2164 = vst [vmem:[%s13404_s9 + $0x19] sm:$0x1] %v2151_v37  ;;  %2167 = vst [vmem:[%s13404_s9 + $0x31] sm:$0x1] %v2150_v45 }
 0x53c   :  { %v2429_v62 = vadd.f32 %v2428_v3, %v10457_v26  ;;  %v13603_v26 = vld [vmem:[#allocation51_spill] sm:$0xff]  ;;  %v13614_v3 = vld [vmem:[#allocation22_spill] sm:$0xff] }
 0x53d   :  { %2168 = vst [vmem:[%s13404_s9 + $0x39] sm:$0x1] %v2152_v34 }
 0x53e   :  { %9768 = vtanh.f32 %v2429_v62 }
 0x540   :  { %v9767_v63 = vpop.eup %9766 }
 0x541   :  { %v2431_v28 = vsub.f32 1.0, %v9767_v63  ;;  %v2433_v16 = vmul.f32 %v9767_v63, %v10836_v23  ;;  %v13604_v23 = vld [vmem:[#allocation53_spill] sm:$0xff] }
 0x542   :  { %v9392_v63 = vld [vmem:[%s13397_s2 + $0x8] ss:$12 sps:$4 sm:$0xff]  }
 0x548   :  { %v9769_v58 = vpop.eup %9768 }
 0x549   :  { %v2432_v41 = vmul.f32 %v9769_v58, %v2431_v28  ;;  %v9393_v58 = vld [vmem:[%s13397_s2 + $0x20] ss:$12 sps:$4 sm:$0xff]  }
 0x54b   :  { %v11446_v27 = vadd.f32 %v2433_v16, %v2432_v41  ;;  %v9394_v41 = vld [vmem:[%s13397_s2 + $0x38] ss:$12 sps:$4 sm:$0xff]   ;;  %v9395_v16 = vld [vmem:[%s13397_s2 + $0x50] ss:$12 sps:$4 sm:$0xff]  }
 0x54d   :  { %v11450_v9 = vpack.c.bf16 %v11446_v27, %v11446_v27 }
 0x54f   :  { %2853 = vmatmul.mubr.bf16.vlgmr.msra.gmra.mrb[40].mxu0 %v11450_v9  ;;  %2894 = vmatmul.mubr.bf16.vlgmr.msra.gmra.mrb[32].mxu1 %v11450_v9 }
 0x550   :  { %3262 = vmatpush1.bf16.msra.mxu1 %v10841_v53  ;;  %3293 = vmatprep.mubr.bf16.mxu1 %v13556_v6  ;;  %v13605_v53 = vld [vmem:[#allocation55_spill] sm:$0xff] }
 0x551   :  { %3263 = vmatprep.subr.bf16.mxu1 %v10850_v56  ;;  %8888 = vmatprep.mubr.msk.bf16.mxu0 %vm9960_vm2, %v13557_v49  ;;  %v13607_v56 = vld [vmem:[#allocation59_spill] sm:$0xff] }
 0x554   :  { %3264 = vmatpush1.bf16.msra.mxu1 %v10858_v13  ;;  %v9384_v13 = vld [vmem:[%s13401_s7] sm:$0xff]  }
 0x555   :  { %3265 = vmatprep.subr.bf16.mxu1 %v10865_v33  ;;  %8873 = vmatpush3.bf16.msra.mxu0 %v9384_v13  ;;  %v9385_v33 = vld [vmem:[%s13401_s7 + $0x8] sm:$0xff]  }
 0x556   :  { %8874 = vmatprep.subr.bf16.mxu0 %v13557_v49  ;;  %v13616_v13 = vld [vmem:[#allocation24_spill] sm:$0xff] }
 0x558   :  { %3266 = vmatpush1.bf16.msra.mxu1 %v10873_v48  ;;  %v9386_v48 = vld [vmem:[%s13401_s7 + $0x10] sm:$0xff]  }
 0x559   :  { %3267 = vmatprep.subr.bf16.mxu1 %v10879_v0  ;;  %8875 = vmatpush3.bf16.msra.mxu0 %v9385_v33  ;;  %v9387_v0 = vld [vmem:[%s13401_s7 + $0x18] sm:$0xff]   ;;  %v13617_v33 = vld [vmem:[#allocation25_spill] sm:$0xff] }
 0x55a   :  { %8876 = vmatprep.subr.bf16.mxu0 %v13557_v49 }
 0x55c   :  { %3268 = vmatpush1.bf16.msra.mxu1 %v10885_v38  ;;  %v9388_v38 = vld [vmem:[%s13401_s7 + $0x20] sm:$0xff]  }
 0x55d   :  { %3269 = vmatprep.subr.bf16.mxu1 %v10891_v61  ;;  %8877 = vmatpush3.bf16.msra.mxu0 %v9386_v48  ;;  %v9389_v61 = vld [vmem:[%s13401_s7 + $0x28] sm:$0xff]   ;;  %v13618_v48 = vld [vmem:[#allocation26_spill] sm:$0xff] }
 0x55e   :  { %8878 = vmatprep.subr.bf16.mxu0 %v13557_v49 }
 0x560   :  { %3270 = vmatpush1.bf16.msra.mxu1 %v10897_v5  ;;  %v9390_v5 = vld [vmem:[%s13401_s7 + $0x30] sm:$0xff]  }
 0x561   :  { %3271 = vmatprep.subr.bf16.mxu1 %v10903_v39  ;;  %8879 = vmatpush3.bf16.msra.mxu0 %v9387_v0  ;;  %v9391_v39 = vld [vmem:[%s13401_s7 + $0x38] sm:$0xff]   ;;  %v13619_v0 = vld [vmem:[#allocation27_spill] sm:$0xff] }
 0x562   :  { %8880 = vmatprep.subr.bf16.mxu0 %v13557_v49 }
 0x564   :  { %3272 = vmatpush1.bf16.msra.mxu1 %v10909_v42 }
 0x565   :  { %3273 = vmatprep.subr.bf16.mxu1 %v10915_v43  ;;  %8881 = vmatpush3.bf16.msra.mxu0 %v9388_v38  ;;  %v13620_v38 = vld [vmem:[#allocation28_spill] sm:$0xff] }
 0x566   :  { %8882 = vmatprep.subr.bf16.mxu0 %v13557_v49 }
 0x568   :  { %3274 = vmatpush1.bf16.msra.mxu1 %v10921_v46  ;;  %v13608_v46 = vld [vmem:[#allocation18_spill] sm:$0xff] }
 0x569   :  { %3275 = vmatprep.subr.bf16.mxu1 %v10927_v47  ;;  %8883 = vmatpush3.bf16.msra.mxu0 %v9389_v61  ;;  %v13621_v61 = vld [vmem:[#allocation29_spill] sm:$0xff] }
 0x56a   :  { %8884 = vmatprep.subr.bf16.mxu0 %v13557_v49 }
 0x56c   :  { %3276 = vmatpush1.bf16.msra.mxu1 %v10933_v50 }
 0x56d   :  { %3749 = vmatprep.subr.bf16.mxu1 %v10978_v7  ;;  %8885 = vmatpush3.bf16.msra.mxu0 %v9390_v5  ;;  %v13622_v5 = vld [vmem:[#allocation30_spill] sm:$0xff] }
 0x56e   :  { %8886 = vmatprep.subr.bf16.mxu0 %v13557_v49 }
 0x56f   :  { %3294 = vmatmul.mubr.bf16.vlgmr.msra.gmra.mrb[36].mxu1 %v11450_v9 }
 0x570   :  { %3750 = vmatpush1.bf16.msra.mxu1 %v10973_v2 }
 0x571   :  { %3751 = vmatprep.subr.bf16.mxu1 %v10983_v8  ;;  %8887 = vmatpush3.bf16.msra.mxu0 %v9391_v39  ;;  %v13623_v39 = vld [vmem:[#allocation31_spill] sm:$0xff] }
 0x572   :  { %8892 = vmatprep.subr.bf16.mxu0 %v13557_v49 }
 0x574   :  { %3752 = vmatpush1.bf16.msra.mxu1 %v10990_v11 }
 0x575   :  { %3753 = vmatprep.subr.bf16.mxu1 %v10996_v12 }
 0x578   :  { %3754 = vmatpush1.bf16.msra.mxu1 %v11002_v44 }
 0x579   :  { %3755 = vmatprep.subr.bf16.mxu1 %v11104_v55 }
 0x57c   :  { %3756 = vmatpush1.bf16.msra.mxu1 %v11110_v19 }
 0x57d   :  { %3757 = vmatprep.subr.bf16.mxu1 %v11128_v15 }
 0x580   :  { %3758 = vmatpush1.bf16.msra.mxu1 %v11134_v20  ;;  %v13610_v20 = vld [vmem:[#allocation20_spill] sm:$0xff] }
 0x581   :  { %3759 = vmatprep.subr.bf16.mxu1 %v11152_v25 }
 0x584   :  { %3760 = vmatpush1.bf16.msra.mxu1 %v11158_v17  ;;  %v13611_v17 = vld [vmem:[#allocation21_spill] sm:$0xff] }
 0x585   :  { %3761 = vmatprep.subr.bf16.mxu1 %v11176_v14 }
 0x588   :  { %3762 = vmatpush1.bf16.msra.mxu1 %v11182_v18 }
 0x589   :  { %3763 = vmatprep.subr.bf16.mxu1 %v11200_v36 }
 0x58c   :  { %3764 = vmatpush1.bf16.msra.mxu1 %v11206_v29  ;;  %v13613_v29 = vld [vmem:[#allocation4_spill] sm:$0xff] }
 0x58d   :  { %3765 = vmatprep.subr.bf16.mxu1 %v11224_v32  ;;  %v13612_v32 = vld [vmem:[#allocation3_spill] sm:$0xff] }
 0x590   :  { %3766 = vmatpush1.bf16.msra.mxu1 %v11230_v35 }
 0x591   :  { %3767 = vmatprep.subr.bf16.mxu1 %v11248_v30 }
 0x594   :  { %3768 = vmatpush1.bf16.msra.mxu1 %v11254_v31  ;;  %v13606_v31 = vld [vmem:[#allocation57_spill] sm:$0xff] }
 0x595   :  { %3769 = vmatprep.subr.bf16.mxu1 %v11273_v21 }
 0x598   :  { %3770 = vmatpush1.bf16.msra.mxu1 %v11278_v52 }
 0x599   :  { %3771 = vmatprep.subr.bf16.mxu1 %v11296_v1 }
 0x59c   :  { %3772 = vmatpush1.bf16.msra.mxu1 %v11302_v10 }
 0x59d   :  { %3773 = vmatprep.subr.bf16.mxu1 %v11320_v51  ;;  %v13609_v51 = vld [vmem:[#allocation19_spill] sm:$0xff] }
 0x5a0   :  { %3774 = vmatpush1.bf16.msra.mxu1 %v11326_v4 }
 0x5a1   :  { %3775 = vmatprep.subr.bf16.mxu1 %v11343_v54 }
 0x5a4   :  { %3776 = vmatpush1.bf16.msra.mxu1 %v13603_v26  ;;  %v9396_v26 = vld [vmem:[%s13397_s2 + $0x68] ss:$12 sps:$4 sm:$0xff]  }
 0x5a5   :  { %3777 = vmatprep.subr.bf16.mxu1 %v13604_v23  ;;  %v9397_v23 = vld [vmem:[%s13397_s2 + $0x80] ss:$12 sps:$4 sm:$0xff]  }
 0x5a8   :  { %3778 = vmatpush1.bf16.msra.mxu1 %v13605_v53  ;;  %v9398_v53 = vld [vmem:[%s13397_s2 + $0x98] ss:$12 sps:$4 sm:$0xff]  }
 0x5a9   :  { %3779 = vmatprep.subr.bf16.mxu1 %v13606_v31  ;;  %v9399_v31 = vld [vmem:[%s13397_s2 + $0xb0] ss:$12 sps:$4 sm:$0xff]  }
 0x5ac   :  { %3780 = vmatpush1.bf16.msra.mxu1 %v13607_v56  ;;  %v13615_v56 = vld [vmem:[#allocation23_spill] sm:$0xff] }
 0x5ad   :  { %8912 = vmatprep.subr.bf16.mxu1 %v13557_v49 }
 0x622   :  { %v2854_v42 = vpop.f32.mrb[40].mxu0  ;;  %v2895_v43 = vpop.f32.mrb[32].mxu1 }
 0x623   :  { %v2855_v47 = vadd.f32 %v2854_v42, %v13608_v46  ;;  %v2856_v50 = vpop.f32.mrb[41].mxu0  ;;  %v2897_v2 = vpop.f32.mrb[33].mxu1  ;;  %v2896_v30 = vadd.f32 %v2895_v43, %v13611_v17  ;;  %v13624_v42 = vld [vmem:[#allocation32_spill] sm:$0xff]  ;;  %v13626_v43 = vld [vmem:[#allocation34_spill] sm:$0xff] }
 0x624   :  { %v2858_v7 = vpop.f32.mrb[42].mxu0  ;;  %v2899_v8 = vpop.f32.mrb[34].mxu1  ;;  %v2857_v54 = vadd.f32 %v2856_v50, %v13609_v51  ;;  %v2898_v21 = vadd.f32 %v2897_v2, %v13610_v20  ;;  %v13628_v50 = vld [vmem:[#allocation36_spill] sm:$0xff]  ;;  %v13629_v2 = vld [vmem:[#allocation37_spill] sm:$0xff] }
 0x625   :  { %v8072_v11 = vmul.f32 -1.442695, %v2855_v47  ;;  %v2859_v12 = vpop.f32.mrb[43].mxu0  ;;  %v2900_v44 = vpop.f32.mrb[35].mxu1  ;;  %v13627_v47 = vld [vmem:[#allocation35_spill] sm:$0xff]  ;;  %v13630_v7 = vld [vmem:[#allocation38_spill] sm:$0xff] }
 0x626   :  { %v8073_v55 = vmul.f32 -1.442695, %v2857_v54  ;;  %v13631_v8 = vld [vmem:[#allocation39_spill] sm:$0xff]  ;;  %v13633_v12 = vld [vmem:[#allocation41_spill] sm:$0xff]  ;;  %v13634_v44 = vld [vmem:[#allocation42_spill] sm:$0xff] }
 0x627   :  { %9770 = vpow2.f32 %v8072_v11  ;;  %v13632_v11 = vld [vmem:[#allocation40_spill] sm:$0xff]  ;;  %v13635_v54 = vld [vmem:[#allocation43_spill] sm:$0xff] }
 0x628   :  { %9772 = vpow2.f32 %v8073_v55  ;;  %v13636_v55 = vld [vmem:[#allocation44_spill] sm:$0xff] }
 0x631   :  { %v9771_v19 = vpop.eup %9770 }
 0x632   :  { %v2905_v1 = vadd.f32 1.0, %v9771_v19  ;;  %v9773_v4 = vpop.eup %9772  ;;  %v13637_v19 = vld [vmem:[#allocation45_spill] sm:$0xff] }
 0x633   :  { %v2911_v15 = vadd.f32 1.0, %v9773_v4  ;;  %v13639_v4 = vld [vmem:[#allocation47_spill] sm:$0xff] }
 0x634   :  { %9774 = vrcp.f32 %v2905_v1  ;;  %v13638_v1 = vld [vmem:[#allocation46_spill] sm:$0xff] }
 0x635   :  { %9776 = vrcp.f32 %v2911_v15  ;;  %v13640_v15 = vld [vmem:[#allocation48_spill] sm:$0xff] }
 0x63e   :  { %v9775_v25 = vpop.eup %9774 }
 0x63f   :  { %v2914_v10 = vmul.f32 %v9775_v25, %v2898_v21  ;;  %v9777_v57 = vpop.eup %9776  ;;  %v13641_v21 = vld [vmem:[#allocation49_spill] sm:$0xff]  ;;  %v13642_v25 = vld [vmem:[#allocation50_spill] sm:$0xff] }
 0x640   :  { %v2917_v45 = vsub.f32 1.0, %v9777_v57  ;;  %v2919_v34 = vmul.f32 %v9777_v57, %v13614_v3 }
 0x641   :  { %v2915_v14 = vadd.f32 %v2914_v10, %v2896_v30  ;;  %v13643_v30 = vld [vmem:[#allocation52_spill] sm:$0xff]  ;;  %v13644_v10 = vld [vmem:[#allocation54_spill] sm:$0xff] }
 0x642   :  { %v3295_v18 = vpop.f32.mrb[36].mxu1 }
 0x643   :  { %9778 = vtanh.f32 %v2915_v14  ;;  %v11543_v35 = vadd.f32 %v3295_v18, %v13612_v32  ;;  %v3297_v36 = vpop.f32.mrb[37].mxu1  ;;  %v13645_v14 = vld [vmem:[#allocation56_spill] sm:$0xff]  ;;  %v13646_v18 = vld [vmem:[#allocation58_spill] sm:$0xff]  ;;  %v11622_v32 = vld [vmem:[%s13397_s2 + $0x4] ss:$12 sps:$4 sm:$0xff]  }
 0x644   :  { %v11546_v52 = vadd.f32 %v3297_v36, %v13613_v29  ;;  %v3299_v40 = vpop.f32.mrb[38].mxu1  ;;  %v11628_v29 = vld [vmem:[%s13403_s8] ss:$0 sm:$0xff] }
 0x645   :  { %v3300_v24 = vpop.f32.mrb[39].mxu1 }
 0x64d   :  { %v9779_v37 = vpop.eup %9778 }
 0x64e   :  { %v2918_v22 = vmul.f32 %v9779_v37, %v2917_v45 }
 0x650   :  { %v11549_v62 = vadd.f32 %v2919_v34, %v2918_v22  ;;  %v8111_v22 = vmul.f32 -1.442695, %v11543_v35  ;;  %v8112_v34 = vmul.f32 -1.442695, %v11546_v52 }
 0x652   :  { %v2921_v28 = vpack.c.bf16 %v11549_v62, %v11549_v62 }
 0x654   :  { %8889 = vmatmul.mubr.bf16.vlgmr.msra.gmra.mrb[44].mxu0 %v2921_v28  ;;  %3781 = vmatprep.mubr.bf16.mxu1 %v2921_v28 }
 0x655   :  { %8893 = vmatpush3.bf16.msra.mxu0 %v9392_v63  ;;  %8908 = vmatprep.mubr.msk.bf16.mxu0 %vm9960_vm2, %v13557_v49 }
 0x656   :  { %8894 = vmatprep.subr.bf16.mxu0 %v13557_v49 }
 0x659   :  { %8895 = vmatpush3.bf16.msra.mxu0 %v9393_v58 }
 0x65a   :  { %8896 = vmatprep.subr.bf16.mxu0 %v13557_v49 }
 0x65d   :  { %8897 = vmatpush3.bf16.msra.mxu0 %v9394_v41 }
 0x65e   :  { %8898 = vmatprep.subr.bf16.mxu0 %v13557_v49 }
 0x661   :  { %8899 = vmatpush3.bf16.msra.mxu0 %v9395_v16 }
 0x662   :  { %8900 = vmatprep.subr.bf16.mxu0 %v13557_v49 }
 0x665   :  { %8901 = vmatpush3.bf16.msra.mxu0 %v9396_v26 }
 0x666   :  { %8902 = vmatprep.subr.bf16.mxu0 %v13557_v49 }
 0x669   :  { %8903 = vmatpush3.bf16.msra.mxu0 %v9397_v23 }
 0x66a   :  { %8904 = vmatprep.subr.bf16.mxu0 %v13557_v49 }
 0x66d   :  { %8905 = vmatpush3.bf16.msra.mxu0 %v9398_v53 }
 0x66e   :  { %8906 = vmatprep.subr.bf16.mxu0 %v13557_v49 }
 0x671   :  { %8907 = vmatpush3.bf16.msra.mxu0 %v9399_v31 }
 0x672   :  { %3790 = vmatprep.subr.bf16.mxu0 %v13615_v56 }
 0x674   :  { %8909 = vmatmul.mubr.bf16.vlgmr.msra.gmra.mrb[48].mxu0 %v11450_v9  ;;  %v13625_v9 = vld [vmem:[#allocation33_spill] sm:$0xff] }
 0x675   :  { %3822 = vmatprep.mubr.bf16.mxu0 %v2921_v28  ;;  %3791 = vmatpush1.bf16.msra.mxu0 %v13616_v13 }
 0x676   :  { %3792 = vmatprep.subr.bf16.mxu0 %v13617_v33 }
 0x679   :  { %3793 = vmatpush1.bf16.msra.mxu0 %v13618_v48 }
 0x67a   :  { %3794 = vmatprep.subr.bf16.mxu0 %v13619_v0 }
 0x67d   :  { %3795 = vmatpush1.bf16.msra.mxu0 %v13620_v38 }
 0x67e   :  { %3796 = vmatprep.subr.bf16.mxu0 %v13621_v61 }
 0x681   :  { %3797 = vmatpush1.bf16.msra.mxu0 %v13622_v5 }
 0x682   :  { %3798 = vmatprep.subr.bf16.mxu0 %v13623_v39 }
 0x685   :  { %3799 = vmatpush1.bf16.msra.mxu0 %v13624_v42 }
 0x686   :  { %3800 = vmatprep.subr.bf16.mxu0 %v13625_v9 }
 0x689   :  { %3801 = vmatpush1.bf16.msra.mxu0 %v13626_v43 }
 0x68a   :  { %3802 = vmatprep.subr.bf16.mxu0 %v13627_v47 }
 0x68d   :  { %3803 = vmatpush1.bf16.msra.mxu0 %v13628_v50 }
 0x68e   :  { %3804 = vmatprep.subr.bf16.mxu0 %v13629_v2 }
 0x691   :  { %3805 = vmatpush1.bf16.msra.mxu0 %v13630_v7 }
 0x692   :  { %3806 = vmatprep.subr.bf16.mxu0 %v13631_v8 }
 0x695   :  { %3807 = vmatpush1.bf16.msra.mxu0 %v13632_v11 }
 0x696   :  { %3808 = vmatprep.subr.bf16.mxu0 %v13633_v12 }
 0x699   :  { %3809 = vmatpush1.bf16.msra.mxu0 %v13634_v44 }
 0x69a   :  { %3810 = vmatprep.subr.bf16.mxu0 %v13635_v54 }
 0x69d   :  { %3811 = vmatpush1.bf16.msra.mxu0 %v13636_v55 }
 0x69e   :  { %3812 = vmatprep.subr.bf16.mxu0 %v13637_v19  ;;  %v11671_v19 = vld [vmem:[%s13397_s2] ss:$12 sps:$4 sm:$0xff]  }
 0x6a1   :  { %3813 = vmatpush1.bf16.msra.mxu0 %v13638_v1 }
 0x6a2   :  { %3814 = vmatprep.subr.bf16.mxu0 %v13639_v4  ;;  %v11680_v4 = vld [vmem:[%s13397_s2 + $0x1c] ss:$12 sps:$4 sm:$0xff]  }
 0x6a5   :  { %3815 = vmatpush1.bf16.msra.mxu0 %v13640_v15  ;;  %v11695_v15 = vld [vmem:[%s13397_s2 + $0x34] ss:$12 sps:$4 sm:$0xff]  }
 0x6a6   :  { %3816 = vmatprep.subr.bf16.mxu0 %v13641_v21  ;;  %v11703_v21 = vld [vmem:[%s13397_s2 + $0x30] ss:$12 sps:$4 sm:$0xff]  }
 0x6a9   :  { %3817 = vmatpush1.bf16.msra.mxu0 %v13642_v25  ;;  %v11709_v25 = vld [vmem:[%s13397_s2 + $0x4c] ss:$12 sps:$4 sm:$0xff]  }
 0x6aa   :  { %3818 = vmatprep.subr.bf16.mxu0 %v13643_v30  ;;  %v11715_v30 = vld [vmem:[%s13397_s2 + $0x48] ss:$12 sps:$4 sm:$0xff]  }
 0x6ad   :  { %3819 = vmatpush1.bf16.msra.mxu0 %v13644_v10  ;;  %v11721_v10 = vld [vmem:[%s13397_s2 + $0x64] ss:$12 sps:$4 sm:$0xff]  }
 0x6ae   :  { %3820 = vmatprep.subr.bf16.mxu0 %v13645_v14  ;;  %v11727_v14 = vld [vmem:[%s13397_s2 + $0x60] ss:$12 sps:$4 sm:$0xff]  }
 0x6b1   :  { %3821 = vmatpush1.bf16.msra.mxu0 %v13646_v18  ;;  %v11733_v18 = vld [vmem:[%s13397_s2 + $0x7c] ss:$12 sps:$4 sm:$0xff]  }
 0x6b2   :  { %4190 = vmatprep.subr.bf16.mxu0 %v11622_v32 }
 0x727   :  { %v3020_v36 = vpop.f32.mrb[44].mxu0 }
 0x728   :  { %v3021_v40 = vadd.f32 %v11628_v29, %v3020_v36  ;;  %v8890_v24 = vpop.f32.mrb[45].mxu0  ;;  %v11739_v36 = vld [vmem:[%s13397_s2 + $0x78] ss:$12 sps:$4 sm:$0xff]  }
 0x729   :  { %v3023_v57 = vpop.f32.mrb[46].mxu0  ;;  %v11751_v24 = vld [vmem:[%s13397_s2 + $0x90] ss:$12 sps:$4 sm:$0xff]  }
 0x72a   :  { %v8082_v45 = vmul.f32 -1.442695, %v3021_v40  ;;  %v8891_v37 = vpop.f32.mrb[47].mxu0  ;;  %v11745_v40 = vld [vmem:[%s13397_s2 + $0x94] ss:$12 sps:$4 sm:$0xff]  }
 0x72b   :  { %v11757_v57 = vld [vmem:[%s13397_s2 + $0xac] ss:$12 sps:$4 sm:$0xff]   ;;  %v9424_v37 = vld [vmem:[%s13401_s7] sm:$0xff]  }
 0x72c   :  { %9780 = vpow2.f32 %v8082_v45  ;;  %v11763_v45 = vld [vmem:[%s13397_s2 + $0xa8] ss:$12 sps:$4 sm:$0xff]  }
 0x72d   :  { %9782 = vpow2.f32 %v8111_v22  ;;  %v9425_v22 = vld [vmem:[%s13401_s7 + $0x8] sm:$0xff]  }
 0x736   :  { %v9781_v3 = vpop.eup %9780 }
 0x737   :  { %v3029_v63 = vadd.f32 1.0, %v9781_v3  ;;  %v9783_v28 = vpop.eup %9782  ;;  %v9426_v3 = vld [vmem:[%s13401_s7 + $0x10] sm:$0xff]  }
 0x738   :  { %v3346_v58 = vadd.f32 1.0, %v9783_v28  ;;  %v9429_v28 = vld [vmem:[%s13401_s7 + $0x28] sm:$0xff]  }
 0x739   :  { %9784 = vrcp.f32 %v3029_v63  ;;  %v9428_v63 = vld [vmem:[%s13401_s7 + $0x20] sm:$0xff]  }
 0x73a   :  { %9786 = vpow2.f32 %v8112_v34  ;;  %v9427_v34 = vld [vmem:[%s13401_s7 + $0x18] sm:$0xff]  }
 0x73b   :  { %9788 = vrcp.f32 %v3346_v58  ;;  %v9430_v58 = vld [vmem:[%s13401_s7 + $0x30] sm:$0xff]  }
 0x743   :  { %v9785_v41 = vpop.eup %9784 }
 0x744   :  { %v9787_v16 = vpop.eup %9786  ;;  %v3033_v26 = vcombine.high %v9785_v41, %v9785_v41  ;;  %v3040_v23 = vrot.slane %v9785_v41, %v10801_v59  ;;  %v9431_v41 = vld [vmem:[%s13401_s7 + $0x38] sm:$0xff]  }
 0x745   :  { %v3353_v52 = vadd.f32 1.0, %v9787_v16  ;;  %v9789_v39 = vpop.eup %9788  ;;  %v11803_v16 = vld [vmem:[%s13398_s5] ss:$16 sps:$4 sm:$0xff]  }
 0x746   :  { %v3047_v53 = vrot.slane %v3033_v26, %v10801_v59  ;;  %v3048_v31 = vcombine.high %v3040_v23, %v3040_v23  ;;  %v3056_v35 = vrot.slane %v3040_v23, %v10801_v59  ;;  %8083 = vst.sshfl [vmem:[%s13404_s9 + $0x2] sm:$0x1 pattern:$0x73625140] %v3040_v23  ;;  %v11808_v26 = vld [vmem:[%s13398_s5 + $0x4] ss:$16 sps:$4 sm:$0xff]  }
 0x747   :  { %v3336_v56 = vpop.f32.mrb[48].mxu0  ;;  %9790 = vrcp.f32 %v3353_v52  ;;  %v11813_v23 = vld [vmem:[%s13398_s5 + $0x24] ss:$16 sps:$4 sm:$0xff]  }
 0x748   :  { %v3049_v13 = vcombine.high %v3047_v53, %v3047_v53  ;;  %v3063_v33 = vrot.slane %v3047_v53, %v10801_v59  ;;  %v3070_v48 = vrot.slane %v3048_v31, %v10801_v59  ;;  %v3078_v0 = vcombine.high %v3056_v35, %v3056_v35  ;;  %8084 = vst.sshfl [vmem:[%s13404_s9 + $0xa] sm:$0x1 pattern:$0x73625140] %v3048_v31  ;;  %v8910_v38 = vpop.f32.mrb[49].mxu0 }
 0x749   :  { %8085 = vst.sshfl [vmem:[%s13404_s9 + $0x22] sm:$0x1 pattern:$0x73625140] %v3047_v53  ;;  %v3356_v61 = vadd.f32 %v11425_v60, %v3336_v56  ;;  %v3339_v5 = vpop.f32.mrb[50].mxu0  ;;  %v13647_v60 = vld [vmem:[#allocation5_spill] sm:$0xff] }
 0x74a   :  { %v3077_v42 = vrot.slane %v3049_v13, %v10801_v59  ;;  %v3079_v9 = vcombine.high %v3063_v33, %v3063_v33  ;;  %v3080_v43 = vcombine.high %v3070_v48, %v3070_v48  ;;  %3092 = vst [vmem:[%s13404_s9 + $0x12] sm:$0x1] %v3078_v0  ;;  %8086 = vst.sshfl [vmem:[%s13404_s9 + $0x2a] sm:$0x1 pattern:$0x73625140] %v3049_v13 }
 0x74b   :  { %v8911_v47 = vpop.f32.mrb[51].mxu0  ;;  %v3357_v50 = vmul.f32 %v9789_v39, %v3356_v61  ;;  %v11820_v53 = vld [vmem:[%s13398_s5 + $0x20] ss:$16 sps:$4 sm:$0xff]   ;;  %v11826_v31 = vld [vmem:[%s13398_s5 + $0x44] ss:$16 sps:$4 sm:$0xff]  }
 0x74c   :  { %v3081_v2 = vcombine.high %v3077_v42, %v3077_v42  ;;  %3093 = vst [vmem:[%s13404_s9 + $0x1a] sm:$0x1] %v3080_v43  ;;  %3096 = vst [vmem:[%s13404_s9 + $0x32] sm:$0x1] %v3079_v9  ;;  %v11832_v35 = vld [vmem:[%s13398_s5 + $0x40] ss:$16 sps:$4 sm:$0xff]  }
 0x74d   :  { %v3358_v7 = vadd.f32 %v3357_v50, %v13647_v60 }
 0x74e   :  { %3097 = vst [vmem:[%s13404_s9 + $0x3a] sm:$0x1] %v3081_v2 }
 0x74f   :  { %9792 = vtanh.f32 %v3358_v7 }
 0x751   :  { %v9791_v8 = vpop.eup %9790 }
 0x752   :  { %v3360_v11 = vsub.f32 1.0, %v9791_v8  ;;  %v3362_v54 = vmul.f32 %v9791_v8, %v11446_v27  ;;  %v11688_v27 = vld [vmem:[%s13397_s2 + $0x18] ss:$12 sps:$4 sm:$0xff]  }
 0x759   :  { %v9793_v12 = vpop.eup %9792 }
 0x75a   :  { %v3361_v44 = vmul.f32 %v9793_v12, %v3360_v11 }
 0x75c   :  { %v11666_v55 = vadd.f32 %v3362_v54, %v3361_v44  ;;  %v13648_v54 = vld [vmem:[#allocation6_spill] sm:$0xff] }
 0x75e   :  { %v11675_v1 = vpack.c.bf16 %v11666_v55, %v11666_v55 }
 0x760   :  { %3782 = vmatmul.mubr.bf16.vlgmr.msra.gmra.mrb[40].mxu1 %v11675_v1  ;;  %3823 = vmatmul.mubr.bf16.vlgmr.msra.gmra.mrb[52].mxu0 %v11675_v1 }
 0x761   :  { %4191 = vmatpush1.bf16.msra.mxu0 %v11671_v19  ;;  %4222 = vmatprep.mubr.bf16.mxu0 %v13556_v6 }
 0x762   :  { %4192 = vmatprep.subr.bf16.mxu0 %v11680_v4  ;;  %8928 = vmatprep.mubr.msk.bf16.mxu1 %vm9960_vm2, %v13557_v49 }
 0x763   :  { %8913 = vmatpush3.bf16.msra.mxu1 %v9424_v37 }
 0x764   :  { %8914 = vmatprep.subr.bf16.mxu1 %v13557_v49 }
 0x765   :  { %4193 = vmatpush1.bf16.msra.mxu0 %v11688_v27 }
 0x766   :  { %4194 = vmatprep.subr.bf16.mxu0 %v11695_v15 }
 0x767   :  { %8915 = vmatpush3.bf16.msra.mxu1 %v9425_v22 }
 0x768   :  { %8916 = vmatprep.subr.bf16.mxu1 %v13557_v49 }
 0x769   :  { %4195 = vmatpush1.bf16.msra.mxu0 %v11703_v21 }
 0x76a   :  { %4196 = vmatprep.subr.bf16.mxu0 %v11709_v25 }
 0x76b   :  { %8917 = vmatpush3.bf16.msra.mxu1 %v9426_v3  ;;  %v13649_v3 = vld [vmem:[#allocation7_spill] sm:$0xff] }
 0x76c   :  { %8918 = vmatprep.subr.bf16.mxu1 %v13557_v49 }
 0x76d   :  { %4197 = vmatpush1.bf16.msra.mxu0 %v11715_v30 }
 0x76e   :  { %4198 = vmatprep.subr.bf16.mxu0 %v11721_v10 }
 0x76f   :  { %8919 = vmatpush3.bf16.msra.mxu1 %v9427_v34 }
 0x770   :  { %8920 = vmatprep.subr.bf16.mxu1 %v13557_v49 }
 0x771   :  { %4199 = vmatpush1.bf16.msra.mxu0 %v11727_v14 }
 0x772   :  { %4200 = vmatprep.subr.bf16.mxu0 %v11733_v18 }
 0x773   :  { %8921 = vmatpush3.bf16.msra.mxu1 %v9428_v63 }
 0x774   :  { %8922 = vmatprep.subr.bf16.mxu1 %v13557_v49 }
 0x775   :  { %4201 = vmatpush1.bf16.msra.mxu0 %v11739_v36 }
 0x776   :  { %4202 = vmatprep.subr.bf16.mxu0 %v11745_v40 }
 0x777   :  { %8923 = vmatpush3.bf16.msra.mxu1 %v9429_v28 }
 0x778   :  { %8924 = vmatprep.subr.bf16.mxu1 %v13557_v49 }
 0x779   :  { %4203 = vmatpush1.bf16.msra.mxu0 %v11751_v24 }
 0x77a   :  { %4204 = vmatprep.subr.bf16.mxu0 %v11757_v57 }
 0x77b   :  { %8925 = vmatpush3.bf16.msra.mxu1 %v9430_v58 }
 0x77c   :  { %8926 = vmatprep.subr.bf16.mxu1 %v13557_v49 }
 0x77d   :  { %4205 = vmatpush1.bf16.msra.mxu0 %v11763_v45 }
 0x77e   :  { %4678 = vmatprep.subr.bf16.mxu0 %v11808_v26 }
 0x77f   :  { %8927 = vmatpush3.bf16.msra.mxu1 %v9431_v41 }
 0x780   :  { %4223 = vmatmul.mubr.bf16.vlgmr.msra.gmra.mrb[56].mxu0 %v11675_v1  ;;  %8932 = vmatprep.subr.bf16.mxu1 %v13557_v49 }
 0x781   :  { %4679 = vmatpush1.bf16.msra.mxu0 %v11803_v16 }
 0x782   :  { %4680 = vmatprep.subr.bf16.mxu0 %v11813_v23 }
 0x785   :  { %4681 = vmatpush1.bf16.msra.mxu0 %v11820_v53 }
 0x786   :  { %4682 = vmatprep.subr.bf16.mxu0 %v11826_v31 }
 0x789   :  { %4683 = vmatpush1.bf16.msra.mxu0 %v11832_v35 }
 0x833   :  { %v3783_v52 = vpop.f32.mrb[40].mxu1  ;;  %v3824_v56 = vpop.f32.mrb[52].mxu0 }
 0x834   :  { %v3784_v13 = vadd.f32 %v3783_v52, %v13608_v46  ;;  %v3785_v33 = vpop.f32.mrb[41].mxu1  ;;  %v3826_v48 = vpop.f32.mrb[53].mxu0  ;;  %v3825_v8 = vadd.f32 %v3824_v56, %v13611_v17 }
 0x835   :  { %v3787_v0 = vpop.f32.mrb[42].mxu1  ;;  %v3828_v38 = vpop.f32.mrb[54].mxu0  ;;  %v3786_v42 = vadd.f32 %v3785_v33, %v13609_v51  ;;  %v3827_v60 = vadd.f32 %v3826_v48, %v13610_v20  ;;  %v9432_v48 = vld [vmem:[%s13397_s2 + $0x8] ss:$12 sps:$4 sm:$0xff]  }
 0x836   :  { %v8177_v61 = vmul.f32 -1.442695, %v3784_v13  ;;  %v3788_v5 = vpop.f32.mrb[43].mxu1  ;;  %v3829_v39 = vpop.f32.mrb[55].mxu0  ;;  %v9433_v38 = vld [vmem:[%s13397_s2 + $0x20] ss:$12 sps:$4 sm:$0xff]  }
 0x837   :  { %v8178_v9 = vmul.f32 -1.442695, %v3786_v42  ;;  %v9436_v5 = vld [vmem:[%s13397_s2 + $0x68] ss:$12 sps:$4 sm:$0xff]   ;;  %v9437_v39 = vld [vmem:[%s13397_s2 + $0x80] ss:$12 sps:$4 sm:$0xff]  }
 0x838   :  { %9794 = vpow2.f32 %v8177_v61  ;;  %v9435_v61 = vld [vmem:[%s13397_s2 + $0x50] ss:$12 sps:$4 sm:$0xff]   ;;  %v9438_v42 = vld [vmem:[%s13397_s2 + $0x98] ss:$12 sps:$4 sm:$0xff]  }
 0x839   :  { %9796 = vpow2.f32 %v8178_v9  ;;  %v9439_v9 = vld [vmem:[%s13397_s2 + $0xb0] ss:$12 sps:$4 sm:$0xff]  }
 0x842   :  { %v9795_v43 = vpop.eup %9794 }
 0x843   :  { %v3834_v47 = vadd.f32 1.0, %v9795_v43  ;;  %v9797_v50 = vpop.eup %9796  ;;  %v11887_v43 = vld [vmem:[%s13398_s5 + $0xc] ss:$16 sps:$4 sm:$0xff]  }
 0x844   :  { %v3840_v2 = vadd.f32 1.0, %v9797_v50  ;;  %13651 = vst [vmem:[#allocation53_spill] sm:$0xff] %v11887_v43  ;;  %v11898_v50 = vld [vmem:[%s13398_s5 + $0x2c] ss:$16 sps:$4 sm:$0xff]  }
 0x845   :  { %9798 = vrcp.f32 %v3834_v47  ;;  %v11892_v47 = vld [vmem:[%s13398_s5 + $0x8] ss:$16 sps:$4 sm:$0xff]   ;;  %13653 = vst [vmem:[#allocation57_spill] sm:$0xff] %v11898_v50 }
 0x846   :  { %9800 = vrcp.f32 %v3840_v2  ;;  %13652 = vst [vmem:[#allocation55_spill] sm:$0xff] %v11892_v47  ;;  %v11905_v2 = vld [vmem:[%s13398_s5 + $0x28] ss:$16 sps:$4 sm:$0xff]  }
 0x847   :  { %13654 = vst [vmem:[#allocation59_spill] sm:$0xff] %v11905_v2 }
 0x84f   :  { %v9799_v7 = vpop.eup %9798 }
 0x850   :  { %v3843_v11 = vmul.f32 %v9799_v7, %v3827_v60  ;;  %v9801_v58 = vpop.eup %9800  ;;  %v11911_v60 = vld [vmem:[%s13398_s5 + $0x4c] ss:$16 sps:$4 sm:$0xff]  }
 0x851   :  { %v3846_v41 = vsub.f32 1.0, %v9801_v58  ;;  %v3848_v56 = vmul.f32 %v9801_v58, %v11549_v62  ;;  %v9434_v62 = vld [vmem:[%s13397_s2 + $0x38] ss:$12 sps:$4 sm:$0xff]   ;;  %13655 = vst [vmem:[#allocation3_spill] sm:$0xff] %v11911_v60  ;;  %v11924_v7 = vld [vmem:[%s13398_s5 + $0x6c] ss:$16 sps:$4 sm:$0xff]  }
 0x852   :  { %v3844_v12 = vadd.f32 %v3843_v11, %v3825_v8  ;;  %13657 = vst [vmem:[#allocation22_spill] sm:$0xff] %v11924_v7  ;;  %v11929_v8 = vld [vmem:[%s13398_s5 + $0x68] ss:$16 sps:$4 sm:$0xff]   ;;  %v11934_v11 = vld [vmem:[%s13398_s5 + $0x64] ss:$16 sps:$4 sm:$0xff]  }
 0x853   :  { %v4224_v44 = vpop.f32.mrb[56].mxu0  ;;  %13658 = vst [vmem:[#allocation23_spill] sm:$0xff] %v11929_v8  ;;  %4684 = vmatprep.subr.bf16.mxu0 %v11934_v11  ;;  %v11982_v58 = vld [vmem:[%s13398_s5 + $0xa4] ss:$16 sps:$4 sm:$0xff]  }
 0x854   :  { %9802 = vtanh.f32 %v3844_v12  ;;  %v11841_v37 = vadd.f32 %v4224_v44, %v13648_v54  ;;  %v4226_v22 = vpop.f32.mrb[57].mxu0  ;;  %v11940_v12 = vld [vmem:[%s13398_s5 + $0x60] ss:$16 sps:$4 sm:$0xff]   ;;  %v11948_v44 = vld [vmem:[%s13398_s5 + $0x8c] ss:$16 sps:$4 sm:$0xff]  }
 0x855   :  { %v11844_v34 = vadd.f32 %v4226_v22, %v13649_v3  ;;  %v4228_v63 = vpop.f32.mrb[58].mxu0  ;;  %4685 = vmatpush1.bf16.msra.mxu0 %v11940_v12  ;;  %13659 = vst [vmem:[#allocation24_spill] sm:$0xff] %v11948_v44  ;;  %v11953_v54 = vld [vmem:[%s13398_s5 + $0x88] ss:$16 sps:$4 sm:$0xff]   ;;  %v11958_v22 = vld [vmem:[%s13398_s5 + $0x84] ss:$16 sps:$4 sm:$0xff]  }
 0x856   :  { %v4229_v28 = vpop.f32.mrb[59].mxu0  ;;  %13660 = vst [vmem:[#allocation25_spill] sm:$0xff] %v11953_v54  ;;  %v11964_v3 = vld [vmem:[%s13398_s5 + $0x80] ss:$16 sps:$4 sm:$0xff]   ;;  %4686 = vmatprep.subr.bf16.mxu0 %v11958_v22  ;;  %v11972_v63 = vld [vmem:[%s13398_s5 + $0xac] ss:$16 sps:$4 sm:$0xff]  }
 0x857   :  { %13661 = vst [vmem:[#allocation26_spill] sm:$0xff] %v11972_v63  ;;  %v11977_v28 = vld [vmem:[%s13398_s5 + $0xa8] ss:$16 sps:$4 sm:$0xff]   ;;  %v8216_v51 = vmul.f32 -1.442695, %v11841_v37 }
 0x858   :  { %13662 = vst [vmem:[#allocation27_spill] sm:$0xff] %v11977_v28 }
 0x859   :  { %4687 = vmatpush1.bf16.msra.mxu0 %v11964_v3 }
 0x85a   :  { %4688 = vmatprep.subr.bf16.mxu0 %v11982_v58 }
 0x85e   :  { %v9803_v52 = vpop.eup %9802 }
 0x85f   :  { %v3847_v13 = vmul.f32 %v9803_v52, %v3846_v41  ;;  %v11988_v41 = vld [vmem:[%s13398_s5 + $0xa0] ss:$16 sps:$4 sm:$0xff]   ;;  %v11996_v52 = vld [vmem:[%s13398_s5 + $0xcc] ss:$16 sps:$4 sm:$0xff]  }
 0x860   :  { %4689 = vmatpush1.bf16.msra.mxu0 %v11988_v41  ;;  %13663 = vst [vmem:[#allocation28_spill] sm:$0xff] %v11996_v52 }
 0x861   :  { %v11847_v33 = vadd.f32 %v3848_v56, %v3847_v13  ;;  %v12001_v13 = vld [vmem:[%s13398_s5 + $0xc8] ss:$16 sps:$4 sm:$0xff]   ;;  %v12006_v56 = vld [vmem:[%s13398_s5 + $0xc4] ss:$16 sps:$4 sm:$0xff]  }
 0x862   :  { %13664 = vst [vmem:[#allocation29_spill] sm:$0xff] %v12001_v13  ;;  %4690 = vmatprep.subr.bf16.mxu0 %v12006_v56 }
 0x863   :  { %13650 = vst [vmem:[#allocation51_spill] sm:$0xff] %v11847_v33  ;;  %v3850_v0 = vpack.c.bf16 %v11847_v33, %v11847_v33 }
 0x865   :  { %8929 = vmatmul.mubr.bf16.vlgmr.msra.gmra.mrb[44].mxu1 %v3850_v0  ;;  %4710 = vmatprep.mubr.bf16.mxu0 %v3850_v0 }
 0x866   :  { %8933 = vmatpush3.bf16.msra.mxu1 %v9432_v48  ;;  %8948 = vmatprep.mubr.msk.bf16.mxu1 %vm9960_vm2, %v13557_v49  ;;  %v12012_v48 = vld [vmem:[%s13398_s5 + $0xc0] ss:$16 sps:$4 sm:$0xff]  }
 0x867   :  { %8934 = vmatprep.subr.bf16.mxu1 %v13557_v49  ;;  %4691 = vmatpush1.bf16.msra.mxu0 %v12012_v48 }
 0x86a   :  { %8935 = vmatpush3.bf16.msra.mxu1 %v9433_v38  ;;  %v12025_v38 = vld [vmem:[%s13398_s5 + $0xe8] ss:$16 sps:$4 sm:$0xff]  }
 0x86b   :  { %8936 = vmatprep.subr.bf16.mxu1 %v13557_v49  ;;  %13666 = vst [vmem:[#allocation31_spill] sm:$0xff] %v12025_v38 }
 0x86e   :  { %8937 = vmatpush3.bf16.msra.mxu1 %v9434_v62  ;;  %v12030_v62 = vld [vmem:[%s13398_s5 + $0xe4] ss:$16 sps:$4 sm:$0xff]  }
 0x86f   :  { %8938 = vmatprep.subr.bf16.mxu1 %v13557_v49  ;;  %4692 = vmatprep.subr.bf16.mxu0 %v12030_v62 }
 0x872   :  { %8939 = vmatpush3.bf16.msra.mxu1 %v9435_v61  ;;  %v12036_v61 = vld [vmem:[%s13398_s5 + $0xe0] ss:$16 sps:$4 sm:$0xff]  }
 0x873   :  { %8940 = vmatprep.subr.bf16.mxu1 %v13557_v49  ;;  %4693 = vmatpush1.bf16.msra.mxu0 %v12036_v61 }
 0x876   :  { %8941 = vmatpush3.bf16.msra.mxu1 %v9436_v5  ;;  %v12044_v5 = vld [vmem:[%s13398_s5 + $0x10c] ss:$16 sps:$4 sm:$0xff]  }
 0x877   :  { %8942 = vmatprep.subr.bf16.mxu1 %v13557_v49  ;;  %13667 = vst [vmem:[#allocation32_spill] sm:$0xff] %v12044_v5 }
 0x87a   :  { %8943 = vmatpush3.bf16.msra.mxu1 %v9437_v39  ;;  %v12049_v39 = vld [vmem:[%s13398_s5 + $0x108] ss:$16 sps:$4 sm:$0xff]  }
 0x87b   :  { %8944 = vmatprep.subr.bf16.mxu1 %v13557_v49  ;;  %13668 = vst [vmem:[#allocation33_spill] sm:$0xff] %v12049_v39 }
 0x87e   :  { %8945 = vmatpush3.bf16.msra.mxu1 %v9438_v42  ;;  %v12054_v42 = vld [vmem:[%s13398_s5 + $0x104] ss:$16 sps:$4 sm:$0xff]  }
 0x87f   :  { %8946 = vmatprep.subr.bf16.mxu1 %v13557_v49  ;;  %4694 = vmatprep.subr.bf16.mxu0 %v12054_v42 }
 0x882   :  { %8947 = vmatpush3.bf16.msra.mxu1 %v9439_v9  ;;  %v12060_v9 = vld [vmem:[%s13398_s5 + $0x100] ss:$16 sps:$4 sm:$0xff]  }
 0x883   :  { %4719 = vmatprep.subr.bf16.mxu1 %v11887_v43  ;;  %4695 = vmatpush1.bf16.msra.mxu0 %v12060_v9 }
 0x885   :  { %8949 = vmatmul.mubr.bf16.vlgmr.msra.gmra.mrb[48].mxu1 %v11675_v1  ;;  %v11917_v1 = vld [vmem:[%s13398_s5 + $0x48] ss:$16 sps:$4 sm:$0xff]  }
 0x886   :  { %4751 = vmatprep.mubr.bf16.mxu1 %v3850_v0  ;;  %4720 = vmatpush1.bf16.msra.mxu1 %v11892_v47  ;;  %13656 = vst [vmem:[#allocation4_spill] sm:$0xff] %v11917_v1  ;;  %v12020_v0 = vld [vmem:[%s13398_s5 + $0xec] ss:$16 sps:$4 sm:$0xff]   ;;  %v12228_v47 = vld [vmem:[%s13398_s5 + $0x1e0] ss:$16 sps:$4 sm:$0xff]  }
 0x887   :  { %4721 = vmatprep.subr.bf16.mxu1 %v11898_v50  ;;  %13665 = vst [vmem:[#allocation30_spill] sm:$0xff] %v12020_v0  ;;  %v12209_v50 = vld [vmem:[%s13398_s5 + $0x1ec] ss:$16 sps:$4 sm:$0xff]   ;;  %13686 = vst [vmem:[#allocation52_spill] sm:$0xff] %v12228_v47 }
 0x888   :  { %13683 = vst [vmem:[#allocation48_spill] sm:$0xff] %v12209_v50 }
 0x88a   :  { %4722 = vmatpush1.bf16.msra.mxu1 %v11905_v2  ;;  %v12204_v2 = vld [vmem:[%s13398_s5 + $0x1c0] ss:$16 sps:$4 sm:$0xff]  }
 0x88b   :  { %4723 = vmatprep.subr.bf16.mxu1 %v11911_v60  ;;  %v12191_v60 = vld [vmem:[%s13398_s5 + $0x1c4] ss:$16 sps:$4 sm:$0xff]   ;;  %13682 = vst [vmem:[#allocation47_spill] sm:$0xff] %v12204_v2 }
 0x88c   :  { %13680 = vst [vmem:[#allocation45_spill] sm:$0xff] %v12191_v60 }
 0x88e   :  { %4724 = vmatpush1.bf16.msra.mxu1 %v11917_v1  ;;  %v12180_v1 = vld [vmem:[%s13398_s5 + $0x1a0] ss:$16 sps:$4 sm:$0xff]  }
 0x88f   :  { %4725 = vmatprep.subr.bf16.mxu1 %v11924_v7  ;;  %v12168_v7 = vld [vmem:[%s13398_s5 + $0x1a8] ss:$16 sps:$4 sm:$0xff]  }
 0x890   :  { %13678 = vst [vmem:[#allocation43_spill] sm:$0xff] %v12168_v7 }
 0x892   :  { %4726 = vmatpush1.bf16.msra.mxu1 %v11929_v8  ;;  %v12161_v8 = vld [vmem:[%s13398_s5 + $0x1ac] ss:$16 sps:$4 sm:$0xff]  }
 0x893   :  { %4727 = vmatprep.subr.bf16.mxu1 %v11948_v44  ;;  %v12150_v44 = vld [vmem:[%s13398_s5 + $0x184] ss:$16 sps:$4 sm:$0xff]   ;;  %13677 = vst [vmem:[#allocation42_spill] sm:$0xff] %v12161_v8 }
 0x896   :  { %4728 = vmatpush1.bf16.msra.mxu1 %v11953_v54  ;;  %v12140_v54 = vld [vmem:[%s13398_s5 + $0x18c] ss:$16 sps:$4 sm:$0xff]  }
 0x897   :  { %4729 = vmatprep.subr.bf16.mxu1 %v11972_v63  ;;  %v12126_v63 = vld [vmem:[%s13398_s5 + $0x164] ss:$16 sps:$4 sm:$0xff]   ;;  %13675 = vst [vmem:[#allocation40_spill] sm:$0xff] %v12140_v54 }
 0x89a   :  { %4730 = vmatpush1.bf16.msra.mxu1 %v11977_v28  ;;  %v12121_v28 = vld [vmem:[%s13398_s5 + $0x168] ss:$16 sps:$4 sm:$0xff]  }
 0x89b   :  { %4731 = vmatprep.subr.bf16.mxu1 %v11996_v52  ;;  %v12103_v52 = vld [vmem:[%s13398_s5 + $0x144] ss:$16 sps:$4 sm:$0xff]   ;;  %13674 = vst [vmem:[#allocation39_spill] sm:$0xff] %v12121_v28 }
 0x89e   :  { %4732 = vmatpush1.bf16.msra.mxu1 %v12001_v13  ;;  %v12092_v13 = vld [vmem:[%s13398_s5 + $0x14c] ss:$16 sps:$4 sm:$0xff]  }
 0x89f   :  { %4733 = vmatprep.subr.bf16.mxu1 %v12020_v0  ;;  %v12078_v0 = vld [vmem:[%s13398_s5 + $0x124] ss:$16 sps:$4 sm:$0xff]   ;;  %13671 = vst [vmem:[#allocation36_spill] sm:$0xff] %v12092_v13 }
 0x8a0   :  { %4696 = vmatprep.subr.bf16.mxu0 %v12078_v0 }
 0x8a2   :  { %4734 = vmatpush1.bf16.msra.mxu1 %v12025_v38  ;;  %v12068_v38 = vld [vmem:[%s13398_s5 + $0x12c] ss:$16 sps:$4 sm:$0xff]  }
 0x8a3   :  { %4735 = vmatprep.subr.bf16.mxu1 %v12044_v5  ;;  %13669 = vst [vmem:[#allocation34_spill] sm:$0xff] %v12068_v38  ;;  %v12073_v5 = vld [vmem:[%s13398_s5 + $0x128] ss:$16 sps:$4 sm:$0xff]  }
 0x8a4   :  { %13670 = vst [vmem:[#allocation35_spill] sm:$0xff] %v12073_v5 }
 0x8a6   :  { %4736 = vmatpush1.bf16.msra.mxu1 %v12049_v39  ;;  %v12084_v39 = vld [vmem:[%s13398_s5 + $0x120] ss:$16 sps:$4 sm:$0xff]  }
 0x8a7   :  { %4737 = vmatprep.subr.bf16.mxu1 %v12068_v38  ;;  %4697 = vmatpush1.bf16.msra.mxu0 %v12084_v39  ;;  %v12097_v38 = vld [vmem:[%s13398_s5 + $0x148] ss:$16 sps:$4 sm:$0xff]  }
 0x8a8   :  { %13672 = vst [vmem:[#allocation37_spill] sm:$0xff] %v12097_v38  ;;  %4698 = vmatprep.subr.bf16.mxu0 %v12103_v52 }
 0x8aa   :  { %4738 = vmatpush1.bf16.msra.mxu1 %v12073_v5  ;;  %v12108_v5 = vld [vmem:[%s13398_s5 + $0x140] ss:$16 sps:$4 sm:$0xff]  }
 0x8ab   :  { %4739 = vmatprep.subr.bf16.mxu1 %v12092_v13  ;;  %4699 = vmatpush1.bf16.msra.mxu0 %v12108_v5  ;;  %v12116_v13 = vld [vmem:[%s13398_s5 + $0x16c] ss:$16 sps:$4 sm:$0xff]  }
 0x8ac   :  { %13673 = vst [vmem:[#allocation38_spill] sm:$0xff] %v12116_v13  ;;  %4700 = vmatprep.subr.bf16.mxu0 %v12126_v63 }
 0x8ae   :  { %4740 = vmatpush1.bf16.msra.mxu1 %v12097_v38  ;;  %v12132_v38 = vld [vmem:[%s13398_s5 + $0x160] ss:$16 sps:$4 sm:$0xff]  }
 0x8af   :  { %4741 = vmatprep.subr.bf16.mxu1 %v12116_v13  ;;  %4701 = vmatpush1.bf16.msra.mxu0 %v12132_v38  ;;  %v12145_v13 = vld [vmem:[%s13398_s5 + $0x188] ss:$16 sps:$4 sm:$0xff]  }
 0x8b0   :  { %13676 = vst [vmem:[#allocation41_spill] sm:$0xff] %v12145_v13  ;;  %4702 = vmatprep.subr.bf16.mxu0 %v12150_v44 }
 0x8b2   :  { %4742 = vmatpush1.bf16.msra.mxu1 %v12121_v28  ;;  %v12156_v28 = vld [vmem:[%s13398_s5 + $0x180] ss:$16 sps:$4 sm:$0xff]  }
 0x8b3   :  { %4743 = vmatprep.subr.bf16.mxu1 %v12140_v54  ;;  %v12173_v54 = vld [vmem:[%s13398_s5 + $0x1a4] ss:$16 sps:$4 sm:$0xff]   ;;  %4703 = vmatpush1.bf16.msra.mxu0 %v12156_v28 }
 0x8b4   :  { %4704 = vmatprep.subr.bf16.mxu0 %v12173_v54 }
 0x8b6   :  { %4744 = vmatpush1.bf16.msra.mxu1 %v12145_v13  ;;  %v12185_v13 = vld [vmem:[%s13398_s5 + $0x1cc] ss:$16 sps:$4 sm:$0xff]  }
 0x8b7   :  { %4745 = vmatprep.subr.bf16.mxu1 %v12161_v8  ;;  %13679 = vst [vmem:[#allocation44_spill] sm:$0xff] %v12185_v13  ;;  %v12197_v8 = vld [vmem:[%s13398_s5 + $0x1c8] ss:$16 sps:$4 sm:$0xff]   ;;  %4705 = vmatpush1.bf16.msra.mxu0 %v12180_v1 }
 0x8b8   :  { %13681 = vst [vmem:[#allocation46_spill] sm:$0xff] %v12197_v8  ;;  %4706 = vmatprep.subr.bf16.mxu0 %v12191_v60 }
 0x8ba   :  { %4746 = vmatpush1.bf16.msra.mxu1 %v12168_v7  ;;  %v12215_v7 = vld [vmem:[%s13398_s5 + $0x1e4] ss:$16 sps:$4 sm:$0xff]  }
 0x8bb   :  { %4747 = vmatprep.subr.bf16.mxu1 %v12185_v13  ;;  %13684 = vst [vmem:[#allocation49_spill] sm:$0xff] %v12215_v7  ;;  %v12221_v13 = vld [vmem:[%s13398_s5 + $0x1e8] ss:$16 sps:$4 sm:$0xff]   ;;  %4707 = vmatpush1.bf16.msra.mxu0 %v12204_v2 }
 0x8bc   :  { %13685 = vst [vmem:[#allocation50_spill] sm:$0xff] %v12221_v13  ;;  %4708 = vmatprep.subr.bf16.mxu0 %v12215_v7 }
 0x8be   :  { %4748 = vmatpush1.bf16.msra.mxu1 %v12197_v8 }
 0x8bf   :  { %4749 = vmatprep.subr.bf16.mxu1 %v12209_v50  ;;  %4709 = vmatpush1.bf16.msra.mxu0 %v12228_v47 }
 0x8c0   :  { %8952 = vmatprep.subr.bf16.mxu0 %v13557_v49 }
 0x8c2   :  { %4750 = vmatpush1.bf16.msra.mxu1 %v12221_v13  ;;  %v8217_v13 = vmul.f32 -1.442695, %v11844_v34 }
 0x8c3   :  { %5119 = vmatprep.subr.bf16.mxu1 %v11622_v32 }
 0x938   :  { %v3949_v8 = vpop.f32.mrb[44].mxu1 }
 0x939   :  { %v3950_v43 = vadd.f32 %v11628_v29, %v3949_v8  ;;  %v8930_v33 = vpop.f32.mrb[45].mxu1 }
 0x93a   :  { %v3952_v50 = vpop.f32.mrb[46].mxu1 }
 0x93b   :  { %v8187_v17 = vmul.f32 -1.442695, %v3950_v43  ;;  %v8931_v20 = vpop.f32.mrb[47].mxu1 }
 0x93d   :  { %9804 = vpow2.f32 %v8187_v17 }
 0x93e   :  { %9806 = vpow2.f32 %v8216_v51 }
 0x947   :  { %v9805_v46 = vpop.eup %9804 }
 0x948   :  { %v3958_v7 = vadd.f32 1.0, %v9805_v46  ;;  %v9807_v47 = vpop.eup %9806 }
 0x949   :  { %v4275_v32 = vadd.f32 1.0, %v9807_v47 }
 0x94a   :  { %9808 = vrcp.f32 %v3958_v7 }
 0x94b   :  { %9810 = vpow2.f32 %v8217_v13 }
 0x94c   :  { %9812 = vrcp.f32 %v4275_v32 }
 0x954   :  { %v9809_v2 = vpop.eup %9808 }
 0x955   :  { %v9811_v60 = vpop.eup %9810  ;;  %v3962_v29 = vcombine.high %v9809_v2, %v9809_v2  ;;  %v3969_v33 = vrot.slane %v9809_v2, %v10801_v59 }
 0x956   :  { %v4282_v46 = vadd.f32 1.0, %v9811_v60  ;;  %v12255_v60 = vld [vmem:[%s13400_s4] ss:$0 sm:$0xff]  ;;  %v9813_v13 = vpop.eup %9812 }
 0x957   :  { %v3976_v20 = vrot.slane %v3962_v29, %v10801_v59  ;;  %v3977_v43 = vcombine.high %v3969_v33, %v3969_v33  ;;  %v3985_v17 = vrot.slane %v3969_v33, %v10801_v59  ;;  %8188 = vst.sshfl [vmem:[%s13404_s9 + $0x3] sm:$0x1 pattern:$0x73625140] %v3969_v33 }
 0x958   :  { %v4265_v51 = vpop.f32.mrb[48].mxu1  ;;  %9814 = vrcp.f32 %v4282_v46 }
 0x959   :  { %v3978_v37 = vcombine.high %v3976_v20, %v3976_v20  ;;  %v3992_v34 = vrot.slane %v3976_v20, %v10801_v59  ;;  %v3999_v47 = vrot.slane %v3977_v43, %v10801_v59  ;;  %v4007_v50 = vcombine.high %v3985_v17, %v3985_v17  ;;  %8189 = vst.sshfl [vmem:[%s13404_s9 + $0xb] sm:$0x1 pattern:$0x73625140] %v3977_v43  ;;  %v8950_v2 = vpop.f32.mrb[49].mxu1 }
 0x95a   :  { %8190 = vst.sshfl [vmem:[%s13404_s9 + $0x23] sm:$0x1 pattern:$0x73625140] %v3976_v20  ;;  %v4285_v7 = vadd.f32 %v12255_v60, %v4265_v51  ;;  %v4268_v8 = vpop.f32.mrb[50].mxu1  ;;  %v13687_v51 = vld [vmem:[#allocation11_spill] sm:$0xff] }
 0x95b   :  { %v4006_v32 = vrot.slane %v3978_v37, %v10801_v59  ;;  %v4008_v29 = vcombine.high %v3992_v34, %v3992_v34  ;;  %v4009_v33 = vcombine.high %v3999_v47, %v3999_v47  ;;  %4021 = vst [vmem:[%s13404_s9 + $0x13] sm:$0x1] %v4007_v50  ;;  %8191 = vst.sshfl [vmem:[%s13404_s9 + $0x2b] sm:$0x1 pattern:$0x73625140] %v3978_v37 }
 0x95c   :  { %v8951_v20 = vpop.f32.mrb[51].mxu1  ;;  %v4286_v43 = vmul.f32 %v9813_v13, %v4285_v7 }
 0x95d   :  { %v4010_v17 = vcombine.high %v4006_v32, %v4006_v32  ;;  %4022 = vst [vmem:[%s13404_s9 + $0x1b] sm:$0x1] %v4009_v33  ;;  %4025 = vst [vmem:[%s13404_s9 + $0x33] sm:$0x1] %v4008_v29 }
 0x95e   :  { %v4287_v34 = vadd.f32 %v4286_v43, %v13687_v51  ;;  %v13698_v43 = vld [vmem:[#allocation51_spill] sm:$0xff] }
 0x95f   :  { %4026 = vst [vmem:[%s13404_s9 + $0x3b] sm:$0x1] %v4010_v17 }
 0x960   :  { %9816 = vtanh.f32 %v4287_v34  ;;  %v9544_v34 = vld [vmem:[%s13397_s2 + $0x8] ss:$12 sps:$4 sm:$0xff]  }
 0x962   :  { %v9815_v37 = vpop.eup %9814 }
 0x963   :  { %v4289_v47 = vsub.f32 1.0, %v9815_v37  ;;  %v4291_v2 = vmul.f32 %v9815_v37, %v11666_v55  ;;  %v13688_v55 = vld [vmem:[#allocation45_spill] sm:$0xff] }
 0x96a   :  { %v9817_v46 = vpop.eup %9816 }
 0x96b   :  { %v4290_v50 = vmul.f32 %v9817_v46, %v4289_v47  ;;  %v9545_v47 = vld [vmem:[%s13397_s2 + $0x20] ss:$12 sps:$4 sm:$0xff]   ;;  %v9546_v46 = vld [vmem:[%s13397_s2 + $0x38] ss:$12 sps:$4 sm:$0xff]  }
 0x96d   :  { %v12276_v7 = vadd.f32 %v4291_v2, %v4290_v50  ;;  %v9547_v50 = vld [vmem:[%s13397_s2 + $0x50] ss:$12 sps:$4 sm:$0xff]   ;;  %v9548_v2 = vld [vmem:[%s13397_s2 + $0x68] ss:$12 sps:$4 sm:$0xff]  }
 0x96f   :  { %v12280_v8 = vpack.c.bf16 %v12276_v7, %v12276_v7 }
 0x971   :  { %4711 = vmatmul.mubr.bf16.vlgmr.msra.gmra.mrb[60].mxu0 %v12280_v8  ;;  %4752 = vmatmul.mubr.bf16.vlgmr.msra.gmra.mrb[52].mxu1 %v12280_v8 }
 0x972   :  { %5120 = vmatpush1.bf16.msra.mxu1 %v11671_v19  ;;  %5151 = vmatprep.mubr.bf16.mxu1 %v13556_v6  ;;  %v13689_v19 = vld [vmem:[#allocation47_spill] sm:$0xff] }
 0x973   :  { %5121 = vmatprep.subr.bf16.mxu1 %v11680_v4  ;;  %8968 = vmatprep.mubr.msk.bf16.mxu0 %vm9960_vm2, %v13557_v49  ;;  %v13690_v4 = vld [vmem:[#allocation49_spill] sm:$0xff] }
 0x976   :  { %5122 = vmatpush1.bf16.msra.mxu1 %v11688_v27  ;;  %v13691_v27 = vld [vmem:[#allocation52_spill] sm:$0xff] }
 0x977   :  { %5123 = vmatprep.subr.bf16.mxu1 %v11695_v15  ;;  %v9536_v15 = vld [vmem:[%s13401_s7] sm:$0xff]  }
 0x978   :  { %8953 = vmatpush3.bf16.msra.mxu0 %v9536_v15  ;;  %v13700_v15 = vld [vmem:[#allocation55_spill] sm:$0xff] }
 0x979   :  { %8954 = vmatprep.subr.bf16.mxu0 %v13557_v49 }
 0x97a   :  { %5124 = vmatpush1.bf16.msra.mxu1 %v11703_v21  ;;  %v9537_v21 = vld [vmem:[%s13401_s7 + $0x8] sm:$0xff]  }
 0x97b   :  { %5125 = vmatprep.subr.bf16.mxu1 %v11709_v25  ;;  %v9538_v25 = vld [vmem:[%s13401_s7 + $0x10] sm:$0xff]  }
 0x97c   :  { %8955 = vmatpush3.bf16.msra.mxu0 %v9537_v21  ;;  %v13701_v21 = vld [vmem:[#allocation57_spill] sm:$0xff] }
 0x97d   :  { %8956 = vmatprep.subr.bf16.mxu0 %v13557_v49 }
 0x97e   :  { %5126 = vmatpush1.bf16.msra.mxu1 %v11715_v30  ;;  %v9539_v30 = vld [vmem:[%s13401_s7 + $0x18] sm:$0xff]  }
 0x97f   :  { %5127 = vmatprep.subr.bf16.mxu1 %v11721_v10  ;;  %v9540_v10 = vld [vmem:[%s13401_s7 + $0x20] sm:$0xff]  }
 0x980   :  { %8957 = vmatpush3.bf16.msra.mxu0 %v9538_v25  ;;  %v13702_v25 = vld [vmem:[#allocation59_spill] sm:$0xff] }
 0x981   :  { %8958 = vmatprep.subr.bf16.mxu0 %v13557_v49 }
 0x982   :  { %5128 = vmatpush1.bf16.msra.mxu1 %v11727_v14  ;;  %v9541_v14 = vld [vmem:[%s13401_s7 + $0x28] sm:$0xff]  }
 0x983   :  { %5129 = vmatprep.subr.bf16.mxu1 %v11733_v18  ;;  %v9542_v18 = vld [vmem:[%s13401_s7 + $0x30] sm:$0xff]  }
 0x984   :  { %8959 = vmatpush3.bf16.msra.mxu0 %v9539_v30  ;;  %v13703_v30 = vld [vmem:[#allocation3_spill] sm:$0xff] }
 0x985   :  { %8960 = vmatprep.subr.bf16.mxu0 %v13557_v49 }
 0x986   :  { %5130 = vmatpush1.bf16.msra.mxu1 %v11739_v36  ;;  %v9543_v36 = vld [vmem:[%s13401_s7 + $0x38] sm:$0xff]  }
 0x987   :  { %5131 = vmatprep.subr.bf16.mxu1 %v11745_v40 }
 0x988   :  { %8961 = vmatpush3.bf16.msra.mxu0 %v9540_v10  ;;  %v13704_v10 = vld [vmem:[#allocation4_spill] sm:$0xff] }
 0x989   :  { %8962 = vmatprep.subr.bf16.mxu0 %v13557_v49 }
 0x98a   :  { %5132 = vmatpush1.bf16.msra.mxu1 %v11751_v24 }
 0x98b   :  { %5133 = vmatprep.subr.bf16.mxu1 %v11757_v57  ;;  %v13692_v57 = vld [vmem:[#allocation18_spill] sm:$0xff] }
 0x98c   :  { %8963 = vmatpush3.bf16.msra.mxu0 %v9541_v14  ;;  %v13705_v14 = vld [vmem:[#allocation22_spill] sm:$0xff] }
 0x98d   :  { %8964 = vmatprep.subr.bf16.mxu0 %v13557_v49 }
 0x98e   :  { %5134 = vmatpush1.bf16.msra.mxu1 %v11763_v45 }
 0x98f   :  { %5607 = vmatprep.subr.bf16.mxu1 %v11808_v26 }
 0x990   :  { %8965 = vmatpush3.bf16.msra.mxu0 %v9542_v18  ;;  %v13706_v18 = vld [vmem:[#allocation23_spill] sm:$0xff] }
 0x991   :  { %5152 = vmatmul.mubr.bf16.vlgmr.msra.gmra.mrb[56].mxu1 %v12280_v8  ;;  %8966 = vmatprep.subr.bf16.mxu0 %v13557_v49 }
 0x992   :  { %5608 = vmatpush1.bf16.msra.mxu1 %v11803_v16 }
 0x993   :  { %5609 = vmatprep.subr.bf16.mxu1 %v11813_v23 }
 0x994   :  { %8967 = vmatpush3.bf16.msra.mxu0 %v9543_v36  ;;  %v13707_v36 = vld [vmem:[#allocation24_spill] sm:$0xff] }
 0x995   :  { %8972 = vmatprep.subr.bf16.mxu0 %v13557_v49 }
 0x996   :  { %5610 = vmatpush1.bf16.msra.mxu1 %v11820_v53 }
 0x997   :  { %5611 = vmatprep.subr.bf16.mxu1 %v11826_v31 }
 0x99a   :  { %5612 = vmatpush1.bf16.msra.mxu1 %v11832_v35 }
 0x99b   :  { %5613 = vmatprep.subr.bf16.mxu1 %v11934_v11  ;;  %v13693_v11 = vld [vmem:[#allocation19_spill] sm:$0xff] }
 0x99e   :  { %5614 = vmatpush1.bf16.msra.mxu1 %v11940_v12 }
 0x99f   :  { %5615 = vmatprep.subr.bf16.mxu1 %v11958_v22 }
 0x9a2   :  { %5616 = vmatpush1.bf16.msra.mxu1 %v11964_v3 }
 0x9a3   :  { %5617 = vmatprep.subr.bf16.mxu1 %v11982_v58 }
 0x9a6   :  { %5618 = vmatpush1.bf16.msra.mxu1 %v11988_v41 }
 0x9a7   :  { %5619 = vmatprep.subr.bf16.mxu1 %v12006_v56 }
 0x9aa   :  { %5620 = vmatpush1.bf16.msra.mxu1 %v12012_v48 }
 0x9ab   :  { %5621 = vmatprep.subr.bf16.mxu1 %v12030_v62  ;;  %v13696_v62 = vld [vmem:[#allocation8_spill] sm:$0xff] }
 0x9ae   :  { %5622 = vmatpush1.bf16.msra.mxu1 %v12036_v61 }
 0x9af   :  { %5623 = vmatprep.subr.bf16.mxu1 %v12054_v42 }
 0x9b2   :  { %5624 = vmatpush1.bf16.msra.mxu1 %v12060_v9 }
 0x9b3   :  { %5625 = vmatprep.subr.bf16.mxu1 %v12078_v0 }
 0x9b6   :  { %5626 = vmatpush1.bf16.msra.mxu1 %v12084_v39  ;;  %v13697_v39 = vld [vmem:[#allocation10_spill] sm:$0xff] }
 0x9b7   :  { %5627 = vmatprep.subr.bf16.mxu1 %v12103_v52  ;;  %v13695_v52 = vld [vmem:[#allocation21_spill] sm:$0xff] }
 0x9ba   :  { %5628 = vmatpush1.bf16.msra.mxu1 %v12108_v5 }
 0x9bb   :  { %5629 = vmatprep.subr.bf16.mxu1 %v12126_v63 }
 0x9be   :  { %5630 = vmatpush1.bf16.msra.mxu1 %v12132_v38 }
 0x9bf   :  { %5631 = vmatprep.subr.bf16.mxu1 %v12150_v44 }
 0x9c2   :  { %5632 = vmatpush1.bf16.msra.mxu1 %v12156_v28  ;;  %v13694_v28 = vld [vmem:[#allocation20_spill] sm:$0xff] }
 0x9c3   :  { %5633 = vmatprep.subr.bf16.mxu1 %v12173_v54 }
 0x9c6   :  { %5634 = vmatpush1.bf16.msra.mxu1 %v12180_v1 }
 0x9c7   :  { %5635 = vmatprep.subr.bf16.mxu1 %v13688_v55  ;;  %v9549_v55 = vld [vmem:[%s13397_s2 + $0x80] ss:$12 sps:$4 sm:$0xff]  }
 0x9ca   :  { %5636 = vmatpush1.bf16.msra.mxu1 %v13689_v19  ;;  %v9550_v19 = vld [vmem:[%s13397_s2 + $0x98] ss:$12 sps:$4 sm:$0xff]  }
 0x9cb   :  { %5637 = vmatprep.subr.bf16.mxu1 %v13690_v4  ;;  %v9551_v4 = vld [vmem:[%s13397_s2 + $0xb0] ss:$12 sps:$4 sm:$0xff]  }
 0x9ce   :  { %5638 = vmatpush1.bf16.msra.mxu1 %v13691_v27  ;;  %v13699_v27 = vld [vmem:[#allocation53_spill] sm:$0xff] }
 0x9cf   :  { %8992 = vmatprep.subr.bf16.mxu1 %v13557_v49 }
 0xa44   :  { %v4712_v40 = vpop.f32.mrb[60].mxu0  ;;  %v4753_v24 = vpop.f32.mrb[52].mxu1 }
 0xa45   :  { %v4713_v45 = vadd.f32 %v4712_v40, %v13692_v57  ;;  %v4714_v16 = vpop.f32.mrb[61].mxu0  ;;  %v4755_v26 = vpop.f32.mrb[53].mxu1  ;;  %v4754_v56 = vadd.f32 %v4753_v24, %v13695_v52  ;;  %v13708_v40 = vld [vmem:[#allocation25_spill] sm:$0xff]  ;;  %v13710_v24 = vld [vmem:[#allocation27_spill] sm:$0xff] }
 0xa46   :  { %v4716_v23 = vpop.f32.mrb[62].mxu0  ;;  %v4757_v53 = vpop.f32.mrb[54].mxu1  ;;  %v4715_v12 = vadd.f32 %v4714_v16, %v13693_v11  ;;  %v4756_v58 = vadd.f32 %v4755_v26, %v13694_v28  ;;  %v13712_v16 = vld [vmem:[#allocation29_spill] sm:$0xff]  ;;  %v13713_v26 = vld [vmem:[#allocation30_spill] sm:$0xff] }
 0xa47   :  { %v8282_v31 = vmul.f32 -1.442695, %v4713_v45  ;;  %v4717_v35 = vpop.f32.mrb[63].mxu0  ;;  %v4758_v1 = vpop.f32.mrb[55].mxu1  ;;  %v13711_v45 = vld [vmem:[#allocation28_spill] sm:$0xff]  ;;  %v13714_v23 = vld [vmem:[#allocation31_spill] sm:$0xff] }
 0xa48   :  { %v8283_v44 = vmul.f32 -1.442695, %v4715_v12  ;;  %v13715_v53 = vld [vmem:[#allocation32_spill] sm:$0xff]  ;;  %v13717_v35 = vld [vmem:[#allocation34_spill] sm:$0xff]  ;;  %v13718_v1 = vld [vmem:[#allocation35_spill] sm:$0xff] }
 0xa49   :  { %9818 = vpow2.f32 %v8282_v31  ;;  %v13716_v31 = vld [vmem:[#allocation33_spill] sm:$0xff]  ;;  %v13719_v12 = vld [vmem:[#allocation36_spill] sm:$0xff] }
 0xa4a   :  { %9820 = vpow2.f32 %v8283_v44  ;;  %v13720_v44 = vld [vmem:[#allocation37_spill] sm:$0xff] }
 0xa53   :  { %v9819_v54 = vpop.eup %9818 }
 0xa54   :  { %v4763_v22 = vadd.f32 1.0, %v9819_v54  ;;  %v9821_v3 = vpop.eup %9820  ;;  %v13721_v54 = vld [vmem:[#allocation38_spill] sm:$0xff] }
 0xa55   :  { %v4769_v63 = vadd.f32 1.0, %v9821_v3  ;;  %v13723_v3 = vld [vmem:[#allocation40_spill] sm:$0xff] }
 0xa56   :  { %9822 = vrcp.f32 %v4763_v22  ;;  %v13722_v22 = vld [vmem:[#allocation39_spill] sm:$0xff] }
 0xa57   :  { %9824 = vrcp.f32 %v4769_v63  ;;  %v13724_v63 = vld [vmem:[#allocation41_spill] sm:$0xff] }
 0xa60   :  { %v9823_v41 = vpop.eup %9822 }
 0xa61   :  { %v4772_v48 = vmul.f32 %v9823_v41, %v4756_v58  ;;  %v9825_v32 = vpop.eup %9824  ;;  %v13725_v58 = vld [vmem:[#allocation42_spill] sm:$0xff]  ;;  %v13726_v41 = vld [vmem:[#allocation43_spill] sm:$0xff] }
 0xa62   :  { %v4775_v29 = vsub.f32 1.0, %v9825_v32  ;;  %v4777_v17 = vmul.f32 %v9825_v32, %v13698_v43 }
 0xa63   :  { %v4773_v0 = vadd.f32 %v4772_v48, %v4754_v56  ;;  %v13727_v56 = vld [vmem:[#allocation44_spill] sm:$0xff]  ;;  %v13728_v48 = vld [vmem:[#allocation46_spill] sm:$0xff] }
 0xa64   :  { %v5153_v38 = vpop.f32.mrb[56].mxu1 }
 0xa65   :  { %9826 = vtanh.f32 %v4773_v0  ;;  %v12373_v61 = vadd.f32 %v5153_v38, %v13696_v62  ;;  %v5155_v5 = vpop.f32.mrb[57].mxu1  ;;  %v13729_v0 = vld [vmem:[#allocation48_spill] sm:$0xff]  ;;  %v13730_v38 = vld [vmem:[#allocation50_spill] sm:$0xff]  ;;  %v12452_v62 = vld [vmem:[%s13397_s2 + $0x4] ss:$12 sps:$4 sm:$0xff]  }
 0xa66   :  { %v12376_v42 = vadd.f32 %v5155_v5, %v13697_v39  ;;  %v5157_v9 = vpop.f32.mrb[58].mxu1  ;;  %v12458_v39 = vld [vmem:[%s13403_s8] ss:$0 sm:$0xff] }
 0xa67   :  { %v5158_v13 = vpop.f32.mrb[59].mxu1 }
 0xa6f   :  { %v9827_v33 = vpop.eup %9826 }
 0xa70   :  { %v4776_v20 = vmul.f32 %v9827_v33, %v4775_v29 }
 0xa72   :  { %v12379_v51 = vadd.f32 %v4777_v17, %v4776_v20  ;;  %v8321_v20 = vmul.f32 -1.442695, %v12373_v61  ;;  %v8322_v17 = vmul.f32 -1.442695, %v12376_v42 }
 0xa74   :  { %v4779_v37 = vpack.c.bf16 %v12379_v51, %v12379_v51 }
 0xa76   :  { %8969 = vmatmul.mubr.bf16.vlgmr.msra.gmra.mrb[64].mxu0 %v4779_v37  ;;  %5639 = vmatprep.mubr.bf16.mxu1 %v4779_v37 }
 0xa77   :  { %8973 = vmatpush3.bf16.msra.mxu0 %v9544_v34  ;;  %8988 = vmatprep.mubr.msk.bf16.mxu0 %vm9960_vm2, %v13557_v49 }
 0xa78   :  { %8974 = vmatprep.subr.bf16.mxu0 %v13557_v49 }
 0xa7b   :  { %8975 = vmatpush3.bf16.msra.mxu0 %v9545_v47 }
 0xa7c   :  { %8976 = vmatprep.subr.bf16.mxu0 %v13557_v49 }
 0xa7f   :  { %8977 = vmatpush3.bf16.msra.mxu0 %v9546_v46 }
 0xa80   :  { %8978 = vmatprep.subr.bf16.mxu0 %v13557_v49 }
 0xa83   :  { %8979 = vmatpush3.bf16.msra.mxu0 %v9547_v50 }
 0xa84   :  { %8980 = vmatprep.subr.bf16.mxu0 %v13557_v49 }
 0xa87   :  { %8981 = vmatpush3.bf16.msra.mxu0 %v9548_v2 }
 0xa88   :  { %8982 = vmatprep.subr.bf16.mxu0 %v13557_v49 }
 0xa8b   :  { %8983 = vmatpush3.bf16.msra.mxu0 %v9549_v55 }
 0xa8c   :  { %8984 = vmatprep.subr.bf16.mxu0 %v13557_v49 }
 0xa8f   :  { %8985 = vmatpush3.bf16.msra.mxu0 %v9550_v19 }
 0xa90   :  { %8986 = vmatprep.subr.bf16.mxu0 %v13557_v49 }
 0xa93   :  { %8987 = vmatpush3.bf16.msra.mxu0 %v9551_v4 }
 0xa94   :  { %5648 = vmatprep.subr.bf16.mxu0 %v13699_v27 }
 0xa96   :  { %8989 = vmatmul.mubr.bf16.vlgmr.msra.gmra.mrb[68].mxu0 %v12280_v8  ;;  %v13709_v8 = vld [vmem:[#allocation26_spill] sm:$0xff] }
 0xa97   :  { %5680 = vmatprep.mubr.bf16.mxu0 %v4779_v37  ;;  %5649 = vmatpush1.bf16.msra.mxu0 %v13700_v15 }
 0xa98   :  { %5650 = vmatprep.subr.bf16.mxu0 %v13701_v21 }
 0xa9b   :  { %5651 = vmatpush1.bf16.msra.mxu0 %v13702_v25 }
 0xa9c   :  { %5652 = vmatprep.subr.bf16.mxu0 %v13703_v30 }
 0xa9f   :  { %5653 = vmatpush1.bf16.msra.mxu0 %v13704_v10 }
 0xaa0   :  { %5654 = vmatprep.subr.bf16.mxu0 %v13705_v14 }
 0xaa3   :  { %5655 = vmatpush1.bf16.msra.mxu0 %v13706_v18 }
 0xaa4   :  { %5656 = vmatprep.subr.bf16.mxu0 %v13707_v36 }
 0xaa7   :  { %5657 = vmatpush1.bf16.msra.mxu0 %v13708_v40 }
 0xaa8   :  { %5658 = vmatprep.subr.bf16.mxu0 %v13709_v8 }
 0xaab   :  { %5659 = vmatpush1.bf16.msra.mxu0 %v13710_v24 }
 0xaac   :  { %5660 = vmatprep.subr.bf16.mxu0 %v13711_v45 }
 0xaaf   :  { %5661 = vmatpush1.bf16.msra.mxu0 %v13712_v16 }
 0xab0   :  { %5662 = vmatprep.subr.bf16.mxu0 %v13713_v26 }
 0xab3   :  { %5663 = vmatpush1.bf16.msra.mxu0 %v13714_v23 }
 0xab4   :  { %5664 = vmatprep.subr.bf16.mxu0 %v13715_v53 }
 0xab7   :  { %5665 = vmatpush1.bf16.msra.mxu0 %v13716_v31 }
 0xab8   :  { %5666 = vmatprep.subr.bf16.mxu0 %v13717_v35 }
 0xabb   :  { %5667 = vmatpush1.bf16.msra.mxu0 %v13718_v1 }
 0xabc   :  { %5668 = vmatprep.subr.bf16.mxu0 %v13719_v12 }
 0xabf   :  { %5669 = vmatpush1.bf16.msra.mxu0 %v13720_v44 }
 0xac0   :  { %5670 = vmatprep.subr.bf16.mxu0 %v13721_v54  ;;  %v12501_v54 = vld [vmem:[%s13397_s2] ss:$12 sps:$4 sm:$0xff]  }
 0xac3   :  { %5671 = vmatpush1.bf16.msra.mxu0 %v13722_v22 }
 0xac4   :  { %5672 = vmatprep.subr.bf16.mxu0 %v13723_v3  ;;  %v12510_v3 = vld [vmem:[%s13397_s2 + $0x1c] ss:$12 sps:$4 sm:$0xff]  }
 0xac7   :  { %5673 = vmatpush1.bf16.msra.mxu0 %v13724_v63  ;;  %v12525_v63 = vld [vmem:[%s13397_s2 + $0x34] ss:$12 sps:$4 sm:$0xff]  }
 0xac8   :  { %5674 = vmatprep.subr.bf16.mxu0 %v13725_v58  ;;  %v12533_v58 = vld [vmem:[%s13397_s2 + $0x30] ss:$12 sps:$4 sm:$0xff]  }
 0xacb   :  { %5675 = vmatpush1.bf16.msra.mxu0 %v13726_v41  ;;  %v12539_v41 = vld [vmem:[%s13397_s2 + $0x4c] ss:$12 sps:$4 sm:$0xff]  }
 0xacc   :  { %5676 = vmatprep.subr.bf16.mxu0 %v13727_v56  ;;  %v12545_v56 = vld [vmem:[%s13397_s2 + $0x48] ss:$12 sps:$4 sm:$0xff]  }
 0xacf   :  { %5677 = vmatpush1.bf16.msra.mxu0 %v13728_v48  ;;  %v12551_v48 = vld [vmem:[%s13397_s2 + $0x64] ss:$12 sps:$4 sm:$0xff]  }
 0xad0   :  { %5678 = vmatprep.subr.bf16.mxu0 %v13729_v0  ;;  %v12557_v0 = vld [vmem:[%s13397_s2 + $0x60] ss:$12 sps:$4 sm:$0xff]  }
 0xad3   :  { %5679 = vmatpush1.bf16.msra.mxu0 %v13730_v38  ;;  %v12563_v38 = vld [vmem:[%s13397_s2 + $0x7c] ss:$12 sps:$4 sm:$0xff]  }
 0xad4   :  { %6048 = vmatprep.subr.bf16.mxu0 %v12452_v62 }
 0xb49   :  { %v4878_v5 = vpop.f32.mrb[64].mxu0 }
 0xb4a   :  { %v4879_v9 = vadd.f32 %v12458_v39, %v4878_v5  ;;  %v8970_v13 = vpop.f32.mrb[65].mxu0  ;;  %v12569_v5 = vld [vmem:[%s13397_s2 + $0x78] ss:$12 sps:$4 sm:$0xff]  }
 0xb4b   :  { %v4881_v32 = vpop.f32.mrb[66].mxu0  ;;  %v12581_v13 = vld [vmem:[%s13397_s2 + $0x90] ss:$12 sps:$4 sm:$0xff]  }
 0xb4c   :  { %v8292_v29 = vmul.f32 -1.442695, %v4879_v9  ;;  %v8971_v33 = vpop.f32.mrb[67].mxu0  ;;  %v12575_v9 = vld [vmem:[%s13397_s2 + $0x94] ss:$12 sps:$4 sm:$0xff]  }
 0xb4d   :  { %v12587_v32 = vld [vmem:[%s13397_s2 + $0xac] ss:$12 sps:$4 sm:$0xff]   ;;  %v9576_v33 = vld [vmem:[%s13401_s7] sm:$0xff]  }
 0xb4e   :  { %9828 = vpow2.f32 %v8292_v29  ;;  %v12593_v29 = vld [vmem:[%s13397_s2 + $0xa8] ss:$12 sps:$4 sm:$0xff]  }
 0xb4f   :  { %9830 = vpow2.f32 %v8321_v20  ;;  %v9577_v20 = vld [vmem:[%s13401_s7 + $0x8] sm:$0xff]  }
 0xb58   :  { %v9829_v43 = vpop.eup %9828 }
 0xb59   :  { %v4887_v34 = vadd.f32 1.0, %v9829_v43  ;;  %v9831_v37 = vpop.eup %9830  ;;  %v9578_v43 = vld [vmem:[%s13401_s7 + $0x10] sm:$0xff]  }
 0xb5a   :  { %v5204_v47 = vadd.f32 1.0, %v9831_v37  ;;  %v9581_v37 = vld [vmem:[%s13401_s7 + $0x28] sm:$0xff]  }
 0xb5b   :  { %9832 = vrcp.f32 %v4887_v34  ;;  %v9580_v34 = vld [vmem:[%s13401_s7 + $0x20] sm:$0xff]  }
 0xb5c   :  { %9834 = vpow2.f32 %v8322_v17  ;;  %v9579_v17 = vld [vmem:[%s13401_s7 + $0x18] sm:$0xff]  }
 0xb5d   :  { %9836 = vrcp.f32 %v5204_v47  ;;  %v9582_v47 = vld [vmem:[%s13401_s7 + $0x30] sm:$0xff]  }
 0xb65   :  { %v9833_v46 = vpop.eup %9832 }
 0xb66   :  { %v9835_v50 = vpop.eup %9834  ;;  %v4891_v2 = vcombine.high %v9833_v46, %v9833_v46  ;;  %v4898_v55 = vrot.slane %v9833_v46, %v10801_v59  ;;  %v9583_v46 = vld [vmem:[%s13401_s7 + $0x38] sm:$0xff]  }
 0xb67   :  { %v5211_v42 = vadd.f32 1.0, %v9835_v50  ;;  %v9837_v36 = vpop.eup %9836  ;;  %v12633_v50 = vld [vmem:[%s13398_s5] ss:$16 sps:$4 sm:$0xff]  }
 0xb68   :  { %v4905_v19 = vrot.slane %v4891_v2, %v10801_v59  ;;  %v4906_v4 = vcombine.high %v4898_v55, %v4898_v55  ;;  %v4914_v61 = vrot.slane %v4898_v55, %v10801_v59  ;;  %8293 = vst.sshfl [vmem:[%s13404_s9 + $0x4] sm:$0x1 pattern:$0x73625140] %v4898_v55  ;;  %v12638_v2 = vld [vmem:[%s13398_s5 + $0x4] ss:$16 sps:$4 sm:$0xff]  }
 0xb69   :  { %v5194_v27 = vpop.f32.mrb[68].mxu0  ;;  %9838 = vrcp.f32 %v5211_v42  ;;  %v12643_v55 = vld [vmem:[%s13398_s5 + $0x24] ss:$16 sps:$4 sm:$0xff]  }
 0xb6a   :  { %v4907_v15 = vcombine.high %v4905_v19, %v4905_v19  ;;  %v4921_v21 = vrot.slane %v4905_v19, %v10801_v59  ;;  %v4928_v25 = vrot.slane %v4906_v4, %v10801_v59  ;;  %v4936_v30 = vcombine.high %v4914_v61, %v4914_v61  ;;  %8294 = vst.sshfl [vmem:[%s13404_s9 + $0xc] sm:$0x1 pattern:$0x73625140] %v4906_v4  ;;  %v8990_v10 = vpop.f32.mrb[69].mxu0 }
 0xb6b   :  { %8295 = vst.sshfl [vmem:[%s13404_s9 + $0x24] sm:$0x1 pattern:$0x73625140] %v4905_v19  ;;  %v5214_v14 = vadd.f32 %v12255_v60, %v5194_v27  ;;  %v5197_v18 = vpop.f32.mrb[70].mxu0  ;;  %v13731_v60 = vld [vmem:[#allocation13_spill] sm:$0xff] }
 0xb6c   :  { %v4935_v40 = vrot.slane %v4907_v15, %v10801_v59  ;;  %v4937_v8 = vcombine.high %v4921_v21, %v4921_v21  ;;  %v4938_v24 = vcombine.high %v4928_v25, %v4928_v25  ;;  %4950 = vst [vmem:[%s13404_s9 + $0x14] sm:$0x1] %v4936_v30  ;;  %8296 = vst.sshfl [vmem:[%s13404_s9 + $0x2c] sm:$0x1 pattern:$0x73625140] %v4907_v15 }
 0xb6d   :  { %v8991_v45 = vpop.f32.mrb[71].mxu0  ;;  %v5215_v16 = vmul.f32 %v9837_v36, %v5214_v14  ;;  %v12650_v19 = vld [vmem:[%s13398_s5 + $0x20] ss:$16 sps:$4 sm:$0xff]   ;;  %v12656_v4 = vld [vmem:[%s13398_s5 + $0x44] ss:$16 sps:$4 sm:$0xff]  }
 0xb6e   :  { %v4939_v26 = vcombine.high %v4935_v40, %v4935_v40  ;;  %4951 = vst [vmem:[%s13404_s9 + $0x1c] sm:$0x1] %v4938_v24  ;;  %4954 = vst [vmem:[%s13404_s9 + $0x34] sm:$0x1] %v4937_v8  ;;  %v12662_v61 = vld [vmem:[%s13398_s5 + $0x40] ss:$16 sps:$4 sm:$0xff]  }
 0xb6f   :  { %v5216_v23 = vadd.f32 %v5215_v16, %v13731_v60 }
 0xb70   :  { %4955 = vst [vmem:[%s13404_s9 + $0x3c] sm:$0x1] %v4939_v26 }
 0xb71   :  { %9840 = vtanh.f32 %v5216_v23 }
 0xb73   :  { %v9839_v53 = vpop.eup %9838 }
 0xb74   :  { %v5218_v31 = vsub.f32 1.0, %v9839_v53  ;;  %v5220_v12 = vmul.f32 %v9839_v53, %v12276_v7  ;;  %v12518_v7 = vld [vmem:[%s13397_s2 + $0x18] ss:$12 sps:$4 sm:$0xff]  }
 0xb7b   :  { %v9841_v35 = vpop.eup %9840 }
 0xb7c   :  { %v5219_v1 = vmul.f32 %v9841_v35, %v5218_v31 }
 0xb7e   :  { %v12496_v44 = vadd.f32 %v5220_v12, %v5219_v1  ;;  %v13732_v12 = vld [vmem:[#allocation14_spill] sm:$0xff] }
 0xb80   :  { %v12505_v22 = vpack.c.bf16 %v12496_v44, %v12496_v44 }
 0xb82   :  { %5640 = vmatmul.mubr.bf16.vlgmr.msra.gmra.mrb[60].mxu1 %v12505_v22  ;;  %5681 = vmatmul.mubr.bf16.vlgmr.msra.gmra.mrb[72].mxu0 %v12505_v22 }
 0xb83   :  { %6049 = vmatpush1.bf16.msra.mxu0 %v12501_v54  ;;  %6080 = vmatprep.mubr.bf16.mxu0 %v13556_v6 }
 0xb84   :  { %6050 = vmatprep.subr.bf16.mxu0 %v12510_v3  ;;  %9008 = vmatprep.mubr.msk.bf16.mxu1 %vm9960_vm2, %v13557_v49 }
 0xb85   :  { %8993 = vmatpush3.bf16.msra.mxu1 %v9576_v33 }
 0xb86   :  { %8994 = vmatprep.subr.bf16.mxu1 %v13557_v49 }
 0xb87   :  { %6051 = vmatpush1.bf16.msra.mxu0 %v12518_v7 }
 0xb88   :  { %6052 = vmatprep.subr.bf16.mxu0 %v12525_v63 }
 0xb89   :  { %8995 = vmatpush3.bf16.msra.mxu1 %v9577_v20 }
 0xb8a   :  { %8996 = vmatprep.subr.bf16.mxu1 %v13557_v49 }
 0xb8b   :  { %6053 = vmatpush1.bf16.msra.mxu0 %v12533_v58 }
 0xb8c   :  { %6054 = vmatprep.subr.bf16.mxu0 %v12539_v41 }
 0xb8d   :  { %8997 = vmatpush3.bf16.msra.mxu1 %v9578_v43  ;;  %v13733_v43 = vld [vmem:[#allocation15_spill] sm:$0xff] }
 0xb8e   :  { %8998 = vmatprep.subr.bf16.mxu1 %v13557_v49 }
 0xb8f   :  { %6055 = vmatpush1.bf16.msra.mxu0 %v12545_v56 }
 0xb90   :  { %6056 = vmatprep.subr.bf16.mxu0 %v12551_v48 }
 0xb91   :  { %8999 = vmatpush3.bf16.msra.mxu1 %v9579_v17 }
 0xb92   :  { %9000 = vmatprep.subr.bf16.mxu1 %v13557_v49 }
 0xb93   :  { %6057 = vmatpush1.bf16.msra.mxu0 %v12557_v0 }
 0xb94   :  { %6058 = vmatprep.subr.bf16.mxu0 %v12563_v38 }
 0xb95   :  { %9001 = vmatpush3.bf16.msra.mxu1 %v9580_v34 }
 0xb96   :  { %9002 = vmatprep.subr.bf16.mxu1 %v13557_v49 }
 0xb97   :  { %6059 = vmatpush1.bf16.msra.mxu0 %v12569_v5 }
 0xb98   :  { %6060 = vmatprep.subr.bf16.mxu0 %v12575_v9 }
 0xb99   :  { %9003 = vmatpush3.bf16.msra.mxu1 %v9581_v37 }
 0xb9a   :  { %9004 = vmatprep.subr.bf16.mxu1 %v13557_v49 }
 0xb9b   :  { %6061 = vmatpush1.bf16.msra.mxu0 %v12581_v13 }
 0xb9c   :  { %6062 = vmatprep.subr.bf16.mxu0 %v12587_v32 }
 0xb9d   :  { %9005 = vmatpush3.bf16.msra.mxu1 %v9582_v47 }
 0xb9e   :  { %9006 = vmatprep.subr.bf16.mxu1 %v13557_v49 }
 0xb9f   :  { %6063 = vmatpush1.bf16.msra.mxu0 %v12593_v29 }
 0xba0   :  { %6536 = vmatprep.subr.bf16.mxu0 %v12638_v2 }
 0xba1   :  { %9007 = vmatpush3.bf16.msra.mxu1 %v9583_v46 }
 0xba2   :  { %6081 = vmatmul.mubr.bf16.vlgmr.msra.gmra.mrb[76].mxu0 %v12505_v22  ;;  %9012 = vmatprep.subr.bf16.mxu1 %v13557_v49 }
 0xba3   :  { %6537 = vmatpush1.bf16.msra.mxu0 %v12633_v50 }
 0xba4   :  { %6538 = vmatprep.subr.bf16.mxu0 %v12643_v55 }
 0xba7   :  { %6539 = vmatpush1.bf16.msra.mxu0 %v12650_v19 }
 0xba8   :  { %6540 = vmatprep.subr.bf16.mxu0 %v12656_v4 }
 0xbab   :  { %6541 = vmatpush1.bf16.msra.mxu0 %v12662_v61 }
 0xc55   :  { %v5641_v42 = vpop.f32.mrb[60].mxu1  ;;  %v5682_v27 = vpop.f32.mrb[72].mxu0 }
 0xc56   :  { %v5642_v15 = vadd.f32 %v5641_v42, %v13692_v57  ;;  %v5643_v21 = vpop.f32.mrb[61].mxu1  ;;  %v5684_v25 = vpop.f32.mrb[73].mxu0  ;;  %v5683_v53 = vadd.f32 %v5682_v27, %v13695_v52 }
 0xc57   :  { %v5645_v30 = vpop.f32.mrb[62].mxu1  ;;  %v5686_v10 = vpop.f32.mrb[74].mxu0  ;;  %v5644_v40 = vadd.f32 %v5643_v21, %v13693_v11  ;;  %v5685_v60 = vadd.f32 %v5684_v25, %v13694_v28  ;;  %v9584_v25 = vld [vmem:[%s13397_s2 + $0x8] ss:$12 sps:$4 sm:$0xff]  }
 0xc58   :  { %v8387_v14 = vmul.f32 -1.442695, %v5642_v15  ;;  %v5646_v18 = vpop.f32.mrb[63].mxu1  ;;  %v5687_v36 = vpop.f32.mrb[75].mxu0  ;;  %v9585_v10 = vld [vmem:[%s13397_s2 + $0x20] ss:$12 sps:$4 sm:$0xff]  }
 0xc59   :  { %v8388_v8 = vmul.f32 -1.442695, %v5644_v40  ;;  %v9588_v18 = vld [vmem:[%s13397_s2 + $0x68] ss:$12 sps:$4 sm:$0xff]   ;;  %v9589_v36 = vld [vmem:[%s13397_s2 + $0x80] ss:$12 sps:$4 sm:$0xff]  }
 0xc5a   :  { %9842 = vpow2.f32 %v8387_v14  ;;  %v9587_v14 = vld [vmem:[%s13397_s2 + $0x50] ss:$12 sps:$4 sm:$0xff]   ;;  %v9590_v40 = vld [vmem:[%s13397_s2 + $0x98] ss:$12 sps:$4 sm:$0xff]  }
 0xc5b   :  { %9844 = vpow2.f32 %v8388_v8  ;;  %v9591_v8 = vld [vmem:[%s13397_s2 + $0xb0] ss:$12 sps:$4 sm:$0xff]  }
 0xc64   :  { %v9843_v24 = vpop.eup %9842 }
 0xc65   :  { %v5692_v45 = vadd.f32 1.0, %v9843_v24  ;;  %v9845_v16 = vpop.eup %9844  ;;  %v12717_v24 = vld [vmem:[%s13398_s5 + $0xc] ss:$16 sps:$4 sm:$0xff]  }
 0xc66   :  { %v5698_v26 = vadd.f32 1.0, %v9845_v16  ;;  %13735 = vst [vmem:[#allocation56_spill] sm:$0xff] %v12717_v24  ;;  %v12728_v16 = vld [vmem:[%s13398_s5 + $0x2c] ss:$16 sps:$4 sm:$0xff]  }
 0xc67   :  { %9846 = vrcp.f32 %v5692_v45  ;;  %v12722_v45 = vld [vmem:[%s13398_s5 + $0x8] ss:$16 sps:$4 sm:$0xff]   ;;  %13737 = vst [vmem:[#allocation5_spill] sm:$0xff] %v12728_v16 }
 0xc68   :  { %9848 = vrcp.f32 %v5698_v26  ;;  %13736 = vst [vmem:[#allocation58_spill] sm:$0xff] %v12722_v45  ;;  %v12735_v26 = vld [vmem:[%s13398_s5 + $0x28] ss:$16 sps:$4 sm:$0xff]  }
 0xc69   :  { %13738 = vst [vmem:[#allocation6_spill] sm:$0xff] %v12735_v26 }
 0xc71   :  { %v9847_v23 = vpop.eup %9846 }
 0xc72   :  { %v5701_v31 = vmul.f32 %v9847_v23, %v5685_v60  ;;  %v9849_v47 = vpop.eup %9848  ;;  %v12741_v60 = vld [vmem:[%s13398_s5 + $0x4c] ss:$16 sps:$4 sm:$0xff]  }
 0xc73   :  { %v5704_v46 = vsub.f32 1.0, %v9849_v47  ;;  %v5706_v27 = vmul.f32 %v9849_v47, %v12379_v51  ;;  %v9586_v51 = vld [vmem:[%s13397_s2 + $0x38] ss:$12 sps:$4 sm:$0xff]   ;;  %13739 = vst [vmem:[#allocation7_spill] sm:$0xff] %v12741_v60  ;;  %v12754_v23 = vld [vmem:[%s13398_s5 + $0x6c] ss:$16 sps:$4 sm:$0xff]  }
 0xc74   :  { %v5702_v35 = vadd.f32 %v5701_v31, %v5683_v53  ;;  %13741 = vst [vmem:[#allocation45_spill] sm:$0xff] %v12754_v23  ;;  %v12759_v53 = vld [vmem:[%s13398_s5 + $0x68] ss:$16 sps:$4 sm:$0xff]   ;;  %v12764_v31 = vld [vmem:[%s13398_s5 + $0x64] ss:$16 sps:$4 sm:$0xff]  }
 0xc75   :  { %v6082_v1 = vpop.f32.mrb[76].mxu0  ;;  %13742 = vst [vmem:[#allocation47_spill] sm:$0xff] %v12759_v53  ;;  %6542 = vmatprep.subr.bf16.mxu0 %v12764_v31  ;;  %v12812_v47 = vld [vmem:[%s13398_s5 + $0xa4] ss:$16 sps:$4 sm:$0xff]  }
 0xc76   :  { %9850 = vtanh.f32 %v5702_v35  ;;  %v12671_v33 = vadd.f32 %v6082_v1, %v13732_v12  ;;  %v6084_v20 = vpop.f32.mrb[77].mxu0  ;;  %v12770_v35 = vld [vmem:[%s13398_s5 + $0x60] ss:$16 sps:$4 sm:$0xff]   ;;  %v12778_v1 = vld [vmem:[%s13398_s5 + $0x8c] ss:$16 sps:$4 sm:$0xff]  }
 0xc77   :  { %v12674_v17 = vadd.f32 %v6084_v20, %v13733_v43  ;;  %v6086_v34 = vpop.f32.mrb[78].mxu0  ;;  %6543 = vmatpush1.bf16.msra.mxu0 %v12770_v35  ;;  %13743 = vst [vmem:[#allocation49_spill] sm:$0xff] %v12778_v1  ;;  %v12783_v12 = vld [vmem:[%s13398_s5 + $0x88] ss:$16 sps:$4 sm:$0xff]   ;;  %v12788_v20 = vld [vmem:[%s13398_s5 + $0x84] ss:$16 sps:$4 sm:$0xff]  }
 0xc78   :  { %v6087_v37 = vpop.f32.mrb[79].mxu0  ;;  %13744 = vst [vmem:[#allocation52_spill] sm:$0xff] %v12783_v12  ;;  %v12794_v43 = vld [vmem:[%s13398_s5 + $0x80] ss:$16 sps:$4 sm:$0xff]   ;;  %6544 = vmatprep.subr.bf16.mxu0 %v12788_v20  ;;  %v12802_v34 = vld [vmem:[%s13398_s5 + $0xac] ss:$16 sps:$4 sm:$0xff]  }
 0xc79   :  { %13745 = vst [vmem:[#allocation8_spill] sm:$0xff] %v12802_v34  ;;  %v12807_v37 = vld [vmem:[%s13398_s5 + $0xa8] ss:$16 sps:$4 sm:$0xff]   ;;  %v8426_v11 = vmul.f32 -1.442695, %v12671_v33 }
 0xc7a   :  { %13746 = vst [vmem:[#allocation10_spill] sm:$0xff] %v12807_v37 }
 0xc7b   :  { %6545 = vmatpush1.bf16.msra.mxu0 %v12794_v43 }
 0xc7c   :  { %6546 = vmatprep.subr.bf16.mxu0 %v12812_v47 }
 0xc80   :  { %v9851_v42 = vpop.eup %9850 }
 0xc81   :  { %v5705_v15 = vmul.f32 %v9851_v42, %v5704_v46  ;;  %v12818_v46 = vld [vmem:[%s13398_s5 + $0xa0] ss:$16 sps:$4 sm:$0xff]   ;;  %v12826_v42 = vld [vmem:[%s13398_s5 + $0xcc] ss:$16 sps:$4 sm:$0xff]  }
 0xc82   :  { %6547 = vmatpush1.bf16.msra.mxu0 %v12818_v46  ;;  %13747 = vst [vmem:[#allocation51_spill] sm:$0xff] %v12826_v42 }
 0xc83   :  { %v12677_v21 = vadd.f32 %v5706_v27, %v5705_v15  ;;  %v12831_v15 = vld [vmem:[%s13398_s5 + $0xc8] ss:$16 sps:$4 sm:$0xff]   ;;  %v12836_v27 = vld [vmem:[%s13398_s5 + $0xc4] ss:$16 sps:$4 sm:$0xff]  }
 0xc84   :  { %13748 = vst [vmem:[#allocation53_spill] sm:$0xff] %v12831_v15  ;;  %6548 = vmatprep.subr.bf16.mxu0 %v12836_v27 }
 0xc85   :  { %13734 = vst [vmem:[#allocation54_spill] sm:$0xff] %v12677_v21  ;;  %v5708_v30 = vpack.c.bf16 %v12677_v21, %v12677_v21 }
 0xc87   :  { %9009 = vmatmul.mubr.bf16.vlgmr.msra.gmra.mrb[64].mxu1 %v5708_v30  ;;  %6568 = vmatprep.mubr.bf16.mxu0 %v5708_v30 }
 0xc88   :  { %9013 = vmatpush3.bf16.msra.mxu1 %v9584_v25  ;;  %9028 = vmatprep.mubr.msk.bf16.mxu1 %vm9960_vm2, %v13557_v49  ;;  %v12842_v25 = vld [vmem:[%s13398_s5 + $0xc0] ss:$16 sps:$4 sm:$0xff]  }
 0xc89   :  { %9014 = vmatprep.subr.bf16.mxu1 %v13557_v49  ;;  %6549 = vmatpush1.bf16.msra.mxu0 %v12842_v25 }
 0xc8c   :  { %9015 = vmatpush3.bf16.msra.mxu1 %v9585_v10  ;;  %v12855_v10 = vld [vmem:[%s13398_s5 + $0xe8] ss:$16 sps:$4 sm:$0xff]  }
 0xc8d   :  { %9016 = vmatprep.subr.bf16.mxu1 %v13557_v49  ;;  %13750 = vst [vmem:[#allocation57_spill] sm:$0xff] %v12855_v10 }
 0xc90   :  { %9017 = vmatpush3.bf16.msra.mxu1 %v9586_v51  ;;  %v12860_v51 = vld [vmem:[%s13398_s5 + $0xe4] ss:$16 sps:$4 sm:$0xff]  }
 0xc91   :  { %9018 = vmatprep.subr.bf16.mxu1 %v13557_v49  ;;  %6550 = vmatprep.subr.bf16.mxu0 %v12860_v51 }
 0xc94   :  { %9019 = vmatpush3.bf16.msra.mxu1 %v9587_v14  ;;  %v12866_v14 = vld [vmem:[%s13398_s5 + $0xe0] ss:$16 sps:$4 sm:$0xff]  }
 0xc95   :  { %9020 = vmatprep.subr.bf16.mxu1 %v13557_v49  ;;  %6551 = vmatpush1.bf16.msra.mxu0 %v12866_v14 }
 0xc98   :  { %9021 = vmatpush3.bf16.msra.mxu1 %v9588_v18  ;;  %v12874_v18 = vld [vmem:[%s13398_s5 + $0x10c] ss:$16 sps:$4 sm:$0xff]  }
 0xc99   :  { %9022 = vmatprep.subr.bf16.mxu1 %v13557_v49  ;;  %13751 = vst [vmem:[#allocation59_spill] sm:$0xff] %v12874_v18 }
 0xc9c   :  { %9023 = vmatpush3.bf16.msra.mxu1 %v9589_v36  ;;  %v12879_v36 = vld [vmem:[%s13398_s5 + $0x108] ss:$16 sps:$4 sm:$0xff]  }
 0xc9d   :  { %9024 = vmatprep.subr.bf16.mxu1 %v13557_v49  ;;  %13752 = vst [vmem:[#allocation3_spill] sm:$0xff] %v12879_v36 }
 0xca0   :  { %9025 = vmatpush3.bf16.msra.mxu1 %v9590_v40  ;;  %v12884_v40 = vld [vmem:[%s13398_s5 + $0x104] ss:$16 sps:$4 sm:$0xff]  }
 0xca1   :  { %9026 = vmatprep.subr.bf16.mxu1 %v13557_v49  ;;  %6552 = vmatprep.subr.bf16.mxu0 %v12884_v40 }
 0xca4   :  { %9027 = vmatpush3.bf16.msra.mxu1 %v9591_v8  ;;  %v12890_v8 = vld [vmem:[%s13398_s5 + $0x100] ss:$16 sps:$4 sm:$0xff]  }
 0xca5   :  { %6577 = vmatprep.subr.bf16.mxu1 %v12717_v24  ;;  %6553 = vmatpush1.bf16.msra.mxu0 %v12890_v8 }
 0xca7   :  { %9029 = vmatmul.mubr.bf16.vlgmr.msra.gmra.mrb[68].mxu1 %v12505_v22  ;;  %v12747_v22 = vld [vmem:[%s13398_s5 + $0x48] ss:$16 sps:$4 sm:$0xff]  }
 0xca8   :  { %6609 = vmatprep.mubr.bf16.mxu1 %v5708_v30  ;;  %6578 = vmatpush1.bf16.msra.mxu1 %v12722_v45  ;;  %13740 = vst [vmem:[#allocation11_spill] sm:$0xff] %v12747_v22  ;;  %v12850_v30 = vld [vmem:[%s13398_s5 + $0xec] ss:$16 sps:$4 sm:$0xff]   ;;  %v13058_v45 = vld [vmem:[%s13398_s5 + $0x1e0] ss:$16 sps:$4 sm:$0xff]  }
 0xca9   :  { %6579 = vmatprep.subr.bf16.mxu1 %v12728_v16  ;;  %13749 = vst [vmem:[#allocation55_spill] sm:$0xff] %v12850_v30  ;;  %v13039_v16 = vld [vmem:[%s13398_s5 + $0x1ec] ss:$16 sps:$4 sm:$0xff]   ;;  %13770 = vst [vmem:[#allocation38_spill] sm:$0xff] %v13058_v45 }
 0xcaa   :  { %13767 = vst [vmem:[#allocation35_spill] sm:$0xff] %v13039_v16 }
 0xcac   :  { %6580 = vmatpush1.bf16.msra.mxu1 %v12735_v26  ;;  %v13034_v26 = vld [vmem:[%s13398_s5 + $0x1c0] ss:$16 sps:$4 sm:$0xff]  }
 0xcad   :  { %6581 = vmatprep.subr.bf16.mxu1 %v12741_v60  ;;  %v13021_v60 = vld [vmem:[%s13398_s5 + $0x1c4] ss:$16 sps:$4 sm:$0xff]   ;;  %13766 = vst [vmem:[#allocation34_spill] sm:$0xff] %v13034_v26 }
 0xcae   :  { %13764 = vst [vmem:[#allocation32_spill] sm:$0xff] %v13021_v60 }
 0xcb0   :  { %6582 = vmatpush1.bf16.msra.mxu1 %v12747_v22  ;;  %v13010_v22 = vld [vmem:[%s13398_s5 + $0x1a0] ss:$16 sps:$4 sm:$0xff]  }
 0xcb1   :  { %6583 = vmatprep.subr.bf16.mxu1 %v12754_v23  ;;  %v12998_v23 = vld [vmem:[%s13398_s5 + $0x1a8] ss:$16 sps:$4 sm:$0xff]  }
 0xcb2   :  { %13762 = vst [vmem:[#allocation30_spill] sm:$0xff] %v12998_v23 }
 0xcb4   :  { %6584 = vmatpush1.bf16.msra.mxu1 %v12759_v53  ;;  %v12991_v53 = vld [vmem:[%s13398_s5 + $0x1ac] ss:$16 sps:$4 sm:$0xff]  }
 0xcb5   :  { %6585 = vmatprep.subr.bf16.mxu1 %v12778_v1  ;;  %v12980_v1 = vld [vmem:[%s13398_s5 + $0x184] ss:$16 sps:$4 sm:$0xff]   ;;  %13761 = vst [vmem:[#allocation29_spill] sm:$0xff] %v12991_v53 }
 0xcb8   :  { %6586 = vmatpush1.bf16.msra.mxu1 %v12783_v12  ;;  %v12970_v12 = vld [vmem:[%s13398_s5 + $0x18c] ss:$16 sps:$4 sm:$0xff]  }
 0xcb9   :  { %6587 = vmatprep.subr.bf16.mxu1 %v12802_v34  ;;  %v12956_v34 = vld [vmem:[%s13398_s5 + $0x164] ss:$16 sps:$4 sm:$0xff]   ;;  %13759 = vst [vmem:[#allocation27_spill] sm:$0xff] %v12970_v12 }
 0xcbc   :  { %6588 = vmatpush1.bf16.msra.mxu1 %v12807_v37  ;;  %v12951_v37 = vld [vmem:[%s13398_s5 + $0x168] ss:$16 sps:$4 sm:$0xff]  }
 0xcbd   :  { %6589 = vmatprep.subr.bf16.mxu1 %v12826_v42  ;;  %v12933_v42 = vld [vmem:[%s13398_s5 + $0x144] ss:$16 sps:$4 sm:$0xff]   ;;  %13758 = vst [vmem:[#allocation26_spill] sm:$0xff] %v12951_v37 }
 0xcc0   :  { %6590 = vmatpush1.bf16.msra.mxu1 %v12831_v15  ;;  %v12922_v15 = vld [vmem:[%s13398_s5 + $0x14c] ss:$16 sps:$4 sm:$0xff]  }
 0xcc1   :  { %6591 = vmatprep.subr.bf16.mxu1 %v12850_v30  ;;  %v12908_v30 = vld [vmem:[%s13398_s5 + $0x124] ss:$16 sps:$4 sm:$0xff]   ;;  %13755 = vst [vmem:[#allocation23_spill] sm:$0xff] %v12922_v15 }
 0xcc2   :  { %6554 = vmatprep.subr.bf16.mxu0 %v12908_v30 }
 0xcc4   :  { %6592 = vmatpush1.bf16.msra.mxu1 %v12855_v10  ;;  %v12898_v10 = vld [vmem:[%s13398_s5 + $0x12c] ss:$16 sps:$4 sm:$0xff]  }
 0xcc5   :  { %6593 = vmatprep.subr.bf16.mxu1 %v12874_v18  ;;  %13753 = vst [vmem:[#allocation4_spill] sm:$0xff] %v12898_v10  ;;  %v12903_v18 = vld [vmem:[%s13398_s5 + $0x128] ss:$16 sps:$4 sm:$0xff]  }
 0xcc6   :  { %13754 = vst [vmem:[#allocation22_spill] sm:$0xff] %v12903_v18 }
 0xcc8   :  { %6594 = vmatpush1.bf16.msra.mxu1 %v12879_v36  ;;  %v12914_v36 = vld [vmem:[%s13398_s5 + $0x120] ss:$16 sps:$4 sm:$0xff]  }
 0xcc9   :  { %6595 = vmatprep.subr.bf16.mxu1 %v12898_v10  ;;  %6555 = vmatpush1.bf16.msra.mxu0 %v12914_v36  ;;  %v12927_v10 = vld [vmem:[%s13398_s5 + $0x148] ss:$16 sps:$4 sm:$0xff]  }
 0xcca   :  { %13756 = vst [vmem:[#allocation24_spill] sm:$0xff] %v12927_v10  ;;  %6556 = vmatprep.subr.bf16.mxu0 %v12933_v42 }
 0xccc   :  { %6596 = vmatpush1.bf16.msra.mxu1 %v12903_v18  ;;  %v12938_v18 = vld [vmem:[%s13398_s5 + $0x140] ss:$16 sps:$4 sm:$0xff]  }
 0xccd   :  { %6597 = vmatprep.subr.bf16.mxu1 %v12922_v15  ;;  %6557 = vmatpush1.bf16.msra.mxu0 %v12938_v18  ;;  %v12946_v15 = vld [vmem:[%s13398_s5 + $0x16c] ss:$16 sps:$4 sm:$0xff]  }
 0xcce   :  { %13757 = vst [vmem:[#allocation25_spill] sm:$0xff] %v12946_v15  ;;  %6558 = vmatprep.subr.bf16.mxu0 %v12956_v34 }
 0xcd0   :  { %6598 = vmatpush1.bf16.msra.mxu1 %v12927_v10  ;;  %v12962_v10 = vld [vmem:[%s13398_s5 + $0x160] ss:$16 sps:$4 sm:$0xff]  }
 0xcd1   :  { %6599 = vmatprep.subr.bf16.mxu1 %v12946_v15  ;;  %6559 = vmatpush1.bf16.msra.mxu0 %v12962_v10  ;;  %v12975_v15 = vld [vmem:[%s13398_s5 + $0x188] ss:$16 sps:$4 sm:$0xff]  }
 0xcd2   :  { %13760 = vst [vmem:[#allocation28_spill] sm:$0xff] %v12975_v15  ;;  %6560 = vmatprep.subr.bf16.mxu0 %v12980_v1 }
 0xcd4   :  { %6600 = vmatpush1.bf16.msra.mxu1 %v12951_v37  ;;  %v12986_v37 = vld [vmem:[%s13398_s5 + $0x180] ss:$16 sps:$4 sm:$0xff]  }
 0xcd5   :  { %6601 = vmatprep.subr.bf16.mxu1 %v12970_v12  ;;  %v13003_v12 = vld [vmem:[%s13398_s5 + $0x1a4] ss:$16 sps:$4 sm:$0xff]   ;;  %6561 = vmatpush1.bf16.msra.mxu0 %v12986_v37 }
 0xcd6   :  { %6562 = vmatprep.subr.bf16.mxu0 %v13003_v12 }
 0xcd8   :  { %6602 = vmatpush1.bf16.msra.mxu1 %v12975_v15  ;;  %v13015_v15 = vld [vmem:[%s13398_s5 + $0x1cc] ss:$16 sps:$4 sm:$0xff]  }
 0xcd9   :  { %6603 = vmatprep.subr.bf16.mxu1 %v12991_v53  ;;  %13763 = vst [vmem:[#allocation31_spill] sm:$0xff] %v13015_v15  ;;  %v13027_v53 = vld [vmem:[%s13398_s5 + $0x1c8] ss:$16 sps:$4 sm:$0xff]   ;;  %6563 = vmatpush1.bf16.msra.mxu0 %v13010_v22 }
 0xcda   :  { %13765 = vst [vmem:[#allocation33_spill] sm:$0xff] %v13027_v53  ;;  %6564 = vmatprep.subr.bf16.mxu0 %v13021_v60 }
 0xcdc   :  { %6604 = vmatpush1.bf16.msra.mxu1 %v12998_v23  ;;  %v13045_v23 = vld [vmem:[%s13398_s5 + $0x1e4] ss:$16 sps:$4 sm:$0xff]  }
 0xcdd   :  { %6605 = vmatprep.subr.bf16.mxu1 %v13015_v15  ;;  %13768 = vst [vmem:[#allocation36_spill] sm:$0xff] %v13045_v23  ;;  %v13051_v15 = vld [vmem:[%s13398_s5 + $0x1e8] ss:$16 sps:$4 sm:$0xff]   ;;  %6565 = vmatpush1.bf16.msra.mxu0 %v13034_v26 }
 0xcde   :  { %13769 = vst [vmem:[#allocation37_spill] sm:$0xff] %v13051_v15  ;;  %6566 = vmatprep.subr.bf16.mxu0 %v13045_v23 }
 0xce0   :  { %6606 = vmatpush1.bf16.msra.mxu1 %v13027_v53 }
 0xce1   :  { %6607 = vmatprep.subr.bf16.mxu1 %v13039_v16  ;;  %6567 = vmatpush1.bf16.msra.mxu0 %v13058_v45 }
 0xce2   :  { %9032 = vmatprep.subr.bf16.mxu0 %v13557_v49 }
 0xce4   :  { %6608 = vmatpush1.bf16.msra.mxu1 %v13051_v15  ;;  %v8427_v15 = vmul.f32 -1.442695, %v12674_v17 }
 0xce5   :  { %6977 = vmatprep.subr.bf16.mxu1 %v12452_v62 }
 0xd5a   :  { %v5807_v53 = vpop.f32.mrb[64].mxu1 }
 0xd5b   :  { %v5808_v24 = vadd.f32 %v12458_v39, %v5807_v53  ;;  %v9010_v21 = vpop.f32.mrb[65].mxu1 }
 0xd5c   :  { %v5810_v16 = vpop.f32.mrb[66].mxu1 }
 0xd5d   :  { %v8397_v52 = vmul.f32 -1.442695, %v5808_v24  ;;  %v9011_v28 = vpop.f32.mrb[67].mxu1 }
 0xd5f   :  { %9852 = vpow2.f32 %v8397_v52 }
 0xd60   :  { %9854 = vpow2.f32 %v8426_v11 }
 0xd69   :  { %v9853_v57 = vpop.eup %9852 }
 0xd6a   :  { %v5816_v23 = vadd.f32 1.0, %v9853_v57  ;;  %v9855_v45 = vpop.eup %9854 }
 0xd6b   :  { %v6133_v62 = vadd.f32 1.0, %v9855_v45 }
 0xd6c   :  { %9856 = vrcp.f32 %v5816_v23 }
 0xd6d   :  { %9858 = vpow2.f32 %v8427_v15 }
 0xd6e   :  { %9860 = vrcp.f32 %v6133_v62 }
 0xd76   :  { %v9857_v26 = vpop.eup %9856 }
 0xd77   :  { %v9859_v60 = vpop.eup %9858  ;;  %v5820_v39 = vcombine.high %v9857_v26, %v9857_v26  ;;  %v5827_v21 = vrot.slane %v9857_v26, %v10801_v59 }
 0xd78   :  { %v6140_v57 = vadd.f32 1.0, %v9859_v60  ;;  %v13085_v60 = vld [vmem:[%s13400_s4] ss:$0 sm:$0xff]  ;;  %v9861_v15 = vpop.eup %9860 }
 0xd79   :  { %v5834_v28 = vrot.slane %v5820_v39, %v10801_v59  ;;  %v5835_v24 = vcombine.high %v5827_v21, %v5827_v21  ;;  %v5843_v52 = vrot.slane %v5827_v21, %v10801_v59  ;;  %8398 = vst.sshfl [vmem:[%s13404_s9 + $0x5] sm:$0x1 pattern:$0x73625140] %v5827_v21 }
 0xd7a   :  { %v6123_v11 = vpop.f32.mrb[68].mxu1  ;;  %9862 = vrcp.f32 %v6140_v57 }
 0xd7b   :  { %v5836_v33 = vcombine.high %v5834_v28, %v5834_v28  ;;  %v5850_v17 = vrot.slane %v5834_v28, %v10801_v59  ;;  %v5857_v45 = vrot.slane %v5835_v24, %v10801_v59  ;;  %v5865_v16 = vcombine.high %v5843_v52, %v5843_v52  ;;  %8399 = vst.sshfl [vmem:[%s13404_s9 + $0xd] sm:$0x1 pattern:$0x73625140] %v5835_v24  ;;  %v9030_v26 = vpop.f32.mrb[69].mxu1 }
 0xd7c   :  { %8400 = vst.sshfl [vmem:[%s13404_s9 + $0x25] sm:$0x1 pattern:$0x73625140] %v5834_v28  ;;  %v6143_v23 = vadd.f32 %v13085_v60, %v6123_v11  ;;  %v6126_v53 = vpop.f32.mrb[70].mxu1  ;;  %v13771_v11 = vld [vmem:[#allocation9_spill] sm:$0xff] }
 0xd7d   :  { %v5864_v62 = vrot.slane %v5836_v33, %v10801_v59  ;;  %v5866_v39 = vcombine.high %v5850_v17, %v5850_v17  ;;  %v5867_v21 = vcombine.high %v5857_v45, %v5857_v45  ;;  %5879 = vst [vmem:[%s13404_s9 + $0x15] sm:$0x1] %v5865_v16  ;;  %8401 = vst.sshfl [vmem:[%s13404_s9 + $0x2d] sm:$0x1 pattern:$0x73625140] %v5836_v33 }
 0xd7e   :  { %v9031_v28 = vpop.f32.mrb[71].mxu1  ;;  %v6144_v24 = vmul.f32 %v9861_v15, %v6143_v23 }
 0xd7f   :  { %v5868_v52 = vcombine.high %v5864_v62, %v5864_v62  ;;  %5880 = vst [vmem:[%s13404_s9 + $0x1d] sm:$0x1] %v5867_v21  ;;  %5883 = vst [vmem:[%s13404_s9 + $0x35] sm:$0x1] %v5866_v39  ;;  %v13782_v28 = vld [vmem:[#allocation54_spill] sm:$0xff] }
 0xd80   :  { %v6145_v17 = vadd.f32 %v6144_v24, %v13771_v11  ;;  %v9696_v11 = vld [vmem:[%s13397_s2 + $0x8] ss:$12 sps:$4 sm:$0xff]  }
 0xd81   :  { %5884 = vst [vmem:[%s13404_s9 + $0x3d] sm:$0x1] %v5868_v52 }
 0xd82   :  { %9864 = vtanh.f32 %v6145_v17 }
 0xd84   :  { %v9863_v33 = vpop.eup %9862 }
 0xd85   :  { %v6147_v45 = vsub.f32 1.0, %v9863_v33  ;;  %v6149_v26 = vmul.f32 %v9863_v33, %v12496_v44  ;;  %v13773_v44 = vld [vmem:[#allocation34_spill] sm:$0xff]  ;;  %v9697_v33 = vld [vmem:[%s13397_s2 + $0x20] ss:$12 sps:$4 sm:$0xff]  }
 0xd8c   :  { %v9865_v57 = vpop.eup %9864 }
 0xd8d   :  { %v6148_v16 = vmul.f32 %v9865_v57, %v6147_v45  ;;  %v9698_v45 = vld [vmem:[%s13397_s2 + $0x38] ss:$12 sps:$4 sm:$0xff]   ;;  %v9699_v57 = vld [vmem:[%s13397_s2 + $0x50] ss:$12 sps:$4 sm:$0xff]  }
 0xd8f   :  { %v13106_v23 = vadd.f32 %v6149_v26, %v6148_v16  ;;  %v9700_v16 = vld [vmem:[%s13397_s2 + $0x68] ss:$12 sps:$4 sm:$0xff]   ;;  %v9701_v26 = vld [vmem:[%s13397_s2 + $0x80] ss:$12 sps:$4 sm:$0xff]  }
 0xd91   :  { %v13110_v53 = vpack.c.bf16 %v13106_v23, %v13106_v23 }
 0xd93   :  { %6569 = vmatmul.mubr.bf16.vlgmr.msra.gmra.mrb[80].mxu0 %v13110_v53  ;;  %6610 = vmatmul.mubr.bf16.vlgmr.msra.gmra.mrb[72].mxu1 %v13110_v53 }
 0xd94   :  { %6978 = vmatpush1.bf16.msra.mxu1 %v12501_v54  ;;  %7009 = vmatprep.mubr.bf16.mxu1 %v13556_v6  ;;  %v13772_v6 = vld [vmem:[#allocation32_spill] sm:$0xff] }
 0xd95   :  { %6979 = vmatprep.subr.bf16.mxu1 %v12510_v3  ;;  %9048 = vmatprep.mubr.msk.bf16.mxu0 %vm9960_vm2, %v13557_v49  ;;  %v13774_v54 = vld [vmem:[#allocation36_spill] sm:$0xff]  ;;  %v13775_v3 = vld [vmem:[#allocation38_spill] sm:$0xff] }
 0xd98   :  { %6980 = vmatpush1.bf16.msra.mxu1 %v12518_v7  ;;  %v9688_v7 = vld [vmem:[%s13401_s7] sm:$0xff]  }
 0xd99   :  { %6981 = vmatprep.subr.bf16.mxu1 %v12525_v63  ;;  %9033 = vmatpush3.bf16.msra.mxu0 %v9688_v7  ;;  %v9689_v63 = vld [vmem:[%s13401_s7 + $0x8] sm:$0xff]   ;;  %v13785_v7 = vld [vmem:[#allocation5_spill] sm:$0xff] }
 0xd9a   :  { %9034 = vmatprep.subr.bf16.mxu0 %v13557_v49 }
 0xd9c   :  { %6982 = vmatpush1.bf16.msra.mxu1 %v12533_v58  ;;  %v9690_v58 = vld [vmem:[%s13401_s7 + $0x10] sm:$0xff]  }
 0xd9d   :  { %6983 = vmatprep.subr.bf16.mxu1 %v12539_v41  ;;  %9035 = vmatpush3.bf16.msra.mxu0 %v9689_v63  ;;  %v9691_v41 = vld [vmem:[%s13401_s7 + $0x18] sm:$0xff]  }
 0xd9e   :  { %9036 = vmatprep.subr.bf16.mxu0 %v13557_v49  ;;  %v13786_v63 = vld [vmem:[#allocation6_spill] sm:$0xff] }
 0xda0   :  { %6984 = vmatpush1.bf16.msra.mxu1 %v12545_v56  ;;  %v9692_v56 = vld [vmem:[%s13401_s7 + $0x20] sm:$0xff]  }
 0xda1   :  { %6985 = vmatprep.subr.bf16.mxu1 %v12551_v48  ;;  %9037 = vmatpush3.bf16.msra.mxu0 %v9690_v58  ;;  %v9693_v48 = vld [vmem:[%s13401_s7 + $0x28] sm:$0xff]   ;;  %v13787_v58 = vld [vmem:[#allocation7_spill] sm:$0xff] }
 0xda2   :  { %9038 = vmatprep.subr.bf16.mxu0 %v13557_v49 }
 0xda4   :  { %6986 = vmatpush1.bf16.msra.mxu1 %v12557_v0  ;;  %v9694_v0 = vld [vmem:[%s13401_s7 + $0x30] sm:$0xff]  }
 0xda5   :  { %6987 = vmatprep.subr.bf16.mxu1 %v12563_v38  ;;  %9039 = vmatpush3.bf16.msra.mxu0 %v9691_v41  ;;  %v9695_v38 = vld [vmem:[%s13401_s7 + $0x38] sm:$0xff]   ;;  %v13788_v41 = vld [vmem:[#allocation11_spill] sm:$0xff] }
 0xda6   :  { %9040 = vmatprep.subr.bf16.mxu0 %v13557_v49 }
 0xda8   :  { %6988 = vmatpush1.bf16.msra.mxu1 %v12569_v5 }
 0xda9   :  { %6989 = vmatprep.subr.bf16.mxu1 %v12575_v9  ;;  %9041 = vmatpush3.bf16.msra.mxu0 %v9692_v56  ;;  %v13789_v56 = vld [vmem:[#allocation45_spill] sm:$0xff] }
 0xdaa   :  { %9042 = vmatprep.subr.bf16.mxu0 %v13557_v49 }
 0xdac   :  { %6990 = vmatpush1.bf16.msra.mxu1 %v12581_v13  ;;  %v13776_v13 = vld [vmem:[#allocation18_spill] sm:$0xff] }
 0xdad   :  { %6991 = vmatprep.subr.bf16.mxu1 %v12587_v32  ;;  %9043 = vmatpush3.bf16.msra.mxu0 %v9693_v48  ;;  %v13790_v48 = vld [vmem:[#allocation47_spill] sm:$0xff] }
 0xdae   :  { %9044 = vmatprep.subr.bf16.mxu0 %v13557_v49 }
 0xdb0   :  { %6992 = vmatpush1.bf16.msra.mxu1 %v12593_v29 }
 0xdb1   :  { %7465 = vmatprep.subr.bf16.mxu1 %v12638_v2  ;;  %9045 = vmatpush3.bf16.msra.mxu0 %v9694_v0  ;;  %v13791_v0 = vld [vmem:[#allocation49_spill] sm:$0xff] }
 0xdb2   :  { %9046 = vmatprep.subr.bf16.mxu0 %v13557_v49 }
 0xdb3   :  { %7010 = vmatmul.mubr.bf16.vlgmr.msra.gmra.mrb[76].mxu1 %v13110_v53 }
 0xdb4   :  { %7466 = vmatpush1.bf16.msra.mxu1 %v12633_v50 }
 0xdb5   :  { %7467 = vmatprep.subr.bf16.mxu1 %v12643_v55  ;;  %9047 = vmatpush3.bf16.msra.mxu0 %v9695_v38  ;;  %v13792_v38 = vld [vmem:[#allocation52_spill] sm:$0xff] }
 0xdb6   :  { %9052 = vmatprep.subr.bf16.mxu0 %v13557_v49 }
 0xdb8   :  { %7468 = vmatpush1.bf16.msra.mxu1 %v12650_v19 }
 0xdb9   :  { %7469 = vmatprep.subr.bf16.mxu1 %v12656_v4 }
 0xdbc   :  { %7470 = vmatpush1.bf16.msra.mxu1 %v12662_v61 }
 0xdbd   :  { %7471 = vmatprep.subr.bf16.mxu1 %v12764_v31 }
 0xdc0   :  { %7472 = vmatpush1.bf16.msra.mxu1 %v12770_v35 }
 0xdc1   :  { %7473 = vmatprep.subr.bf16.mxu1 %v12788_v20 }
 0xdc4   :  { %7474 = vmatpush1.bf16.msra.mxu1 %v12794_v43 }
 0xdc5   :  { %7475 = vmatprep.subr.bf16.mxu1 %v12812_v47 }
 0xdc8   :  { %7476 = vmatpush1.bf16.msra.mxu1 %v12818_v46  ;;  %v13779_v46 = vld [vmem:[#allocation21_spill] sm:$0xff] }
 0xdc9   :  { %7477 = vmatprep.subr.bf16.mxu1 %v12836_v27 }
 0xdcc   :  { %7478 = vmatpush1.bf16.msra.mxu1 %v12842_v25 }
 0xdcd   :  { %7479 = vmatprep.subr.bf16.mxu1 %v12860_v51 }
 0xdd0   :  { %7480 = vmatpush1.bf16.msra.mxu1 %v12866_v14 }
 0xdd1   :  { %7481 = vmatprep.subr.bf16.mxu1 %v12884_v40 }
 0xdd4   :  { %7482 = vmatpush1.bf16.msra.mxu1 %v12890_v8 }
 0xdd5   :  { %7483 = vmatprep.subr.bf16.mxu1 %v12908_v30 }
 0xdd8   :  { %7484 = vmatpush1.bf16.msra.mxu1 %v12914_v36 }
 0xdd9   :  { %7485 = vmatprep.subr.bf16.mxu1 %v12933_v42 }
 0xddc   :  { %7486 = vmatpush1.bf16.msra.mxu1 %v12938_v18  ;;  %v13781_v18 = vld [vmem:[#allocation17_spill] sm:$0xff] }
 0xddd   :  { %7487 = vmatprep.subr.bf16.mxu1 %v12956_v34  ;;  %v13778_v34 = vld [vmem:[#allocation20_spill] sm:$0xff] }
 0xde0   :  { %7488 = vmatpush1.bf16.msra.mxu1 %v12962_v10  ;;  %v13780_v10 = vld [vmem:[#allocation16_spill] sm:$0xff] }
 0xde1   :  { %7489 = vmatprep.subr.bf16.mxu1 %v12980_v1 }
 0xde4   :  { %7490 = vmatpush1.bf16.msra.mxu1 %v12986_v37 }
 0xde5   :  { %7491 = vmatprep.subr.bf16.mxu1 %v13003_v12 }
 0xde8   :  { %7492 = vmatpush1.bf16.msra.mxu1 %v13010_v22  ;;  %v13777_v22 = vld [vmem:[#allocation19_spill] sm:$0xff] }
 0xde9   :  { %7493 = vmatprep.subr.bf16.mxu1 %v13772_v6  ;;  %v9702_v6 = vld [vmem:[%s13397_s2 + $0x98] ss:$12 sps:$4 sm:$0xff]  }
 0xdec   :  { %7494 = vmatpush1.bf16.msra.mxu1 %v13773_v44  ;;  %v9703_v44 = vld [vmem:[%s13397_s2 + $0xb0] ss:$12 sps:$4 sm:$0xff]  }
 0xded   :  { %7495 = vmatprep.subr.bf16.mxu1 %v13774_v54  ;;  %v13783_v54 = vld [vmem:[#allocation56_spill] sm:$0xff] }
 0xdf0   :  { %7496 = vmatpush1.bf16.msra.mxu1 %v13775_v3  ;;  %v13784_v3 = vld [vmem:[#allocation58_spill] sm:$0xff] }
 0xdf1   :  { %9072 = vmatprep.subr.bf16.mxu1 %v13557_v49 }
 0xe66   :  { %v6570_v5 = vpop.f32.mrb[80].mxu0  ;;  %v6611_v9 = vpop.f32.mrb[72].mxu1 }
 0xe67   :  { %v6571_v32 = vadd.f32 %v6570_v5, %v13776_v13  ;;  %v6572_v29 = vpop.f32.mrb[81].mxu0  ;;  %v6613_v50 = vpop.f32.mrb[73].mxu1  ;;  %v6612_v42 = vadd.f32 %v6611_v9, %v13779_v46  ;;  %v13794_v5 = vld [vmem:[#allocation10_spill] sm:$0xff]  ;;  %v13795_v9 = vld [vmem:[#allocation51_spill] sm:$0xff] }
 0xe68   :  { %v6574_v2 = vpop.f32.mrb[82].mxu0  ;;  %v6615_v55 = vpop.f32.mrb[74].mxu1  ;;  %v6573_v31 = vadd.f32 %v6572_v29, %v13777_v22  ;;  %v6614_v37 = vadd.f32 %v6613_v50, %v13778_v34  ;;  %v13797_v29 = vld [vmem:[#allocation55_spill] sm:$0xff]  ;;  %v13798_v50 = vld [vmem:[#allocation57_spill] sm:$0xff] }
 0xe69   :  { %v8492_v19 = vmul.f32 -1.442695, %v6571_v32  ;;  %v6575_v4 = vpop.f32.mrb[83].mxu0  ;;  %v6616_v61 = vpop.f32.mrb[75].mxu1  ;;  %v13796_v32 = vld [vmem:[#allocation53_spill] sm:$0xff]  ;;  %v13799_v2 = vld [vmem:[#allocation59_spill] sm:$0xff] }
 0xe6a   :  { %v8493_v35 = vmul.f32 -1.442695, %v6573_v31  ;;  %v13800_v55 = vld [vmem:[#allocation3_spill] sm:$0xff]  ;;  %v13802_v4 = vld [vmem:[#allocation22_spill] sm:$0xff]  ;;  %v13804_v31 = vld [vmem:[#allocation24_spill] sm:$0xff] }
 0xe6b   :  { %9866 = vpow2.f32 %v8492_v19  ;;  %v13801_v19 = vld [vmem:[#allocation4_spill] sm:$0xff]  ;;  %v13803_v61 = vld [vmem:[#allocation23_spill] sm:$0xff] }
 0xe6c   :  { %9868 = vpow2.f32 %v8493_v35  ;;  %v13805_v35 = vld [vmem:[#allocation25_spill] sm:$0xff] }
 0xe75   :  { %v9867_v1 = vpop.eup %9866 }
 0xe76   :  { %v6621_v12 = vadd.f32 1.0, %v9867_v1  ;;  %v9869_v20 = vpop.eup %9868  ;;  %v13806_v1 = vld [vmem:[#allocation26_spill] sm:$0xff] }
 0xe77   :  { %v6627_v43 = vadd.f32 1.0, %v9869_v20  ;;  %v13808_v20 = vld [vmem:[#allocation28_spill] sm:$0xff] }
 0xe78   :  { %9870 = vrcp.f32 %v6621_v12  ;;  %v13807_v12 = vld [vmem:[#allocation27_spill] sm:$0xff] }
 0xe79   :  { %9872 = vrcp.f32 %v6627_v43  ;;  %v13809_v43 = vld [vmem:[#allocation29_spill] sm:$0xff] }
 0xe82   :  { %v9871_v47 = vpop.eup %9870 }
 0xe83   :  { %v6630_v27 = vmul.f32 %v9871_v47, %v6614_v37  ;;  %v9873_v15 = vpop.eup %9872  ;;  %v13810_v37 = vld [vmem:[#allocation30_spill] sm:$0xff]  ;;  %v13811_v47 = vld [vmem:[#allocation31_spill] sm:$0xff] }
 0xe84   :  { %v6633_v62 = vsub.f32 1.0, %v9873_v15  ;;  %v6635_v24 = vmul.f32 %v9873_v15, %v13782_v28 }
 0xe85   :  { %v6631_v25 = vadd.f32 %v6630_v27, %v6612_v42  ;;  %v13812_v42 = vld [vmem:[#allocation33_spill] sm:$0xff]  ;;  %v13813_v27 = vld [vmem:[#allocation35_spill] sm:$0xff] }
 0xe86   :  { %v7011_v30 = vpop.f32.mrb[76].mxu1 }
 0xe87   :  { %9874 = vtanh.f32 %v6631_v25  ;;  %v13203_v51 = vadd.f32 %v7011_v30, %v13780_v10  ;;  %v7013_v14 = vpop.f32.mrb[77].mxu1  ;;  %v13814_v25 = vld [vmem:[#allocation37_spill] sm:$0xff]  ;;  %v13282_v10 = vld [vmem:[%s13403_s8] ss:$0 sm:$0xff] }
 0xe88   :  { %v13206_v36 = vadd.f32 %v7013_v14, %v13781_v18  ;;  %v7015_v40 = vpop.f32.mrb[78].mxu1 }
 0xe89   :  { %v7016_v8 = vpop.f32.mrb[79].mxu1 }
 0xe91   :  { %v9875_v39 = vpop.eup %9874 }
 0xe92   :  { %v6634_v21 = vmul.f32 %v9875_v39, %v6633_v62  ;;  %v8531_v62 = vmul.f32 -1.442695, %v13203_v51 }
 0xe94   :  { %v13209_v52 = vadd.f32 %v6635_v24, %v6634_v21  ;;  %v8532_v21 = vmul.f32 -1.442695, %v13206_v36 }
 0xe96   :  { %v6637_v17 = vpack.c.bf16 %v13209_v52, %v13209_v52 }
 0xe98   :  { %9049 = vmatmul.mubr.bf16.vlgmr.msra.gmra.mrb[84].mxu0 %v6637_v17  ;;  %7497 = vmatprep.mubr.bf16.mxu1 %v6637_v17 }
 0xe99   :  { %9053 = vmatpush3.bf16.msra.mxu0 %v9696_v11  ;;  %9068 = vmatprep.mubr.msk.bf16.mxu0 %vm9960_vm2, %v13557_v49 }
 0xe9a   :  { %9054 = vmatprep.subr.bf16.mxu0 %v13557_v49 }
 0xe9d   :  { %9055 = vmatpush3.bf16.msra.mxu0 %v9697_v33 }
 0xe9e   :  { %9056 = vmatprep.subr.bf16.mxu0 %v13557_v49 }
 0xea1   :  { %9057 = vmatpush3.bf16.msra.mxu0 %v9698_v45 }
 0xea2   :  { %9058 = vmatprep.subr.bf16.mxu0 %v13557_v49 }
 0xea5   :  { %9059 = vmatpush3.bf16.msra.mxu0 %v9699_v57 }
 0xea6   :  { %9060 = vmatprep.subr.bf16.mxu0 %v13557_v49 }
 0xea9   :  { %9061 = vmatpush3.bf16.msra.mxu0 %v9700_v16 }
 0xeaa   :  { %9062 = vmatprep.subr.bf16.mxu0 %v13557_v49 }
 0xead   :  { %9063 = vmatpush3.bf16.msra.mxu0 %v9701_v26 }
 0xeae   :  { %9064 = vmatprep.subr.bf16.mxu0 %v13557_v49 }
 0xeb1   :  { %9065 = vmatpush3.bf16.msra.mxu0 %v9702_v6 }
 0xeb2   :  { %9066 = vmatprep.subr.bf16.mxu0 %v13557_v49 }
 0xeb5   :  { %9067 = vmatpush3.bf16.msra.mxu0 %v9703_v44 }
 0xeb6   :  { %7506 = vmatprep.subr.bf16.mxu0 %v13783_v54 }
 0xeb8   :  { %9069 = vmatmul.mubr.bf16.vlgmr.msra.gmra.mrb[88].mxu0 %v13110_v53  ;;  %v13793_v53 = vld [vmem:[#allocation8_spill] sm:$0xff] }
 0xeb9   :  { %7538 = vmatprep.mubr.bf16.mxu0 %v6637_v17  ;;  %7507 = vmatpush1.bf16.msra.mxu0 %v13784_v3 }
 0xeba   :  { %7508 = vmatprep.subr.bf16.mxu0 %v13785_v7 }
 0xebd   :  { %7509 = vmatpush1.bf16.msra.mxu0 %v13786_v63 }
 0xebe   :  { %7510 = vmatprep.subr.bf16.mxu0 %v13787_v58 }
 0xec1   :  { %7511 = vmatpush1.bf16.msra.mxu0 %v13788_v41 }
 0xec2   :  { %7512 = vmatprep.subr.bf16.mxu0 %v13789_v56 }
 0xec5   :  { %7513 = vmatpush1.bf16.msra.mxu0 %v13790_v48 }
 0xec6   :  { %7514 = vmatprep.subr.bf16.mxu0 %v13791_v0 }
 0xec9   :  { %7515 = vmatpush1.bf16.msra.mxu0 %v13792_v38 }
 0xeca   :  { %7516 = vmatprep.subr.bf16.mxu0 %v13793_v53 }
 0xecd   :  { %7517 = vmatpush1.bf16.msra.mxu0 %v13794_v5 }
 0xece   :  { %7518 = vmatprep.subr.bf16.mxu0 %v13795_v9 }
 0xed1   :  { %7519 = vmatpush1.bf16.msra.mxu0 %v13796_v32 }
 0xed2   :  { %7520 = vmatprep.subr.bf16.mxu0 %v13797_v29 }
 0xed5   :  { %7521 = vmatpush1.bf16.msra.mxu0 %v13798_v50 }
 0xed6   :  { %7522 = vmatprep.subr.bf16.mxu0 %v13799_v2 }
 0xed9   :  { %7523 = vmatpush1.bf16.msra.mxu0 %v13800_v55 }
 0xeda   :  { %7524 = vmatprep.subr.bf16.mxu0 %v13801_v19 }
 0xedd   :  { %7525 = vmatpush1.bf16.msra.mxu0 %v13802_v4 }
 0xede   :  { %7526 = vmatprep.subr.bf16.mxu0 %v13803_v61 }
 0xee1   :  { %7527 = vmatpush1.bf16.msra.mxu0 %v13804_v31  ;;  %v9704_v31 = vld [vmem:[%s13401_s7] sm:$0xff]  }
 0xee2   :  { %7528 = vmatprep.subr.bf16.mxu0 %v13805_v35  ;;  %v9706_v35 = vld [vmem:[%s13401_s7 + $0x10] sm:$0xff]  }
 0xee5   :  { %7529 = vmatpush1.bf16.msra.mxu0 %v13806_v1  ;;  %v9707_v1 = vld [vmem:[%s13401_s7 + $0x18] sm:$0xff]  }
 0xee6   :  { %7530 = vmatprep.subr.bf16.mxu0 %v13807_v12  ;;  %v9708_v12 = vld [vmem:[%s13401_s7 + $0x20] sm:$0xff]  }
 0xee9   :  { %7531 = vmatpush1.bf16.msra.mxu0 %v13808_v20  ;;  %v9709_v20 = vld [vmem:[%s13401_s7 + $0x28] sm:$0xff]  }
 0xeea   :  { %7532 = vmatprep.subr.bf16.mxu0 %v13809_v43  ;;  %v9710_v43 = vld [vmem:[%s13401_s7 + $0x30] sm:$0xff]  }
 0xeed   :  { %7533 = vmatpush1.bf16.msra.mxu0 %v13810_v37  ;;  %v9711_v37 = vld [vmem:[%s13401_s7 + $0x38] sm:$0xff]  }
 0xeee   :  { %7534 = vmatprep.subr.bf16.mxu0 %v13811_v47 }
 0xef1   :  { %7535 = vmatpush1.bf16.msra.mxu0 %v13812_v42 }
 0xef2   :  { %7536 = vmatprep.subr.bf16.mxu0 %v13813_v27 }
 0xef5   :  { %7537 = vmatpush1.bf16.msra.mxu0 %v13814_v25 }
 0xf6b   :  { %v6736_v30 = vpop.f32.mrb[84].mxu0 }
 0xf6c   :  { %v6737_v14 = vadd.f32 %v13282_v10, %v6736_v30  ;;  %v9050_v18 = vpop.f32.mrb[85].mxu0 }
 0xf6d   :  { %v6739_v40 = vpop.f32.mrb[86].mxu0 }
 0xf6e   :  { %v8502_v8 = vmul.f32 -1.442695, %v6737_v14  ;;  %v9051_v15 = vpop.f32.mrb[87].mxu0 }
 0xf70   :  { %9876 = vpow2.f32 %v8502_v8 }
 0xf71   :  { %9878 = vpow2.f32 %v8531_v62 }
 0xf7a   :  { %v9877_v39 = vpop.eup %9876 }
 0xf7b   :  { %v6745_v28 = vadd.f32 1.0, %v9877_v39  ;;  %v9879_v24 = vpop.eup %9878 }
 0xf7c   :  { %v7062_v11 = vadd.f32 1.0, %v9879_v24 }
 0xf7d   :  { %9880 = vrcp.f32 %v6745_v28 }
 0xf7e   :  { %9882 = vpow2.f32 %v8532_v21 }
 0xf7f   :  { %9884 = vrcp.f32 %v7062_v11 }
 0xf87   :  { %v9881_v17 = vpop.eup %9880 }
 0xf88   :  { %v9883_v33 = vpop.eup %9882  ;;  %v6749_v45 = vcombine.high %v9881_v17, %v9881_v17  ;;  %v6756_v57 = vrot.slane %v9881_v17, %v10801_v59 }
 0xf89   :  { %v7069_v36 = vadd.f32 1.0, %v9883_v33  ;;  %v9885_v56 = vpop.eup %9884 }
 0xf8a   :  { %v6763_v16 = vrot.slane %v6749_v45, %v10801_v59  ;;  %v6764_v26 = vcombine.high %v6756_v57, %v6756_v57  ;;  %v6772_v51 = vrot.slane %v6756_v57, %v10801_v59  ;;  %8503 = vst.sshfl [vmem:[%s13404_s9 + $0x6] sm:$0x1 pattern:$0x73625140] %v6756_v57 }
 0xf8b   :  { %v7052_v6 = vpop.f32.mrb[88].mxu0  ;;  %9886 = vrcp.f32 %v7069_v36 }
 0xf8c   :  { %v6765_v44 = vcombine.high %v6763_v16, %v6763_v16  ;;  %v6779_v54 = vrot.slane %v6763_v16, %v10801_v59  ;;  %v6786_v3 = vrot.slane %v6764_v26, %v10801_v59  ;;  %v6794_v7 = vcombine.high %v6772_v51, %v6772_v51  ;;  %8504 = vst.sshfl [vmem:[%s13404_s9 + $0xe] sm:$0x1 pattern:$0x73625140] %v6764_v26  ;;  %v9070_v63 = vpop.f32.mrb[89].mxu0 }
 0xf8d   :  { %8505 = vst.sshfl [vmem:[%s13404_s9 + $0x26] sm:$0x1 pattern:$0x73625140] %v6763_v16  ;;  %v7072_v58 = vadd.f32 %v13085_v60, %v7052_v6  ;;  %v7055_v41 = vpop.f32.mrb[90].mxu0  ;;  %v13815_v60 = vld [vmem:[#allocation12_spill] sm:$0xff] }
 0xf8e   :  { %v6793_v48 = vrot.slane %v6765_v44, %v10801_v59  ;;  %v6795_v0 = vcombine.high %v6779_v54, %v6779_v54  ;;  %v6796_v38 = vcombine.high %v6786_v3, %v6786_v3  ;;  %6808 = vst [vmem:[%s13404_s9 + $0x16] sm:$0x1] %v6794_v7  ;;  %8506 = vst.sshfl [vmem:[%s13404_s9 + $0x2e] sm:$0x1 pattern:$0x73625140] %v6765_v44 }
 0xf8f   :  { %v9071_v53 = vpop.f32.mrb[91].mxu0  ;;  %v7073_v5 = vmul.f32 %v9885_v56, %v7072_v58 }
 0xf90   :  { %v6797_v9 = vcombine.high %v6793_v48, %v6793_v48  ;;  %6809 = vst [vmem:[%s13404_s9 + $0x1e] sm:$0x1] %v6796_v38  ;;  %6812 = vst [vmem:[%s13404_s9 + $0x36] sm:$0x1] %v6795_v0 }
 0xf91   :  { %v7074_v32 = vadd.f32 %v7073_v5, %v13815_v60 }
 0xf92   :  { %6813 = vst [vmem:[%s13404_s9 + $0x3e] sm:$0x1] %v6797_v9 }
 0xf93   :  { %9888 = vtanh.f32 %v7074_v32 }
 0xf95   :  { %v9887_v29 = vpop.eup %9886 }
 0xf96   :  { %v7076_v50 = vsub.f32 1.0, %v9887_v29  ;;  %v7078_v19 = vmul.f32 %v9887_v29, %v13106_v23  ;;  %v9705_v23 = vld [vmem:[%s13401_s7 + $0x8] sm:$0xff]  }
 0xf9d   :  { %v9889_v2 = vpop.eup %9888 }
 0xf9e   :  { %v7077_v55 = vmul.f32 %v9889_v2, %v7076_v50 }
 0xfa0   :  { %v7079_v4 = vadd.f32 %v7078_v19, %v7077_v55 }
 0xfa2   :  { %v7080_v61 = vpack.c.bf16 %v7079_v4, %v7079_v4  ;;  %7743 = vst [vmem:[%s13405_s10] sm:$0xff] %v7079_v4 }
 0xfa4   :  { %7498 = vmatmul.mubr.bf16.vlgmr.msra.gmra.mrb[80].mxu1 %v7080_v61  ;;  %7539 = vmatmul.mubr.bf16.vlgmr.msra.gmra.mrb[92].mxu0 %v7080_v61 }
 0xfa5   :  { %9088 = vmatprep.mubr.msk.bf16.mxu1 %vm9960_vm2, %v13557_v49  ;;  %9073 = vmatpush3.bf16.msra.mxu1 %v9704_v31 }
 0xfa6   :  { %9074 = vmatprep.subr.bf16.mxu1 %v13557_v49 }
 0xfa9   :  { %9075 = vmatpush3.bf16.msra.mxu1 %v9705_v23 }
 0xfaa   :  { %9076 = vmatprep.subr.bf16.mxu1 %v13557_v49 }
 0xfad   :  { %9077 = vmatpush3.bf16.msra.mxu1 %v9706_v35 }
 0xfae   :  { %9078 = vmatprep.subr.bf16.mxu1 %v13557_v49 }
 0xfb1   :  { %9079 = vmatpush3.bf16.msra.mxu1 %v9707_v1 }
 0xfb2   :  { %9080 = vmatprep.subr.bf16.mxu1 %v13557_v49 }
 0xfb5   :  { %9081 = vmatpush3.bf16.msra.mxu1 %v9708_v12 }
 0xfb6   :  { %9082 = vmatprep.subr.bf16.mxu1 %v13557_v49 }
 0xfb9   :  { %9083 = vmatpush3.bf16.msra.mxu1 %v9709_v20 }
 0xfba   :  { %9084 = vmatprep.subr.bf16.mxu1 %v13557_v49 }
 0xfbd   :  { %9085 = vmatpush3.bf16.msra.mxu1 %v9710_v43 }
 0xfbe   :  { %9086 = vmatprep.subr.bf16.mxu1 %v13557_v49 }
 0xfc1   :  { %9087 = vmatpush3.bf16.msra.mxu1 %v9711_v37 }
0x1077   :  { %v7499_v47 = vpop.f32.mrb[80].mxu1  ;;  %v7540_v42 = vpop.f32.mrb[92].mxu0 }
0x1078   :  { %v7500_v27 = vadd.f32 %v7499_v47, %v13776_v13  ;;  %v7501_v25 = vpop.f32.mrb[81].mxu1  ;;  %v7542_v30 = vpop.f32.mrb[93].mxu0  ;;  %v7541_v17 = vadd.f32 %v7540_v42, %v13779_v46 }
0x1079   :  { %v7503_v14 = vpop.f32.mrb[82].mxu1  ;;  %v7544_v18 = vpop.f32.mrb[94].mxu0  ;;  %v7502_v62 = vadd.f32 %v7501_v25, %v13777_v22  ;;  %v7543_v11 = vadd.f32 %v7542_v30, %v13778_v34 }
0x107a   :  { %v8597_v40 = vmul.f32 -1.442695, %v7500_v27  ;;  %v7504_v8 = vpop.f32.mrb[83].mxu1  ;;  %v7545_v15 = vpop.f32.mrb[95].mxu0 }
0x107b   :  { %v8598_v39 = vmul.f32 -1.442695, %v7502_v62 }
0x107c   :  { %9890 = vpow2.f32 %v8597_v40 }
0x107d   :  { %9892 = vpow2.f32 %v8598_v39 }
0x1086   :  { %v9891_v21 = vpop.eup %9890 }
0x1087   :  { %v7550_v28 = vadd.f32 1.0, %v9891_v21  ;;  %v9893_v49 = vpop.eup %9892 }
0x1088   :  { %v7556_v24 = vadd.f32 1.0, %v9893_v49 }
0x1089   :  { %9894 = vrcp.f32 %v7550_v28 }
0x108a   :  { %9896 = vrcp.f32 %v7556_v24 }
0x1093   :  { %v9895_v13 = vpop.eup %9894 }
0x1094   :  { %v7559_v33 = vmul.f32 %v9895_v13, %v7543_v11  ;;  %v9897_v57 = vpop.eup %9896 }
0x1095   :  { %v7562_v16 = vsub.f32 1.0, %v9897_v57  ;;  %v7564_v51 = vmul.f32 %v9897_v57, %v13209_v52 }
0x1096   :  { %v7560_v45 = vadd.f32 %v7559_v33, %v7541_v17 }
0x1098   :  { %9898 = vtanh.f32 %v7560_v45 }
0x10a2   :  { %v9899_v22 = vpop.eup %9898 }
0x10a3   :  { %v7563_v26 = vmul.f32 %v9899_v22, %v7562_v16 }
0x10a5   :  { %v7565_v36 = vadd.f32 %v7564_v51, %v7563_v26 }
0x10a7   :  { %v7566_v6 = vpack.c.bf16 %v7565_v36, %v7565_v36  ;;  %8612 = vst [vmem:[%s13405_s10 + $0x8] sm:$0xff] %v7565_v36 }
0x10a9   :  { %9089 = vmatmul.mubr.bf16.vlgmr.msra.gmra.mrb[84].mxu1 %v7566_v6 }
0x117c   :  { %v7665_v34 = vpop.f32.mrb[84].mxu1 }
0x117d   :  { %v7666_v46 = vadd.f32 %v13282_v10, %v7665_v34  ;;  %v9090_v44 = vpop.f32.mrb[85].mxu1 }
0x117e   :  { %v7668_v54 = vpop.f32.mrb[86].mxu1 }
0x117f   :  { %v8607_v3 = vmul.f32 -1.442695, %v7666_v46  ;;  %v9091_v7 = vpop.f32.mrb[87].mxu1 }
0x1181   :  { %9900 = vpow2.f32 %v8607_v3 }
0x118b   :  { %v9901_v63 = vpop.eup %9900 }
0x118c   :  { %v7674_v58 = vadd.f32 1.0, %v9901_v63 }
0x118e   :  { %9902 = vrcp.f32 %v7674_v58 }
0x1198   :  { %v9903_v41 = vpop.eup %9902 }
0x1199   :  { %v7678_v52 = vcombine.high %v9903_v41, %v9903_v41  ;;  %v7685_v56 = vrot.slane %v9903_v41, %v10801_v59 }
0x119b   :  { %v7692_v48 = vrot.slane %v7678_v52, %v10801_v59  ;;  %v7693_v0 = vcombine.high %v7685_v56, %v7685_v56  ;;  %v7701_v38 = vrot.slane %v7685_v56, %v10801_v59  ;;  %8608 = vst.sshfl [vmem:[%s13404_s9 + $0x7] sm:$0x1 pattern:$0x73625140] %v7685_v56 }
0x119d   :  { %v7694_v10 = vcombine.high %v7692_v48, %v7692_v48  ;;  %v7708_v53 = vrot.slane %v7692_v48, %v10801_v59  ;;  %v7715_v5 = vrot.slane %v7693_v0, %v10801_v59  ;;  %v7723_v9 = vcombine.high %v7701_v38, %v7701_v38  ;;  %8609 = vst.sshfl [vmem:[%s13404_s9 + $0xf] sm:$0x1 pattern:$0x73625140] %v7693_v0 }
0x119e   :  { %8610 = vst.sshfl [vmem:[%s13404_s9 + $0x27] sm:$0x1 pattern:$0x73625140] %v7692_v48 }
0x119f   :  { %v7722_v60 = vrot.slane %v7694_v10, %v10801_v59  ;;  %v7724_v32 = vcombine.high %v7708_v53, %v7708_v53  ;;  %v7725_v29 = vcombine.high %v7715_v5, %v7715_v5  ;;  %7737 = vst [vmem:[%s13404_s9 + $0x17] sm:$0x1] %v7723_v9  ;;  %8611 = vst.sshfl [vmem:[%s13404_s9 + $0x2f] sm:$0x1 pattern:$0x73625140] %v7694_v10 }
0x11a1   :  { %v7726_v50 = vcombine.high %v7722_v60, %v7722_v60  ;;  %7738 = vst [vmem:[%s13404_s9 + $0x1f] sm:$0x1] %v7725_v29  ;;  %7741 = vst [vmem:[%s13404_s9 + $0x37] sm:$0x1] %v7724_v32 }
0x11a3   :  { %7742 = vst [vmem:[%s13404_s9 + $0x3f] sm:$0x1] %v7726_v50 }

</bundles_post_ra>
